<compile_context>
chip_gen: v5e
topology: v5e:2x2
jax: 0.10.0
libtpu: 0.0.40
codegen_flags: <defaults>
</compile_context>

<pallas_src>
import math
import jax
import jax.numpy as jnp
from jax.experimental import pallas as pl
from jax.experimental.pallas import tpu as pltpu

# ---------------- configuration ----------------
B, S = 2, 8
HID = 32
NH = 4
KEY = 8
KR = 4
VAL = 8
ROUTE = 6
NF = 4                       # node_feature_size
NT = 8                       # num_node_types
INT = 64                     # intermediate_size
NLAB = 4                     # graph_num_labels
NUM_LAYERS = 2
TOTAL = 2 * KEY + VAL + KR   # per-head projection width = 28
SCALE = 1.0 / math.sqrt(KEY + KR)
LN_EPS = 1e-12


def _ln(x, w, b):
    u = jnp.mean(x, axis=-1, keepdims=True)
    s = jnp.mean((x - u) ** 2, axis=-1, keepdims=True)
    return w * ((x - u) / jnp.sqrt(s + LN_EPS)) + b


# ---------------- fused kernel: one batch per grid step ----------------
def _gi_kernel(ids_ref, nf_ref, rd_ref, mrow_ref, mcol_ref,
               embt_ref, fw1_ref, fb1_ref, fw2_ref, fb2_ref, elnw_ref, elnb_ref,
               wt_ref, wd_ref, wrt_ref, wout_ref, bout_ref, ln1w_ref, ln1b_ref,
               wi_ref, bi_ref, wo_ref, bo_ref, ln2w_ref, ln2b_ref,
               wp_ref, bp_ref, out_ref):
    f32 = jnp.float32

    # ---- GIEmbeddings: embedding lookup as one-hot matmul + feature net + LN ----
    ids = ids_ref[0]                                                    # [S, 1] int32
    onehot = (ids == jax.lax.broadcasted_iota(jnp.int32, (S, NT), 1)).astype(f32)
    node_emb = jnp.dot(onehot, embt_ref[...], preferred_element_type=f32)      # [S, HID]
    nf = nf_ref[0]                                                      # [S, NF]
    fh = jnp.tanh(jnp.dot(nf, fw1_ref[...], preferred_element_type=f32) + fb1_ref[...])
    fh = jnp.dot(fh, fw2_ref[...], preferred_element_type=f32) + fb2_ref[...]
    H = _ln(node_emb + fh, elnw_ref[...], elnb_ref[...])                # [S, HID]

    # ---- logit attention mask: (1 - mask) * -10000, broadcast over query rows ----
    mrow = mrow_ref[0]                                                  # [1, S]
    logit_mask = (1.0 - mrow) * (-10000.0)                              # [1, S]

    # route tiles with the ROUTE axis leading: ROUTE x [S, S] lane-dense tiles
    rd = [rd_ref[0, t] for t in range(ROUTE)]

    num_layers = wt_ref.shape[0]
    for l in range(num_layers):
        # joint projection for all heads at once: [S, HID] @ [HID, NH*TOTAL]
        H2 = jnp.dot(H, wt_ref[l], preferred_element_type=f32)          # [S, NH*TOTAL]

        ctx_heads = []
        for h in range(NH):
            base = h * TOTAL
            Qn = H2[:, base:base + KEY]
            Kn = H2[:, base + KEY:base + 2 * KEY]
            V = H2[:, base + 2 * KEY:base + 2 * KEY + VAL]
            Qr = H2[:, base + 2 * KEY + VAL:base + TOTAL]

            # route-key term: QKr[i,j] = sum_t (Qr @ Wd_h)[i,t] * RD[i,j,t]
            QW = jnp.dot(Qr, wd_ref[l, h], preferred_element_type=f32)  # [S, ROUTE]
            QKr = QW[:, 0:1] * rd[0]
            for t in range(1, ROUTE):
                QKr = QKr + QW[:, t:t + 1] * rd[t]

            qk = jax.lax.dot_general(Qn, Kn, (((1,), (1,)), ((), ())),
                                     preferred_element_type=f32)        # [S, S]
            scores = SCALE * (qk + QKr) + logit_mask
            probs = jax.nn.softmax(scores, axis=-1)

            ctx = jnp.dot(probs, V, preferred_element_type=f32)         # [S, VAL]

            # route-value term: ctx += sum_t (sum_j probs[i,j] RD[i,j,t]) * Wr_h[:,t]
            wrt = wrt_ref[l, h]                                         # [ROUTE, VAL]
            for t in range(ROUTE):
                rowsum = jnp.sum(probs * rd[t], axis=1, keepdims=True)  # [S, 1]
                ctx = ctx + rowsum * wrt[t:t + 1, :]
            ctx_heads.append(ctx)

        ctx_all = jnp.concatenate(ctx_heads, axis=1)                    # [S, NH*VAL] lane-dense

        # GraphSelfOutput (residual=False): LN(proj + input)
        attn = jnp.dot(ctx_all, wout_ref[l], preferred_element_type=f32) + bout_ref[l]
        attn = _ln(attn + H, ln1w_ref[l], ln1b_ref[l])

        # intermediate (Linear + ReLU) + GraphOutput (Linear + LN(residual add))
        inter = jnp.maximum(
            jnp.dot(attn, wi_ref[l], preferred_element_type=f32) + bi_ref[l], 0.0)
        proj = jnp.dot(inter, wo_ref[l], preferred_element_type=f32) + bo_ref[l]
        H = _ln(proj + attn, ln2w_ref[l], ln2b_ref[l])

    # ---- GraphPooler: pre=ReLU, masked mean over nodes, post Linear ----
    mcol = mcol_ref[0]                                                  # [S, 1]
    masked = jnp.maximum(H, 0.0) * mcol
    pooled = jnp.sum(masked, axis=0, keepdims=True) / jnp.sum(mcol, keepdims=True)  # [1, HID]
    out = jnp.dot(pooled, wp_ref[...], preferred_element_type=f32) + bp_ref[...]    # [1, NLAB]
    out_ref[0] = out.astype(out_ref.dtype)


# ---------------- wrapper ----------------
def gi_graph_classification(node_ids, node_features, route_data, attention_mask, params):
    layers = params["layers"]

    # ---- host-side constant weight prep (pre-transposed, head-major) ----
    stack = lambda fn: jnp.stack([fn(p) for p in layers])
    Wt = stack(lambda p: p["W"].T)                                       # [L, HID, NH*TOTAL]
    Wd4 = stack(lambda p: p["Wd"].reshape(NH, KR, ROUTE))                # [L, NH, KR, ROUTE]
    Wrt = stack(lambda p: p["Wroute"].reshape(NH, VAL, ROUTE).transpose(0, 2, 1))  # [L,NH,ROUTE,VAL]
    Woutt = stack(lambda p: p["Wout"].T)                                 # [L, NH*VAL, HID]
    bout = stack(lambda p: p["bout"].reshape(1, HID))
    ln1w = stack(lambda p: p["ln1w"].reshape(1, HID))
    ln1b = stack(lambda p: p["ln1b"].reshape(1, HID))
    Wit = stack(lambda p: p["Wi"].T)                                     # [L, HID, INT]
    bi = stack(lambda p: p["bi"].reshape(1, INT))
    Wot = stack(lambda p: p["Wo"].T)                                     # [L, INT, HID]
    bo = stack(lambda p: p["bo"].reshape(1, HID))
    ln2w = stack(lambda p: p["ln2w"].reshape(1, HID))
    ln2b = stack(lambda p: p["ln2b"].reshape(1, HID))

    emb_table = params["emb_table"]
    fW1t = params["fW1"].T
    fb1 = params["fb1"].reshape(1, HID)
    fW2t = params["fW2"].T
    fb2 = params["fb2"].reshape(1, HID)
    elnw = params["elnw"].reshape(1, HID)
    elnb = params["elnb"].reshape(1, HID)
    Wpt = params["Wp"].T                                                 # [HID, NLAB]
    bp = params["bp"].reshape(1, NLAB)

    # ---- data prep: route axis leading, masks in both row/col layouts ----
    ids3 = node_ids.astype(jnp.int32).reshape(B, S, 1)
    route_t = route_data.transpose(0, 3, 1, 2)                           # [B, ROUTE, S, S]
    mrow = attention_mask.astype(jnp.float32).reshape(B, 1, S)
    mcol = attention_mask.astype(jnp.float32).reshape(B, S, 1)

    weight_list = [emb_table, fW1t, fb1, fW2t, fb2, elnw, elnb,
                   Wt, Wd4, Wrt, Woutt, bout, ln1w, ln1b,
                   Wit, bi, Wot, bo, ln2w, ln2b, Wpt, bp]

    def const_spec(a):
        n = a.ndim
        return pl.BlockSpec(tuple(a.shape), lambda b, n=n: (0,) * n)

    in_specs = [
        pl.BlockSpec((1, S, 1), lambda b: (b, 0, 0)),            # node_ids
        pl.BlockSpec((1, S, NF), lambda b: (b, 0, 0)),           # node_features
        pl.BlockSpec((1, ROUTE, S, S), lambda b: (b, 0, 0, 0)),  # route_data (ROUTE-major)
        pl.BlockSpec((1, 1, S), lambda b: (b, 0, 0)),            # mask (row layout)
        pl.BlockSpec((1, S, 1), lambda b: (b, 0, 0)),            # mask (col layout)
    ] + [const_spec(w) for w in weight_list]

    out = pl.pallas_call(
        _gi_kernel,
        out_shape=jax.ShapeDtypeStruct((B, 1, NLAB), jnp.float32),
        grid_spec=pltpu.PrefetchScalarGridSpec(
            num_scalar_prefetch=0,
            grid=(B,),
            in_specs=in_specs,
            out_specs=pl.BlockSpec((1, 1, NLAB), lambda b: (b, 0, 0)),
        ),
        compiler_params=pltpu.CompilerParams(dimension_semantics=("parallel",)),
    )(ids3, node_features, route_t, mrow, mcol, *weight_list)
    return out.reshape(B, NLAB)


# ---------------- pure-JAX reference (mirrors the torch module) ----------------
def reference(node_ids, node_features, route_data, attention_mask, params):
    def ln(x, w, b):
        u = x.mean(-1, keepdims=True)
        s = ((x - u) ** 2).mean(-1, keepdims=True)
        return w * ((x - u) / jnp.sqrt(s + LN_EPS)) + b

    # GIEmbeddings
    node_emb = params["emb_table"][node_ids]
    fh = jnp.tanh(node_features @ params["fW1"].T + params["fb1"]) @ params["fW2"].T + params["fb2"]
    H = ln(node_emb + fh, params["elnw"], params["elnb"])

    mask4 = (1.0 - attention_mask)[:, None, None, :] * -10000.0
    RD = route_data
    for p in params["layers"]:
        H2 = (H @ p["W"].T).reshape(B, S, NH, TOTAL).transpose(0, 2, 1, 3)
        Qn = H2[..., :KEY]
        Kn = H2[..., KEY:2 * KEY]
        V = H2[..., 2 * KEY:2 * KEY + VAL]
        Qr = H2[..., 2 * KEY + VAL:]
        Kr = (RD @ p["Wd"].T).reshape(B, S, S, NH, KR).transpose(0, 3, 1, 4, 2)
        QKr = jnp.einsum('bhir,bhirj->bhij', Qr, Kr)
        scores = SCALE * (jnp.einsum('bhid,bhjd->bhij', Qn, Kn) + QKr) + mask4
        probs = jax.nn.softmax(scores, axis=-1)
        ctx = jnp.einsum('bhij,bhjv->bhiv', probs, V)
        Vr = (RD @ p["Wroute"].T).reshape(B, S, S, NH, VAL).transpose(0, 3, 1, 2, 4)
        ctx = ctx + jnp.einsum('bhij,bhijv->bhiv', probs, Vr)
        ctx_flat = ctx.transpose(0, 2, 1, 3).reshape(B, S, NH * VAL)
        attn = ln(ctx_flat @ p["Wout"].T + p["bout"] + H, p["ln1w"], p["ln1b"])
        inter = jax.nn.relu(attn @ p["Wi"].T + p["bi"])
        H = ln(inter @ p["Wo"].T + p["bo"] + attn, p["ln2w"], p["ln2b"])

    pre = jax.nn.relu(H)
    masked = pre * attention_mask[..., None]
    pooled = masked.sum(-2) / attention_mask.sum(1)[:, None]
    return pooled @ params["Wp"].T + params["bp"]


if __name__ == "__main__":
    key = jax.random.PRNGKey(0)
    keys = iter(jax.random.split(key, 64))

    def rnd(shape, scale=0.05):
        return scale * jax.random.normal(next(keys), shape, jnp.float32)

    layer_params = []
    for _ in range(NUM_LAYERS):
        layer_params.append({
            "W": rnd((NH * TOTAL, HID)),
            "Wd": rnd((NH * KR, ROUTE)),
            "Wroute": rnd((NH * VAL, ROUTE)),
            "Wout": rnd((HID, NH * VAL)),
            "bout": rnd((HID,), 0.01),
            "ln1w": 1.0 + rnd((HID,), 0.1),
            "ln1b": rnd((HID,), 0.1),
            "Wi": rnd((INT, HID)),
            "bi": rnd((INT,), 0.01),
            "Wo": rnd((HID, INT)),
            "bo": rnd((HID,), 0.01),
            "ln2w": 1.0 + rnd((HID,), 0.1),
            "ln2b": rnd((HID,), 0.1),
        })

    params = {
        "emb_table": rnd((NT, HID), 0.5),
        "fW1": rnd((HID, NF), 0.5),
        "fb1": rnd((HID,), 0.1),
        "fW2": rnd((HID, HID), 0.2),
        "fb2": rnd((HID,), 0.1),
        "elnw": 1.0 + rnd((HID,), 0.1),
        "elnb": rnd((HID,), 0.1),
        "layers": layer_params,
        "Wp": rnd((NLAB, HID), 0.2),
        "bp": rnd((NLAB,), 0.01),
    }

    node_ids = jax.random.randint(next(keys), (B, S), 0, NT, dtype=jnp.int32)
    node_features = jax.random.normal(next(keys), (B, S, NF), jnp.float32)
    route_data = jax.random.normal(next(keys), (B, S, S, ROUTE), jnp.float32)

    # attention mask [B, S]: 1 visible, 0 masked (mask out tail of batch 1)
    lengths = jnp.array([S, S - 2], jnp.int32)
    attention_mask = (jnp.arange(S)[None, :] < lengths[:, None]).astype(jnp.float32)

    out = gi_graph_classification(node_ids, node_features, route_data, attention_mask, params)
    out = jax.block_until_ready(out)

    ref = reference(node_ids, node_features, route_data, attention_mask, params)
    err = float(jnp.max(jnp.abs(out - ref)))
    if not (err < 5e-4):
        raise AssertionError(f"mismatch vs reference, max abs err = {err}")

    print("KERNEL_OK")
</pallas_src>

<mosaic_0001>
module attributes {stable_mosaic.version = 11 : i64} {
  func.func @_gi_kernel(%arg0: i32, %arg1: memref<1x8x1xi32, #tpu.memory_space<vmem>>, %arg2: memref<1x8x4xf32, #tpu.memory_space<vmem>>, %arg3: memref<1x6x8x8xf32, #tpu.memory_space<vmem>>, %arg4: memref<1x1x8xf32, #tpu.memory_space<vmem>>, %arg5: memref<1x8x1xf32, #tpu.memory_space<vmem>>, %arg6: memref<8x32xf32, #tpu.memory_space<vmem>>, %arg7: memref<4x32xf32, #tpu.memory_space<vmem>>, %arg8: memref<1x32xf32, #tpu.memory_space<vmem>>, %arg9: memref<32x32xf32, #tpu.memory_space<vmem>>, %arg10: memref<1x32xf32, #tpu.memory_space<vmem>>, %arg11: memref<1x32xf32, #tpu.memory_space<vmem>>, %arg12: memref<1x32xf32, #tpu.memory_space<vmem>>, %arg13: memref<2x32x112xf32, #tpu.memory_space<vmem>>, %arg14: memref<2x4x4x6xf32, #tpu.memory_space<vmem>>, %arg15: memref<2x4x6x8xf32, #tpu.memory_space<vmem>>, %arg16: memref<2x32x32xf32, #tpu.memory_space<vmem>>, %arg17: memref<2x1x32xf32, #tpu.memory_space<vmem>>, %arg18: memref<2x1x32xf32, #tpu.memory_space<vmem>>, %arg19: memref<2x1x32xf32, #tpu.memory_space<vmem>>, %arg20: memref<2x32x64xf32, #tpu.memory_space<vmem>>, %arg21: memref<2x1x64xf32, #tpu.memory_space<vmem>>, %arg22: memref<2x64x32xf32, #tpu.memory_space<vmem>>, %arg23: memref<2x1x32xf32, #tpu.memory_space<vmem>>, %arg24: memref<2x1x32xf32, #tpu.memory_space<vmem>>, %arg25: memref<2x1x32xf32, #tpu.memory_space<vmem>>, %arg26: memref<32x4xf32, #tpu.memory_space<vmem>>, %arg27: memref<1x4xf32, #tpu.memory_space<vmem>>, %arg28: memref<1x1x4xf32, #tpu.memory_space<vmem>>) attributes {dimension_semantics = [#tpu.dimension_semantics<parallel>], iteration_bounds = array<i64: 2>, scalar_prefetch = 0 : i64, scratch_operands = 0 : i64, tpu.core_type = #tpu.core_type<tc>, window_params = [{transform_indices = @transform_0, window_bounds = array<i64: 1, 8, 1>}, {transform_indices = @transform_1, window_bounds = array<i64: 1, 8, 4>}, {transform_indices = @transform_2, window_bounds = array<i64: 1, 6, 8, 8>}, {transform_indices = @transform_3, window_bounds = array<i64: 1, 1, 8>}, {transform_indices = @transform_4, window_bounds = array<i64: 1, 8, 1>}, {pipeline_mode = #tpu.pipeline_mode<synchronous>, transform_indices = @transform_5, window_bounds = array<i64: 8, 32>}, {pipeline_mode = #tpu.pipeline_mode<synchronous>, transform_indices = @transform_6, window_bounds = array<i64: 4, 32>}, {pipeline_mode = #tpu.pipeline_mode<synchronous>, transform_indices = @transform_7, window_bounds = array<i64: 1, 32>}, {pipeline_mode = #tpu.pipeline_mode<synchronous>, transform_indices = @transform_8, window_bounds = array<i64: 32, 32>}, {pipeline_mode = #tpu.pipeline_mode<synchronous>, transform_indices = @transform_9, window_bounds = array<i64: 1, 32>}, {pipeline_mode = #tpu.pipeline_mode<synchronous>, transform_indices = @transform_10, window_bounds = array<i64: 1, 32>}, {pipeline_mode = #tpu.pipeline_mode<synchronous>, transform_indices = @transform_11, window_bounds = array<i64: 1, 32>}, {pipeline_mode = #tpu.pipeline_mode<synchronous>, transform_indices = @transform_12, window_bounds = array<i64: 2, 32, 112>}, {pipeline_mode = #tpu.pipeline_mode<synchronous>, transform_indices = @transform_13, window_bounds = array<i64: 2, 4, 4, 6>}, {pipeline_mode = #tpu.pipeline_mode<synchronous>, transform_indices = @transform_14, window_bounds = array<i64: 2, 4, 6, 8>}, {pipeline_mode = #tpu.pipeline_mode<synchronous>, transform_indices = @transform_15, window_bounds = array<i64: 2, 32, 32>}, {pipeline_mode = #tpu.pipeline_mode<synchronous>, transform_indices = @transform_16, window_bounds = array<i64: 2, 1, 32>}, {pipeline_mode = #tpu.pipeline_mode<synchronous>, transform_indices = @transform_17, window_bounds = array<i64: 2, 1, 32>}, {pipeline_mode = #tpu.pipeline_mode<synchronous>, transform_indices = @transform_18, window_bounds = array<i64: 2, 1, 32>}, {pipeline_mode = #tpu.pipeline_mode<synchronous>, transform_indices = @transform_19, window_bounds = array<i64: 2, 32, 64>}, {pipeline_mode = #tpu.pipeline_mode<synchronous>, transform_indices = @transform_20, window_bounds = array<i64: 2, 1, 64>}, {pipeline_mode = #tpu.pipeline_mode<synchronous>, transform_indices = @transform_21, window_bounds = array<i64: 2, 64, 32>}, {pipeline_mode = #tpu.pipeline_mode<synchronous>, transform_indices = @transform_22, window_bounds = array<i64: 2, 1, 32>}, {pipeline_mode = #tpu.pipeline_mode<synchronous>, transform_indices = @transform_23, window_bounds = array<i64: 2, 1, 32>}, {pipeline_mode = #tpu.pipeline_mode<synchronous>, transform_indices = @transform_24, window_bounds = array<i64: 2, 1, 32>}, {pipeline_mode = #tpu.pipeline_mode<synchronous>, transform_indices = @transform_25, window_bounds = array<i64: 32, 4>}, {pipeline_mode = #tpu.pipeline_mode<synchronous>, transform_indices = @transform_26, window_bounds = array<i64: 1, 4>}, {transform_indices = @transform_27, window_bounds = array<i64: 1, 1, 4>}]} {
    %c0 = arith.constant 0 : index
    %c0_0 = arith.constant 0 : index
    %c0_1 = arith.constant 0 : index
    %0 = vector.load %arg1[%c0, %c0_0, %c0_1] : memref<1x8x1xi32, #tpu.memory_space<vmem>>, vector<1x8x1xi32>
    %1 = vector.shape_cast %0 : vector<1x8x1xi32> to vector<8x1xi32>
    %2 = tpu.iota {dimensions = array<i32: 1>} : vector<8x8xi32>
    %3 = vector.broadcast %1 : vector<8x1xi32> to vector<8x8xi32>
    %4 = arith.cmpi eq, %3, %2 : vector<8x8xi32>
    %5 = arith.extui %4 : vector<8x8xi1> to vector<8x8xi32>
    %6 = arith.sitofp %5 : vector<8x8xi32> to vector<8x8xf32>
    %c0_2 = arith.constant 0 : index
    %c0_3 = arith.constant 0 : index
    %7 = vector.load %arg6[%c0_2, %c0_3] : memref<8x32xf32, #tpu.memory_space<vmem>>, vector<8x32xf32>
    %cst = arith.constant dense<0.000000e+00> : vector<8x32xf32>
    %8 = tpu.matmul %6, %7, %cst {dimension_numbers = #tpu.dot_dimension_numbers<[1], [0], [0], [1], [0, 0, 1, 1], [], []>} : vector<8x8xf32>, vector<8x32xf32>, vector<8x32xf32> -> vector<8x32xf32>
    %c0_4 = arith.constant 0 : index
    %c0_5 = arith.constant 0 : index
    %c0_6 = arith.constant 0 : index
    %9 = vector.load %arg2[%c0_4, %c0_5, %c0_6] : memref<1x8x4xf32, #tpu.memory_space<vmem>>, vector<1x8x4xf32>
    %10 = vector.shape_cast %9 : vector<1x8x4xf32> to vector<8x4xf32>
    %c0_7 = arith.constant 0 : index
    %c0_8 = arith.constant 0 : index
    %11 = vector.load %arg7[%c0_7, %c0_8] : memref<4x32xf32, #tpu.memory_space<vmem>>, vector<4x32xf32>
    %cst_9 = arith.constant dense<0.000000e+00> : vector<8x32xf32>
    %12 = tpu.matmul %10, %11, %cst_9 {dimension_numbers = #tpu.dot_dimension_numbers<[1], [0], [0], [1], [0, 0, 1, 1], [], []>} : vector<8x4xf32>, vector<4x32xf32>, vector<8x32xf32> -> vector<8x32xf32>
    %c0_10 = arith.constant 0 : index
    %c0_11 = arith.constant 0 : index
    %13 = vector.load %arg8[%c0_10, %c0_11] : memref<1x32xf32, #tpu.memory_space<vmem>>, vector<1x32xf32>
    %14 = vector.broadcast %13 : vector<1x32xf32> to vector<8x32xf32>
    %15 = arith.addf %12, %14 : vector<8x32xf32>
    %16 = math.tanh %15 : vector<8x32xf32>
    %c0_12 = arith.constant 0 : index
    %c0_13 = arith.constant 0 : index
    %17 = vector.load %arg9[%c0_12, %c0_13] : memref<32x32xf32, #tpu.memory_space<vmem>>, vector<32x32xf32>
    %cst_14 = arith.constant dense<0.000000e+00> : vector<8x32xf32>
    %18 = tpu.matmul %16, %17, %cst_14 {dimension_numbers = #tpu.dot_dimension_numbers<[1], [0], [0], [1], [0, 0, 1, 1], [], []>} : vector<8x32xf32>, vector<32x32xf32>, vector<8x32xf32> -> vector<8x32xf32>
    %c0_15 = arith.constant 0 : index
    %c0_16 = arith.constant 0 : index
    %19 = vector.load %arg10[%c0_15, %c0_16] : memref<1x32xf32, #tpu.memory_space<vmem>>, vector<1x32xf32>
    %20 = vector.broadcast %19 : vector<1x32xf32> to vector<8x32xf32>
    %21 = arith.addf %18, %20 : vector<8x32xf32>
    %22 = arith.addf %8, %21 : vector<8x32xf32>
    %c0_17 = arith.constant 0 : index
    %c0_18 = arith.constant 0 : index
    %23 = vector.load %arg11[%c0_17, %c0_18] : memref<1x32xf32, #tpu.memory_space<vmem>>, vector<1x32xf32>
    %c0_19 = arith.constant 0 : index
    %c0_20 = arith.constant 0 : index
    %24 = vector.load %arg12[%c0_19, %c0_20] : memref<1x32xf32, #tpu.memory_space<vmem>>, vector<1x32xf32>
    %cst_21 = arith.constant dense<0.000000e+00> : vector<8xf32>
    %25 = vector.multi_reduction <add>, %22, %cst_21 [1] : vector<8x32xf32> to vector<8xf32>
    %26 = vector.shape_cast %25 : vector<8xf32> to vector<8x1xf32>
    %cst_22 = arith.constant 3.200000e+01 : f32
    %27 = vector.broadcast %cst_22 : f32 to vector<8x1xf32>
    %28 = arith.divf %26, %27 : vector<8x1xf32>
    %29 = vector.broadcast %28 : vector<8x1xf32> to vector<8x32xf32>
    %30 = arith.subf %22, %29 : vector<8x32xf32>
    %31 = arith.mulf %30, %30 : vector<8x32xf32>
    %cst_23 = arith.constant dense<0.000000e+00> : vector<8xf32>
    %32 = vector.multi_reduction <add>, %31, %cst_23 [1] : vector<8x32xf32> to vector<8xf32>
    %33 = vector.shape_cast %32 : vector<8xf32> to vector<8x1xf32>
    %cst_24 = arith.constant 3.200000e+01 : f32
    %34 = vector.broadcast %cst_24 : f32 to vector<8x1xf32>
    %35 = arith.divf %33, %34 : vector<8x1xf32>
    %36 = vector.broadcast %28 : vector<8x1xf32> to vector<8x32xf32>
    %37 = arith.subf %22, %36 : vector<8x32xf32>
    %cst_25 = arith.constant 9.99999996E-13 : f32
    %38 = vector.broadcast %cst_25 : f32 to vector<8x1xf32>
    %39 = arith.addf %35, %38 : vector<8x1xf32>
    %40 = math.sqrt %39 : vector<8x1xf32>
    %41 = vector.broadcast %40 : vector<8x1xf32> to vector<8x32xf32>
    %42 = arith.divf %37, %41 : vector<8x32xf32>
    %43 = vector.broadcast %23 : vector<1x32xf32> to vector<8x32xf32>
    %44 = arith.mulf %43, %42 : vector<8x32xf32>
    %45 = vector.broadcast %24 : vector<1x32xf32> to vector<8x32xf32>
    %46 = arith.addf %44, %45 : vector<8x32xf32>
    %c0_26 = arith.constant 0 : index
    %c0_27 = arith.constant 0 : index
    %c0_28 = arith.constant 0 : index
    %47 = vector.load %arg4[%c0_26, %c0_27, %c0_28] : memref<1x1x8xf32, #tpu.memory_space<vmem>>, vector<1x1x8xf32>
    %48 = vector.shape_cast %47 : vector<1x1x8xf32> to vector<1x8xf32>
    %cst_29 = arith.constant 1.000000e+00 : f32
    %49 = vector.broadcast %cst_29 : f32 to vector<1x8xf32>
    %50 = arith.subf %49, %48 : vector<1x8xf32>
    %cst_30 = arith.constant -1.000000e+04 : f32
    %51 = vector.broadcast %cst_30 : f32 to vector<1x8xf32>
    %52 = arith.mulf %50, %51 : vector<1x8xf32>
    %c0_31 = arith.constant 0 : index
    %c0_32 = arith.constant 0 : index
    %c0_33 = arith.constant 0 : index
    %c0_34 = arith.constant 0 : index
    %53 = vector.load %arg3[%c0_31, %c0_32, %c0_33, %c0_34] : memref<1x6x8x8xf32, #tpu.memory_space<vmem>>, vector<1x1x8x8xf32>
    %54 = vector.shape_cast %53 : vector<1x1x8x8xf32> to vector<8x8xf32>
    %c0_35 = arith.constant 0 : index
    %c1 = arith.constant 1 : index
    %c0_36 = arith.constant 0 : index
    %c0_37 = arith.constant 0 : index
    %55 = vector.load %arg3[%c0_35, %c1, %c0_36, %c0_37] : memref<1x6x8x8xf32, #tpu.memory_space<vmem>>, vector<1x1x8x8xf32>
    %56 = vector.shape_cast %55 : vector<1x1x8x8xf32> to vector<8x8xf32>
    %c0_38 = arith.constant 0 : index
    %c2 = arith.constant 2 : index
    %c0_39 = arith.constant 0 : index
    %c0_40 = arith.constant 0 : index
    %57 = vector.load %arg3[%c0_38, %c2, %c0_39, %c0_40] : memref<1x6x8x8xf32, #tpu.memory_space<vmem>>, vector<1x1x8x8xf32>
    %58 = vector.shape_cast %57 : vector<1x1x8x8xf32> to vector<8x8xf32>
    %c0_41 = arith.constant 0 : index
    %c3 = arith.constant 3 : index
    %c0_42 = arith.constant 0 : index
    %c0_43 = arith.constant 0 : index
    %59 = vector.load %arg3[%c0_41, %c3, %c0_42, %c0_43] : memref<1x6x8x8xf32, #tpu.memory_space<vmem>>, vector<1x1x8x8xf32>
    %60 = vector.shape_cast %59 : vector<1x1x8x8xf32> to vector<8x8xf32>
    %c0_44 = arith.constant 0 : index
    %c4 = arith.constant 4 : index
    %c0_45 = arith.constant 0 : index
    %c0_46 = arith.constant 0 : index
    %61 = vector.load %arg3[%c0_44, %c4, %c0_45, %c0_46] : memref<1x6x8x8xf32, #tpu.memory_space<vmem>>, vector<1x1x8x8xf32>
    %62 = vector.shape_cast %61 : vector<1x1x8x8xf32> to vector<8x8xf32>
    %c0_47 = arith.constant 0 : index
    %c5 = arith.constant 5 : index
    %c0_48 = arith.constant 0 : index
    %c0_49 = arith.constant 0 : index
    %63 = vector.load %arg3[%c0_47, %c5, %c0_48, %c0_49] : memref<1x6x8x8xf32, #tpu.memory_space<vmem>>, vector<1x1x8x8xf32>
    %64 = vector.shape_cast %63 : vector<1x1x8x8xf32> to vector<8x8xf32>
    %c0_50 = arith.constant 0 : index
    %c0_51 = arith.constant 0 : index
    %c0_52 = arith.constant 0 : index
    %65 = vector.load %arg13[%c0_50, %c0_51, %c0_52] : memref<2x32x112xf32, #tpu.memory_space<vmem>>, vector<1x32x112xf32>
    %66 = vector.shape_cast %65 : vector<1x32x112xf32> to vector<32x112xf32>
    %cst_53 = arith.constant dense<0.000000e+00> : vector<8x112xf32>
    %67 = tpu.matmul %46, %66, %cst_53 {dimension_numbers = #tpu.dot_dimension_numbers<[1], [0], [0], [1], [0, 0, 1, 1], [], []>} : vector<8x32xf32>, vector<32x112xf32>, vector<8x112xf32> -> vector<8x112xf32>
    %68 = vector.extract_strided_slice %67 {offsets = [0, 0], sizes = [8, 8], strides = [1, 1]} : vector<8x112xf32> to vector<8x8xf32>
    %69 = vector.extract_strided_slice %67 {offsets = [0, 8], sizes = [8, 8], strides = [1, 1]} : vector<8x112xf32> to vector<8x8xf32>
    %70 = vector.extract_strided_slice %67 {offsets = [0, 16], sizes = [8, 8], strides = [1, 1]} : vector<8x112xf32> to vector<8x8xf32>
    %71 = vector.extract_strided_slice %67 {offsets = [0, 24], sizes = [8, 4], strides = [1, 1]} : vector<8x112xf32> to vector<8x4xf32>
    %c0_54 = arith.constant 0 : index
    %c0_55 = arith.constant 0 : index
    %c0_56 = arith.constant 0 : index
    %c0_57 = arith.constant 0 : index
    %72 = vector.load %arg14[%c0_54, %c0_55, %c0_56, %c0_57] : memref<2x4x4x6xf32, #tpu.memory_space<vmem>>, vector<1x1x4x6xf32>
    %73 = vector.shape_cast %72 : vector<1x1x4x6xf32> to vector<4x6xf32>
    %cst_58 = arith.constant dense<0.000000e+00> : vector<8x6xf32>
    %74 = tpu.matmul %71, %73, %cst_58 {dimension_numbers = #tpu.dot_dimension_numbers<[1], [0], [0], [1], [0, 0, 1, 1], [], []>} : vector<8x4xf32>, vector<4x6xf32>, vector<8x6xf32> -> vector<8x6xf32>
    %75 = vector.extract_strided_slice %74 {offsets = [0, 0], sizes = [8, 1], strides = [1, 1]} : vector<8x6xf32> to vector<8x1xf32>
    %76 = vector.broadcast %75 : vector<8x1xf32> to vector<8x8xf32>
    %77 = arith.mulf %76, %54 : vector<8x8xf32>
    %78 = vector.extract_strided_slice %74 {offsets = [0, 1], sizes = [8, 1], strides = [1, 1]} : vector<8x6xf32> to vector<8x1xf32>
    %79 = vector.broadcast %78 : vector<8x1xf32> to vector<8x8xf32>
    %80 = arith.mulf %79, %56 : vector<8x8xf32>
    %81 = arith.addf %77, %80 : vector<8x8xf32>
    %82 = vector.extract_strided_slice %74 {offsets = [0, 2], sizes = [8, 1], strides = [1, 1]} : vector<8x6xf32> to vector<8x1xf32>
    %83 = vector.broadcast %82 : vector<8x1xf32> to vector<8x8xf32>
    %84 = arith.mulf %83, %58 : vector<8x8xf32>
    %85 = arith.addf %81, %84 : vector<8x8xf32>
    %86 = vector.extract_strided_slice %74 {offsets = [0, 3], sizes = [8, 1], strides = [1, 1]} : vector<8x6xf32> to vector<8x1xf32>
    %87 = vector.broadcast %86 : vector<8x1xf32> to vector<8x8xf32>
    %88 = arith.mulf %87, %60 : vector<8x8xf32>
    %89 = arith.addf %85, %88 : vector<8x8xf32>
    %90 = vector.extract_strided_slice %74 {offsets = [0, 4], sizes = [8, 1], strides = [1, 1]} : vector<8x6xf32> to vector<8x1xf32>
    %91 = vector.broadcast %90 : vector<8x1xf32> to vector<8x8xf32>
    %92 = arith.mulf %91, %62 : vector<8x8xf32>
    %93 = arith.addf %89, %92 : vector<8x8xf32>
    %94 = vector.extract_strided_slice %74 {offsets = [0, 5], sizes = [8, 1], strides = [1, 1]} : vector<8x6xf32> to vector<8x1xf32>
    %95 = vector.broadcast %94 : vector<8x1xf32> to vector<8x8xf32>
    %96 = arith.mulf %95, %64 : vector<8x8xf32>
    %97 = arith.addf %93, %96 : vector<8x8xf32>
    %cst_59 = arith.constant dense<0.000000e+00> : vector<8x8xf32>
    %98 = tpu.matmul %68, %69, %cst_59 {dimension_numbers = #tpu.dot_dimension_numbers<[1], [1], [0], [0], [0, 0, 1, 0], [], []>} : vector<8x8xf32>, vector<8x8xf32>, vector<8x8xf32> -> vector<8x8xf32>
    %99 = arith.addf %98, %97 : vector<8x8xf32>
    %cst_60 = arith.constant 0.288675129 : f32
    %100 = vector.broadcast %cst_60 : f32 to vector<8x8xf32>
    %101 = arith.mulf %100, %99 : vector<8x8xf32>
    %102 = vector.broadcast %52 : vector<1x8xf32> to vector<8x8xf32>
    %103 = arith.addf %101, %102 : vector<8x8xf32>
    %cst_61 = arith.constant dense<0xFF800000> : vector<8xf32>
    %104 = vector.multi_reduction <maximumf>, %103, %cst_61 [1] : vector<8x8xf32> to vector<8xf32>
    %cst_62 = arith.constant 0xFF800000 : f32
    %105 = vector.broadcast %cst_62 : f32 to vector<8xf32>
    %106 = arith.maximumf %105, %104 : vector<8xf32>
    %107 = vector.shape_cast %106 : vector<8xf32> to vector<8x1xf32>
    %108 = vector.broadcast %107 : vector<8x1xf32> to vector<8x8xf32>
    %109 = arith.subf %103, %108 : vector<8x8xf32>
    %110 = math.exp %109 : vector<8x8xf32>
    %cst_63 = arith.constant dense<0.000000e+00> : vector<8xf32>
    %111 = vector.multi_reduction <add>, %110, %cst_63 [1] : vector<8x8xf32> to vector<8xf32>
    %112 = vector.shape_cast %111 : vector<8xf32> to vector<8x1xf32>
    %113 = vector.broadcast %112 : vector<8x1xf32> to vector<8x8xf32>
    %114 = arith.divf %110, %113 : vector<8x8xf32>
    %cst_64 = arith.constant dense<0.000000e+00> : vector<8x8xf32>
    %115 = tpu.matmul %114, %70, %cst_64 {dimension_numbers = #tpu.dot_dimension_numbers<[1], [0], [0], [1], [0, 0, 1, 1], [], []>} : vector<8x8xf32>, vector<8x8xf32>, vector<8x8xf32> -> vector<8x8xf32>
    %c0_65 = arith.constant 0 : index
    %c0_66 = arith.constant 0 : index
    %c0_67 = arith.constant 0 : index
    %c0_68 = arith.constant 0 : index
    %116 = vector.load %arg15[%c0_65, %c0_66, %c0_67, %c0_68] : memref<2x4x6x8xf32, #tpu.memory_space<vmem>>, vector<1x1x6x8xf32>
    %117 = vector.shape_cast %116 : vector<1x1x6x8xf32> to vector<6x8xf32>
    %118 = arith.mulf %114, %54 : vector<8x8xf32>
    %cst_69 = arith.constant dense<0.000000e+00> : vector<8xf32>
    %119 = vector.multi_reduction <add>, %118, %cst_69 [1] : vector<8x8xf32> to vector<8xf32>
    %120 = vector.shape_cast %119 : vector<8xf32> to vector<8x1xf32>
    %121 = vector.extract_strided_slice %117 {offsets = [0, 0], sizes = [1, 8], strides = [1, 1]} : vector<6x8xf32> to vector<1x8xf32>
    %122 = vector.broadcast %120 : vector<8x1xf32> to vector<8x8xf32>
    %123 = vector.broadcast %121 : vector<1x8xf32> to vector<8x8xf32>
    %124 = arith.mulf %122, %123 : vector<8x8xf32>
    %125 = arith.addf %115, %124 : vector<8x8xf32>
    %126 = arith.mulf %114, %56 : vector<8x8xf32>
    %cst_70 = arith.constant dense<0.000000e+00> : vector<8xf32>
    %127 = vector.multi_reduction <add>, %126, %cst_70 [1] : vector<8x8xf32> to vector<8xf32>
    %128 = vector.shape_cast %127 : vector<8xf32> to vector<8x1xf32>
    %129 = vector.extract_strided_slice %117 {offsets = [1, 0], sizes = [1, 8], strides = [1, 1]} : vector<6x8xf32> to vector<1x8xf32>
    %130 = vector.broadcast %128 : vector<8x1xf32> to vector<8x8xf32>
    %131 = vector.broadcast %129 : vector<1x8xf32> to vector<8x8xf32>
    %132 = arith.mulf %130, %131 : vector<8x8xf32>
    %133 = arith.addf %125, %132 : vector<8x8xf32>
    %134 = arith.mulf %114, %58 : vector<8x8xf32>
    %cst_71 = arith.constant dense<0.000000e+00> : vector<8xf32>
    %135 = vector.multi_reduction <add>, %134, %cst_71 [1] : vector<8x8xf32> to vector<8xf32>
    %136 = vector.shape_cast %135 : vector<8xf32> to vector<8x1xf32>
    %137 = vector.extract_strided_slice %117 {offsets = [2, 0], sizes = [1, 8], strides = [1, 1]} : vector<6x8xf32> to vector<1x8xf32>
    %138 = vector.broadcast %136 : vector<8x1xf32> to vector<8x8xf32>
    %139 = vector.broadcast %137 : vector<1x8xf32> to vector<8x8xf32>
    %140 = arith.mulf %138, %139 : vector<8x8xf32>
    %141 = arith.addf %133, %140 : vector<8x8xf32>
    %142 = arith.mulf %114, %60 : vector<8x8xf32>
    %cst_72 = arith.constant dense<0.000000e+00> : vector<8xf32>
    %143 = vector.multi_reduction <add>, %142, %cst_72 [1] : vector<8x8xf32> to vector<8xf32>
    %144 = vector.shape_cast %143 : vector<8xf32> to vector<8x1xf32>
    %145 = vector.extract_strided_slice %117 {offsets = [3, 0], sizes = [1, 8], strides = [1, 1]} : vector<6x8xf32> to vector<1x8xf32>
    %146 = vector.broadcast %144 : vector<8x1xf32> to vector<8x8xf32>
    %147 = vector.broadcast %145 : vector<1x8xf32> to vector<8x8xf32>
    %148 = arith.mulf %146, %147 : vector<8x8xf32>
    %149 = arith.addf %141, %148 : vector<8x8xf32>
    %150 = arith.mulf %114, %62 : vector<8x8xf32>
    %cst_73 = arith.constant dense<0.000000e+00> : vector<8xf32>
    %151 = vector.multi_reduction <add>, %150, %cst_73 [1] : vector<8x8xf32> to vector<8xf32>
    %152 = vector.shape_cast %151 : vector<8xf32> to vector<8x1xf32>
    %153 = vector.extract_strided_slice %117 {offsets = [4, 0], sizes = [1, 8], strides = [1, 1]} : vector<6x8xf32> to vector<1x8xf32>
    %154 = vector.broadcast %152 : vector<8x1xf32> to vector<8x8xf32>
    %155 = vector.broadcast %153 : vector<1x8xf32> to vector<8x8xf32>
    %156 = arith.mulf %154, %155 : vector<8x8xf32>
    %157 = arith.addf %149, %156 : vector<8x8xf32>
    %158 = arith.mulf %114, %64 : vector<8x8xf32>
    %cst_74 = arith.constant dense<0.000000e+00> : vector<8xf32>
    %159 = vector.multi_reduction <add>, %158, %cst_74 [1] : vector<8x8xf32> to vector<8xf32>
    %160 = vector.shape_cast %159 : vector<8xf32> to vector<8x1xf32>
    %161 = vector.extract_strided_slice %117 {offsets = [5, 0], sizes = [1, 8], strides = [1, 1]} : vector<6x8xf32> to vector<1x8xf32>
    %162 = vector.broadcast %160 : vector<8x1xf32> to vector<8x8xf32>
    %163 = vector.broadcast %161 : vector<1x8xf32> to vector<8x8xf32>
    %164 = arith.mulf %162, %163 : vector<8x8xf32>
    %165 = arith.addf %157, %164 : vector<8x8xf32>
    %166 = vector.extract_strided_slice %67 {offsets = [0, 28], sizes = [8, 8], strides = [1, 1]} : vector<8x112xf32> to vector<8x8xf32>
    %167 = vector.extract_strided_slice %67 {offsets = [0, 36], sizes = [8, 8], strides = [1, 1]} : vector<8x112xf32> to vector<8x8xf32>
    %168 = vector.extract_strided_slice %67 {offsets = [0, 44], sizes = [8, 8], strides = [1, 1]} : vector<8x112xf32> to vector<8x8xf32>
    %169 = vector.extract_strided_slice %67 {offsets = [0, 52], sizes = [8, 4], strides = [1, 1]} : vector<8x112xf32> to vector<8x4xf32>
    %c0_75 = arith.constant 0 : index
    %c1_76 = arith.constant 1 : index
    %c0_77 = arith.constant 0 : index
    %c0_78 = arith.constant 0 : index
    %170 = vector.load %arg14[%c0_75, %c1_76, %c0_77, %c0_78] : memref<2x4x4x6xf32, #tpu.memory_space<vmem>>, vector<1x1x4x6xf32>
    %171 = vector.shape_cast %170 : vector<1x1x4x6xf32> to vector<4x6xf32>
    %cst_79 = arith.constant dense<0.000000e+00> : vector<8x6xf32>
    %172 = tpu.matmul %169, %171, %cst_79 {dimension_numbers = #tpu.dot_dimension_numbers<[1], [0], [0], [1], [0, 0, 1, 1], [], []>} : vector<8x4xf32>, vector<4x6xf32>, vector<8x6xf32> -> vector<8x6xf32>
    %173 = vector.extract_strided_slice %172 {offsets = [0, 0], sizes = [8, 1], strides = [1, 1]} : vector<8x6xf32> to vector<8x1xf32>
    %174 = vector.broadcast %173 : vector<8x1xf32> to vector<8x8xf32>
    %175 = arith.mulf %174, %54 : vector<8x8xf32>
    %176 = vector.extract_strided_slice %172 {offsets = [0, 1], sizes = [8, 1], strides = [1, 1]} : vector<8x6xf32> to vector<8x1xf32>
    %177 = vector.broadcast %176 : vector<8x1xf32> to vector<8x8xf32>
    %178 = arith.mulf %177, %56 : vector<8x8xf32>
    %179 = arith.addf %175, %178 : vector<8x8xf32>
    %180 = vector.extract_strided_slice %172 {offsets = [0, 2], sizes = [8, 1], strides = [1, 1]} : vector<8x6xf32> to vector<8x1xf32>
    %181 = vector.broadcast %180 : vector<8x1xf32> to vector<8x8xf32>
    %182 = arith.mulf %181, %58 : vector<8x8xf32>
    %183 = arith.addf %179, %182 : vector<8x8xf32>
    %184 = vector.extract_strided_slice %172 {offsets = [0, 3], sizes = [8, 1], strides = [1, 1]} : vector<8x6xf32> to vector<8x1xf32>
    %185 = vector.broadcast %184 : vector<8x1xf32> to vector<8x8xf32>
    %186 = arith.mulf %185, %60 : vector<8x8xf32>
    %187 = arith.addf %183, %186 : vector<8x8xf32>
    %188 = vector.extract_strided_slice %172 {offsets = [0, 4], sizes = [8, 1], strides = [1, 1]} : vector<8x6xf32> to vector<8x1xf32>
    %189 = vector.broadcast %188 : vector<8x1xf32> to vector<8x8xf32>
    %190 = arith.mulf %189, %62 : vector<8x8xf32>
    %191 = arith.addf %187, %190 : vector<8x8xf32>
    %192 = vector.extract_strided_slice %172 {offsets = [0, 5], sizes = [8, 1], strides = [1, 1]} : vector<8x6xf32> to vector<8x1xf32>
    %193 = vector.broadcast %192 : vector<8x1xf32> to vector<8x8xf32>
    %194 = arith.mulf %193, %64 : vector<8x8xf32>
    %195 = arith.addf %191, %194 : vector<8x8xf32>
    %cst_80 = arith.constant dense<0.000000e+00> : vector<8x8xf32>
    %196 = tpu.matmul %166, %167, %cst_80 {dimension_numbers = #tpu.dot_dimension_numbers<[1], [1], [0], [0], [0, 0, 1, 0], [], []>} : vector<8x8xf32>, vector<8x8xf32>, vector<8x8xf32> -> vector<8x8xf32>
    %197 = arith.addf %196, %195 : vector<8x8xf32>
    %cst_81 = arith.constant 0.288675129 : f32
    %198 = vector.broadcast %cst_81 : f32 to vector<8x8xf32>
    %199 = arith.mulf %198, %197 : vector<8x8xf32>
    %200 = vector.broadcast %52 : vector<1x8xf32> to vector<8x8xf32>
    %201 = arith.addf %199, %200 : vector<8x8xf32>
    %cst_82 = arith.constant dense<0xFF800000> : vector<8xf32>
    %202 = vector.multi_reduction <maximumf>, %201, %cst_82 [1] : vector<8x8xf32> to vector<8xf32>
    %cst_83 = arith.constant 0xFF800000 : f32
    %203 = vector.broadcast %cst_83 : f32 to vector<8xf32>
    %204 = arith.maximumf %203, %202 : vector<8xf32>
    %205 = vector.shape_cast %204 : vector<8xf32> to vector<8x1xf32>
    %206 = vector.broadcast %205 : vector<8x1xf32> to vector<8x8xf32>
    %207 = arith.subf %201, %206 : vector<8x8xf32>
    %208 = math.exp %207 : vector<8x8xf32>
    %cst_84 = arith.constant dense<0.000000e+00> : vector<8xf32>
    %209 = vector.multi_reduction <add>, %208, %cst_84 [1] : vector<8x8xf32> to vector<8xf32>
    %210 = vector.shape_cast %209 : vector<8xf32> to vector<8x1xf32>
    %211 = vector.broadcast %210 : vector<8x1xf32> to vector<8x8xf32>
    %212 = arith.divf %208, %211 : vector<8x8xf32>
    %cst_85 = arith.constant dense<0.000000e+00> : vector<8x8xf32>
    %213 = tpu.matmul %212, %168, %cst_85 {dimension_numbers = #tpu.dot_dimension_numbers<[1], [0], [0], [1], [0, 0, 1, 1], [], []>} : vector<8x8xf32>, vector<8x8xf32>, vector<8x8xf32> -> vector<8x8xf32>
    %c0_86 = arith.constant 0 : index
    %c1_87 = arith.constant 1 : index
    %c0_88 = arith.constant 0 : index
    %c0_89 = arith.constant 0 : index
    %214 = vector.load %arg15[%c0_86, %c1_87, %c0_88, %c0_89] : memref<2x4x6x8xf32, #tpu.memory_space<vmem>>, vector<1x1x6x8xf32>
    %215 = vector.shape_cast %214 : vector<1x1x6x8xf32> to vector<6x8xf32>
    %216 = arith.mulf %212, %54 : vector<8x8xf32>
    %cst_90 = arith.constant dense<0.000000e+00> : vector<8xf32>
    %217 = vector.multi_reduction <add>, %216, %cst_90 [1] : vector<8x8xf32> to vector<8xf32>
    %218 = vector.shape_cast %217 : vector<8xf32> to vector<8x1xf32>
    %219 = vector.extract_strided_slice %215 {offsets = [0, 0], sizes = [1, 8], strides = [1, 1]} : vector<6x8xf32> to vector<1x8xf32>
    %220 = vector.broadcast %218 : vector<8x1xf32> to vector<8x8xf32>
    %221 = vector.broadcast %219 : vector<1x8xf32> to vector<8x8xf32>
    %222 = arith.mulf %220, %221 : vector<8x8xf32>
    %223 = arith.addf %213, %222 : vector<8x8xf32>
    %224 = arith.mulf %212, %56 : vector<8x8xf32>
    %cst_91 = arith.constant dense<0.000000e+00> : vector<8xf32>
    %225 = vector.multi_reduction <add>, %224, %cst_91 [1] : vector<8x8xf32> to vector<8xf32>
    %226 = vector.shape_cast %225 : vector<8xf32> to vector<8x1xf32>
    %227 = vector.extract_strided_slice %215 {offsets = [1, 0], sizes = [1, 8], strides = [1, 1]} : vector<6x8xf32> to vector<1x8xf32>
    %228 = vector.broadcast %226 : vector<8x1xf32> to vector<8x8xf32>
    %229 = vector.broadcast %227 : vector<1x8xf32> to vector<8x8xf32>
    %230 = arith.mulf %228, %229 : vector<8x8xf32>
    %231 = arith.addf %223, %230 : vector<8x8xf32>
    %232 = arith.mulf %212, %58 : vector<8x8xf32>
    %cst_92 = arith.constant dense<0.000000e+00> : vector<8xf32>
    %233 = vector.multi_reduction <add>, %232, %cst_92 [1] : vector<8x8xf32> to vector<8xf32>
    %234 = vector.shape_cast %233 : vector<8xf32> to vector<8x1xf32>
    %235 = vector.extract_strided_slice %215 {offsets = [2, 0], sizes = [1, 8], strides = [1, 1]} : vector<6x8xf32> to vector<1x8xf32>
    %236 = vector.broadcast %234 : vector<8x1xf32> to vector<8x8xf32>
    %237 = vector.broadcast %235 : vector<1x8xf32> to vector<8x8xf32>
    %238 = arith.mulf %236, %237 : vector<8x8xf32>
    %239 = arith.addf %231, %238 : vector<8x8xf32>
    %240 = arith.mulf %212, %60 : vector<8x8xf32>
    %cst_93 = arith.constant dense<0.000000e+00> : vector<8xf32>
    %241 = vector.multi_reduction <add>, %240, %cst_93 [1] : vector<8x8xf32> to vector<8xf32>
    %242 = vector.shape_cast %241 : vector<8xf32> to vector<8x1xf32>
    %243 = vector.extract_strided_slice %215 {offsets = [3, 0], sizes = [1, 8], strides = [1, 1]} : vector<6x8xf32> to vector<1x8xf32>
    %244 = vector.broadcast %242 : vector<8x1xf32> to vector<8x8xf32>
    %245 = vector.broadcast %243 : vector<1x8xf32> to vector<8x8xf32>
    %246 = arith.mulf %244, %245 : vector<8x8xf32>
    %247 = arith.addf %239, %246 : vector<8x8xf32>
    %248 = arith.mulf %212, %62 : vector<8x8xf32>
    %cst_94 = arith.constant dense<0.000000e+00> : vector<8xf32>
    %249 = vector.multi_reduction <add>, %248, %cst_94 [1] : vector<8x8xf32> to vector<8xf32>
    %250 = vector.shape_cast %249 : vector<8xf32> to vector<8x1xf32>
    %251 = vector.extract_strided_slice %215 {offsets = [4, 0], sizes = [1, 8], strides = [1, 1]} : vector<6x8xf32> to vector<1x8xf32>
    %252 = vector.broadcast %250 : vector<8x1xf32> to vector<8x8xf32>
    %253 = vector.broadcast %251 : vector<1x8xf32> to vector<8x8xf32>
    %254 = arith.mulf %252, %253 : vector<8x8xf32>
    %255 = arith.addf %247, %254 : vector<8x8xf32>
    %256 = arith.mulf %212, %64 : vector<8x8xf32>
    %cst_95 = arith.constant dense<0.000000e+00> : vector<8xf32>
    %257 = vector.multi_reduction <add>, %256, %cst_95 [1] : vector<8x8xf32> to vector<8xf32>
    %258 = vector.shape_cast %257 : vector<8xf32> to vector<8x1xf32>
    %259 = vector.extract_strided_slice %215 {offsets = [5, 0], sizes = [1, 8], strides = [1, 1]} : vector<6x8xf32> to vector<1x8xf32>
    %260 = vector.broadcast %258 : vector<8x1xf32> to vector<8x8xf32>
    %261 = vector.broadcast %259 : vector<1x8xf32> to vector<8x8xf32>
    %262 = arith.mulf %260, %261 : vector<8x8xf32>
    %263 = arith.addf %255, %262 : vector<8x8xf32>
    %264 = vector.extract_strided_slice %67 {offsets = [0, 56], sizes = [8, 8], strides = [1, 1]} : vector<8x112xf32> to vector<8x8xf32>
    %265 = vector.extract_strided_slice %67 {offsets = [0, 64], sizes = [8, 8], strides = [1, 1]} : vector<8x112xf32> to vector<8x8xf32>
    %266 = vector.extract_strided_slice %67 {offsets = [0, 72], sizes = [8, 8], strides = [1, 1]} : vector<8x112xf32> to vector<8x8xf32>
    %267 = vector.extract_strided_slice %67 {offsets = [0, 80], sizes = [8, 4], strides = [1, 1]} : vector<8x112xf32> to vector<8x4xf32>
    %c0_96 = arith.constant 0 : index
    %c2_97 = arith.constant 2 : index
    %c0_98 = arith.constant 0 : index
    %c0_99 = arith.constant 0 : index
    %268 = vector.load %arg14[%c0_96, %c2_97, %c0_98, %c0_99] : memref<2x4x4x6xf32, #tpu.memory_space<vmem>>, vector<1x1x4x6xf32>
    %269 = vector.shape_cast %268 : vector<1x1x4x6xf32> to vector<4x6xf32>
    %cst_100 = arith.constant dense<0.000000e+00> : vector<8x6xf32>
    %270 = tpu.matmul %267, %269, %cst_100 {dimension_numbers = #tpu.dot_dimension_numbers<[1], [0], [0], [1], [0, 0, 1, 1], [], []>} : vector<8x4xf32>, vector<4x6xf32>, vector<8x6xf32> -> vector<8x6xf32>
    %271 = vector.extract_strided_slice %270 {offsets = [0, 0], sizes = [8, 1], strides = [1, 1]} : vector<8x6xf32> to vector<8x1xf32>
    %272 = vector.broadcast %271 : vector<8x1xf32> to vector<8x8xf32>
    %273 = arith.mulf %272, %54 : vector<8x8xf32>
    %274 = vector.extract_strided_slice %270 {offsets = [0, 1], sizes = [8, 1], strides = [1, 1]} : vector<8x6xf32> to vector<8x1xf32>
    %275 = vector.broadcast %274 : vector<8x1xf32> to vector<8x8xf32>
    %276 = arith.mulf %275, %56 : vector<8x8xf32>
    %277 = arith.addf %273, %276 : vector<8x8xf32>
    %278 = vector.extract_strided_slice %270 {offsets = [0, 2], sizes = [8, 1], strides = [1, 1]} : vector<8x6xf32> to vector<8x1xf32>
    %279 = vector.broadcast %278 : vector<8x1xf32> to vector<8x8xf32>
    %280 = arith.mulf %279, %58 : vector<8x8xf32>
    %281 = arith.addf %277, %280 : vector<8x8xf32>
    %282 = vector.extract_strided_slice %270 {offsets = [0, 3], sizes = [8, 1], strides = [1, 1]} : vector<8x6xf32> to vector<8x1xf32>
    %283 = vector.broadcast %282 : vector<8x1xf32> to vector<8x8xf32>
    %284 = arith.mulf %283, %60 : vector<8x8xf32>
    %285 = arith.addf %281, %284 : vector<8x8xf32>
    %286 = vector.extract_strided_slice %270 {offsets = [0, 4], sizes = [8, 1], strides = [1, 1]} : vector<8x6xf32> to vector<8x1xf32>
    %287 = vector.broadcast %286 : vector<8x1xf32> to vector<8x8xf32>
    %288 = arith.mulf %287, %62 : vector<8x8xf32>
    %289 = arith.addf %285, %288 : vector<8x8xf32>
    %290 = vector.extract_strided_slice %270 {offsets = [0, 5], sizes = [8, 1], strides = [1, 1]} : vector<8x6xf32> to vector<8x1xf32>
    %291 = vector.broadcast %290 : vector<8x1xf32> to vector<8x8xf32>
    %292 = arith.mulf %291, %64 : vector<8x8xf32>
    %293 = arith.addf %289, %292 : vector<8x8xf32>
    %cst_101 = arith.constant dense<0.000000e+00> : vector<8x8xf32>
    %294 = tpu.matmul %264, %265, %cst_101 {dimension_numbers = #tpu.dot_dimension_numbers<[1], [1], [0], [0], [0, 0, 1, 0], [], []>} : vector<8x8xf32>, vector<8x8xf32>, vector<8x8xf32> -> vector<8x8xf32>
    %295 = arith.addf %294, %293 : vector<8x8xf32>
    %cst_102 = arith.constant 0.288675129 : f32
    %296 = vector.broadcast %cst_102 : f32 to vector<8x8xf32>
    %297 = arith.mulf %296, %295 : vector<8x8xf32>
    %298 = vector.broadcast %52 : vector<1x8xf32> to vector<8x8xf32>
    %299 = arith.addf %297, %298 : vector<8x8xf32>
    %cst_103 = arith.constant dense<0xFF800000> : vector<8xf32>
    %300 = vector.multi_reduction <maximumf>, %299, %cst_103 [1] : vector<8x8xf32> to vector<8xf32>
    %cst_104 = arith.constant 0xFF800000 : f32
    %301 = vector.broadcast %cst_104 : f32 to vector<8xf32>
    %302 = arith.maximumf %301, %300 : vector<8xf32>
    %303 = vector.shape_cast %302 : vector<8xf32> to vector<8x1xf32>
    %304 = vector.broadcast %303 : vector<8x1xf32> to vector<8x8xf32>
    %305 = arith.subf %299, %304 : vector<8x8xf32>
    %306 = math.exp %305 : vector<8x8xf32>
    %cst_105 = arith.constant dense<0.000000e+00> : vector<8xf32>
    %307 = vector.multi_reduction <add>, %306, %cst_105 [1] : vector<8x8xf32> to vector<8xf32>
    %308 = vector.shape_cast %307 : vector<8xf32> to vector<8x1xf32>
    %309 = vector.broadcast %308 : vector<8x1xf32> to vector<8x8xf32>
    %310 = arith.divf %306, %309 : vector<8x8xf32>
    %cst_106 = arith.constant dense<0.000000e+00> : vector<8x8xf32>
    %311 = tpu.matmul %310, %266, %cst_106 {dimension_numbers = #tpu.dot_dimension_numbers<[1], [0], [0], [1], [0, 0, 1, 1], [], []>} : vector<8x8xf32>, vector<8x8xf32>, vector<8x8xf32> -> vector<8x8xf32>
    %c0_107 = arith.constant 0 : index
    %c2_108 = arith.constant 2 : index
    %c0_109 = arith.constant 0 : index
    %c0_110 = arith.constant 0 : index
    %312 = vector.load %arg15[%c0_107, %c2_108, %c0_109, %c0_110] : memref<2x4x6x8xf32, #tpu.memory_space<vmem>>, vector<1x1x6x8xf32>
    %313 = vector.shape_cast %312 : vector<1x1x6x8xf32> to vector<6x8xf32>
    %314 = arith.mulf %310, %54 : vector<8x8xf32>
    %cst_111 = arith.constant dense<0.000000e+00> : vector<8xf32>
    %315 = vector.multi_reduction <add>, %314, %cst_111 [1] : vector<8x8xf32> to vector<8xf32>
    %316 = vector.shape_cast %315 : vector<8xf32> to vector<8x1xf32>
    %317 = vector.extract_strided_slice %313 {offsets = [0, 0], sizes = [1, 8], strides = [1, 1]} : vector<6x8xf32> to vector<1x8xf32>
    %318 = vector.broadcast %316 : vector<8x1xf32> to vector<8x8xf32>
    %319 = vector.broadcast %317 : vector<1x8xf32> to vector<8x8xf32>
    %320 = arith.mulf %318, %319 : vector<8x8xf32>
    %321 = arith.addf %311, %320 : vector<8x8xf32>
    %322 = arith.mulf %310, %56 : vector<8x8xf32>
    %cst_112 = arith.constant dense<0.000000e+00> : vector<8xf32>
    %323 = vector.multi_reduction <add>, %322, %cst_112 [1] : vector<8x8xf32> to vector<8xf32>
    %324 = vector.shape_cast %323 : vector<8xf32> to vector<8x1xf32>
    %325 = vector.extract_strided_slice %313 {offsets = [1, 0], sizes = [1, 8], strides = [1, 1]} : vector<6x8xf32> to vector<1x8xf32>
    %326 = vector.broadcast %324 : vector<8x1xf32> to vector<8x8xf32>
    %327 = vector.broadcast %325 : vector<1x8xf32> to vector<8x8xf32>
    %328 = arith.mulf %326, %327 : vector<8x8xf32>
    %329 = arith.addf %321, %328 : vector<8x8xf32>
    %330 = arith.mulf %310, %58 : vector<8x8xf32>
    %cst_113 = arith.constant dense<0.000000e+00> : vector<8xf32>
    %331 = vector.multi_reduction <add>, %330, %cst_113 [1] : vector<8x8xf32> to vector<8xf32>
    %332 = vector.shape_cast %331 : vector<8xf32> to vector<8x1xf32>
    %333 = vector.extract_strided_slice %313 {offsets = [2, 0], sizes = [1, 8], strides = [1, 1]} : vector<6x8xf32> to vector<1x8xf32>
    %334 = vector.broadcast %332 : vector<8x1xf32> to vector<8x8xf32>
    %335 = vector.broadcast %333 : vector<1x8xf32> to vector<8x8xf32>
    %336 = arith.mulf %334, %335 : vector<8x8xf32>
    %337 = arith.addf %329, %336 : vector<8x8xf32>
    %338 = arith.mulf %310, %60 : vector<8x8xf32>
    %cst_114 = arith.constant dense<0.000000e+00> : vector<8xf32>
    %339 = vector.multi_reduction <add>, %338, %cst_114 [1] : vector<8x8xf32> to vector<8xf32>
    %340 = vector.shape_cast %339 : vector<8xf32> to vector<8x1xf32>
    %341 = vector.extract_strided_slice %313 {offsets = [3, 0], sizes = [1, 8], strides = [1, 1]} : vector<6x8xf32> to vector<1x8xf32>
    %342 = vector.broadcast %340 : vector<8x1xf32> to vector<8x8xf32>
    %343 = vector.broadcast %341 : vector<1x8xf32> to vector<8x8xf32>
    %344 = arith.mulf %342, %343 : vector<8x8xf32>
    %345 = arith.addf %337, %344 : vector<8x8xf32>
    %346 = arith.mulf %310, %62 : vector<8x8xf32>
    %cst_115 = arith.constant dense<0.000000e+00> : vector<8xf32>
    %347 = vector.multi_reduction <add>, %346, %cst_115 [1] : vector<8x8xf32> to vector<8xf32>
    %348 = vector.shape_cast %347 : vector<8xf32> to vector<8x1xf32>
    %349 = vector.extract_strided_slice %313 {offsets = [4, 0], sizes = [1, 8], strides = [1, 1]} : vector<6x8xf32> to vector<1x8xf32>
    %350 = vector.broadcast %348 : vector<8x1xf32> to vector<8x8xf32>
    %351 = vector.broadcast %349 : vector<1x8xf32> to vector<8x8xf32>
    %352 = arith.mulf %350, %351 : vector<8x8xf32>
    %353 = arith.addf %345, %352 : vector<8x8xf32>
    %354 = arith.mulf %310, %64 : vector<8x8xf32>
    %cst_116 = arith.constant dense<0.000000e+00> : vector<8xf32>
    %355 = vector.multi_reduction <add>, %354, %cst_116 [1] : vector<8x8xf32> to vector<8xf32>
    %356 = vector.shape_cast %355 : vector<8xf32> to vector<8x1xf32>
    %357 = vector.extract_strided_slice %313 {offsets = [5, 0], sizes = [1, 8], strides = [1, 1]} : vector<6x8xf32> to vector<1x8xf32>
    %358 = vector.broadcast %356 : vector<8x1xf32> to vector<8x8xf32>
    %359 = vector.broadcast %357 : vector<1x8xf32> to vector<8x8xf32>
    %360 = arith.mulf %358, %359 : vector<8x8xf32>
    %361 = arith.addf %353, %360 : vector<8x8xf32>
    %362 = vector.extract_strided_slice %67 {offsets = [0, 84], sizes = [8, 8], strides = [1, 1]} : vector<8x112xf32> to vector<8x8xf32>
    %363 = vector.extract_strided_slice %67 {offsets = [0, 92], sizes = [8, 8], strides = [1, 1]} : vector<8x112xf32> to vector<8x8xf32>
    %364 = vector.extract_strided_slice %67 {offsets = [0, 100], sizes = [8, 8], strides = [1, 1]} : vector<8x112xf32> to vector<8x8xf32>
    %365 = vector.extract_strided_slice %67 {offsets = [0, 108], sizes = [8, 4], strides = [1, 1]} : vector<8x112xf32> to vector<8x4xf32>
    %c0_117 = arith.constant 0 : index
    %c3_118 = arith.constant 3 : index
    %c0_119 = arith.constant 0 : index
    %c0_120 = arith.constant 0 : index
    %366 = vector.load %arg14[%c0_117, %c3_118, %c0_119, %c0_120] : memref<2x4x4x6xf32, #tpu.memory_space<vmem>>, vector<1x1x4x6xf32>
    %367 = vector.shape_cast %366 : vector<1x1x4x6xf32> to vector<4x6xf32>
    %cst_121 = arith.constant dense<0.000000e+00> : vector<8x6xf32>
    %368 = tpu.matmul %365, %367, %cst_121 {dimension_numbers = #tpu.dot_dimension_numbers<[1], [0], [0], [1], [0, 0, 1, 1], [], []>} : vector<8x4xf32>, vector<4x6xf32>, vector<8x6xf32> -> vector<8x6xf32>
    %369 = vector.extract_strided_slice %368 {offsets = [0, 0], sizes = [8, 1], strides = [1, 1]} : vector<8x6xf32> to vector<8x1xf32>
    %370 = vector.broadcast %369 : vector<8x1xf32> to vector<8x8xf32>
    %371 = arith.mulf %370, %54 : vector<8x8xf32>
    %372 = vector.extract_strided_slice %368 {offsets = [0, 1], sizes = [8, 1], strides = [1, 1]} : vector<8x6xf32> to vector<8x1xf32>
    %373 = vector.broadcast %372 : vector<8x1xf32> to vector<8x8xf32>
    %374 = arith.mulf %373, %56 : vector<8x8xf32>
    %375 = arith.addf %371, %374 : vector<8x8xf32>
    %376 = vector.extract_strided_slice %368 {offsets = [0, 2], sizes = [8, 1], strides = [1, 1]} : vector<8x6xf32> to vector<8x1xf32>
    %377 = vector.broadcast %376 : vector<8x1xf32> to vector<8x8xf32>
    %378 = arith.mulf %377, %58 : vector<8x8xf32>
    %379 = arith.addf %375, %378 : vector<8x8xf32>
    %380 = vector.extract_strided_slice %368 {offsets = [0, 3], sizes = [8, 1], strides = [1, 1]} : vector<8x6xf32> to vector<8x1xf32>
    %381 = vector.broadcast %380 : vector<8x1xf32> to vector<8x8xf32>
    %382 = arith.mulf %381, %60 : vector<8x8xf32>
    %383 = arith.addf %379, %382 : vector<8x8xf32>
    %384 = vector.extract_strided_slice %368 {offsets = [0, 4], sizes = [8, 1], strides = [1, 1]} : vector<8x6xf32> to vector<8x1xf32>
    %385 = vector.broadcast %384 : vector<8x1xf32> to vector<8x8xf32>
    %386 = arith.mulf %385, %62 : vector<8x8xf32>
    %387 = arith.addf %383, %386 : vector<8x8xf32>
    %388 = vector.extract_strided_slice %368 {offsets = [0, 5], sizes = [8, 1], strides = [1, 1]} : vector<8x6xf32> to vector<8x1xf32>
    %389 = vector.broadcast %388 : vector<8x1xf32> to vector<8x8xf32>
    %390 = arith.mulf %389, %64 : vector<8x8xf32>
    %391 = arith.addf %387, %390 : vector<8x8xf32>
    %cst_122 = arith.constant dense<0.000000e+00> : vector<8x8xf32>
    %392 = tpu.matmul %362, %363, %cst_122 {dimension_numbers = #tpu.dot_dimension_numbers<[1], [1], [0], [0], [0, 0, 1, 0], [], []>} : vector<8x8xf32>, vector<8x8xf32>, vector<8x8xf32> -> vector<8x8xf32>
    %393 = arith.addf %392, %391 : vector<8x8xf32>
    %cst_123 = arith.constant 0.288675129 : f32
    %394 = vector.broadcast %cst_123 : f32 to vector<8x8xf32>
    %395 = arith.mulf %394, %393 : vector<8x8xf32>
    %396 = vector.broadcast %52 : vector<1x8xf32> to vector<8x8xf32>
    %397 = arith.addf %395, %396 : vector<8x8xf32>
    %cst_124 = arith.constant dense<0xFF800000> : vector<8xf32>
    %398 = vector.multi_reduction <maximumf>, %397, %cst_124 [1] : vector<8x8xf32> to vector<8xf32>
    %cst_125 = arith.constant 0xFF800000 : f32
    %399 = vector.broadcast %cst_125 : f32 to vector<8xf32>
    %400 = arith.maximumf %399, %398 : vector<8xf32>
    %401 = vector.shape_cast %400 : vector<8xf32> to vector<8x1xf32>
    %402 = vector.broadcast %401 : vector<8x1xf32> to vector<8x8xf32>
    %403 = arith.subf %397, %402 : vector<8x8xf32>
    %404 = math.exp %403 : vector<8x8xf32>
    %cst_126 = arith.constant dense<0.000000e+00> : vector<8xf32>
    %405 = vector.multi_reduction <add>, %404, %cst_126 [1] : vector<8x8xf32> to vector<8xf32>
    %406 = vector.shape_cast %405 : vector<8xf32> to vector<8x1xf32>
    %407 = vector.broadcast %406 : vector<8x1xf32> to vector<8x8xf32>
    %408 = arith.divf %404, %407 : vector<8x8xf32>
    %cst_127 = arith.constant dense<0.000000e+00> : vector<8x8xf32>
    %409 = tpu.matmul %408, %364, %cst_127 {dimension_numbers = #tpu.dot_dimension_numbers<[1], [0], [0], [1], [0, 0, 1, 1], [], []>} : vector<8x8xf32>, vector<8x8xf32>, vector<8x8xf32> -> vector<8x8xf32>
    %c0_128 = arith.constant 0 : index
    %c3_129 = arith.constant 3 : index
    %c0_130 = arith.constant 0 : index
    %c0_131 = arith.constant 0 : index
    %410 = vector.load %arg15[%c0_128, %c3_129, %c0_130, %c0_131] : memref<2x4x6x8xf32, #tpu.memory_space<vmem>>, vector<1x1x6x8xf32>
    %411 = vector.shape_cast %410 : vector<1x1x6x8xf32> to vector<6x8xf32>
    %412 = arith.mulf %408, %54 : vector<8x8xf32>
    %cst_132 = arith.constant dense<0.000000e+00> : vector<8xf32>
    %413 = vector.multi_reduction <add>, %412, %cst_132 [1] : vector<8x8xf32> to vector<8xf32>
    %414 = vector.shape_cast %413 : vector<8xf32> to vector<8x1xf32>
    %415 = vector.extract_strided_slice %411 {offsets = [0, 0], sizes = [1, 8], strides = [1, 1]} : vector<6x8xf32> to vector<1x8xf32>
    %416 = vector.broadcast %414 : vector<8x1xf32> to vector<8x8xf32>
    %417 = vector.broadcast %415 : vector<1x8xf32> to vector<8x8xf32>
    %418 = arith.mulf %416, %417 : vector<8x8xf32>
    %419 = arith.addf %409, %418 : vector<8x8xf32>
    %420 = arith.mulf %408, %56 : vector<8x8xf32>
    %cst_133 = arith.constant dense<0.000000e+00> : vector<8xf32>
    %421 = vector.multi_reduction <add>, %420, %cst_133 [1] : vector<8x8xf32> to vector<8xf32>
    %422 = vector.shape_cast %421 : vector<8xf32> to vector<8x1xf32>
    %423 = vector.extract_strided_slice %411 {offsets = [1, 0], sizes = [1, 8], strides = [1, 1]} : vector<6x8xf32> to vector<1x8xf32>
    %424 = vector.broadcast %422 : vector<8x1xf32> to vector<8x8xf32>
    %425 = vector.broadcast %423 : vector<1x8xf32> to vector<8x8xf32>
    %426 = arith.mulf %424, %425 : vector<8x8xf32>
    %427 = arith.addf %419, %426 : vector<8x8xf32>
    %428 = arith.mulf %408, %58 : vector<8x8xf32>
    %cst_134 = arith.constant dense<0.000000e+00> : vector<8xf32>
    %429 = vector.multi_reduction <add>, %428, %cst_134 [1] : vector<8x8xf32> to vector<8xf32>
    %430 = vector.shape_cast %429 : vector<8xf32> to vector<8x1xf32>
    %431 = vector.extract_strided_slice %411 {offsets = [2, 0], sizes = [1, 8], strides = [1, 1]} : vector<6x8xf32> to vector<1x8xf32>
    %432 = vector.broadcast %430 : vector<8x1xf32> to vector<8x8xf32>
    %433 = vector.broadcast %431 : vector<1x8xf32> to vector<8x8xf32>
    %434 = arith.mulf %432, %433 : vector<8x8xf32>
    %435 = arith.addf %427, %434 : vector<8x8xf32>
    %436 = arith.mulf %408, %60 : vector<8x8xf32>
    %cst_135 = arith.constant dense<0.000000e+00> : vector<8xf32>
    %437 = vector.multi_reduction <add>, %436, %cst_135 [1] : vector<8x8xf32> to vector<8xf32>
    %438 = vector.shape_cast %437 : vector<8xf32> to vector<8x1xf32>
    %439 = vector.extract_strided_slice %411 {offsets = [3, 0], sizes = [1, 8], strides = [1, 1]} : vector<6x8xf32> to vector<1x8xf32>
    %440 = vector.broadcast %438 : vector<8x1xf32> to vector<8x8xf32>
    %441 = vector.broadcast %439 : vector<1x8xf32> to vector<8x8xf32>
    %442 = arith.mulf %440, %441 : vector<8x8xf32>
    %443 = arith.addf %435, %442 : vector<8x8xf32>
    %444 = arith.mulf %408, %62 : vector<8x8xf32>
    %cst_136 = arith.constant dense<0.000000e+00> : vector<8xf32>
    %445 = vector.multi_reduction <add>, %444, %cst_136 [1] : vector<8x8xf32> to vector<8xf32>
    %446 = vector.shape_cast %445 : vector<8xf32> to vector<8x1xf32>
    %447 = vector.extract_strided_slice %411 {offsets = [4, 0], sizes = [1, 8], strides = [1, 1]} : vector<6x8xf32> to vector<1x8xf32>
    %448 = vector.broadcast %446 : vector<8x1xf32> to vector<8x8xf32>
    %449 = vector.broadcast %447 : vector<1x8xf32> to vector<8x8xf32>
    %450 = arith.mulf %448, %449 : vector<8x8xf32>
    %451 = arith.addf %443, %450 : vector<8x8xf32>
    %452 = arith.mulf %408, %64 : vector<8x8xf32>
    %cst_137 = arith.constant dense<0.000000e+00> : vector<8xf32>
    %453 = vector.multi_reduction <add>, %452, %cst_137 [1] : vector<8x8xf32> to vector<8xf32>
    %454 = vector.shape_cast %453 : vector<8xf32> to vector<8x1xf32>
    %455 = vector.extract_strided_slice %411 {offsets = [5, 0], sizes = [1, 8], strides = [1, 1]} : vector<6x8xf32> to vector<1x8xf32>
    %456 = vector.broadcast %454 : vector<8x1xf32> to vector<8x8xf32>
    %457 = vector.broadcast %455 : vector<1x8xf32> to vector<8x8xf32>
    %458 = arith.mulf %456, %457 : vector<8x8xf32>
    %459 = arith.addf %451, %458 : vector<8x8xf32>
    %460 = tpu.concatenate %165, %263, %361, %459 in 1 : vector<8x8xf32>, vector<8x8xf32>, vector<8x8xf32>, vector<8x8xf32> -> vector<8x32xf32>
    %c0_138 = arith.constant 0 : index
    %c0_139 = arith.constant 0 : index
    %c0_140 = arith.constant 0 : index
    %461 = vector.load %arg16[%c0_138, %c0_139, %c0_140] : memref<2x32x32xf32, #tpu.memory_space<vmem>>, vector<1x32x32xf32>
    %462 = vector.shape_cast %461 : vector<1x32x32xf32> to vector<32x32xf32>
    %cst_141 = arith.constant dense<0.000000e+00> : vector<8x32xf32>
    %463 = tpu.matmul %460, %462, %cst_141 {dimension_numbers = #tpu.dot_dimension_numbers<[1], [0], [0], [1], [0, 0, 1, 1], [], []>} : vector<8x32xf32>, vector<32x32xf32>, vector<8x32xf32> -> vector<8x32xf32>
    %c0_142 = arith.constant 0 : index
    %c0_143 = arith.constant 0 : index
    %c0_144 = arith.constant 0 : index
    %464 = vector.load %arg17[%c0_142, %c0_143, %c0_144] : memref<2x1x32xf32, #tpu.memory_space<vmem>>, vector<1x1x32xf32>
    %465 = vector.shape_cast %464 : vector<1x1x32xf32> to vector<1x32xf32>
    %466 = vector.broadcast %465 : vector<1x32xf32> to vector<8x32xf32>
    %467 = arith.addf %463, %466 : vector<8x32xf32>
    %468 = arith.addf %467, %46 : vector<8x32xf32>
    %c0_145 = arith.constant 0 : index
    %c0_146 = arith.constant 0 : index
    %c0_147 = arith.constant 0 : index
    %469 = vector.load %arg18[%c0_145, %c0_146, %c0_147] : memref<2x1x32xf32, #tpu.memory_space<vmem>>, vector<1x1x32xf32>
    %470 = vector.shape_cast %469 : vector<1x1x32xf32> to vector<1x32xf32>
    %c0_148 = arith.constant 0 : index
    %c0_149 = arith.constant 0 : index
    %c0_150 = arith.constant 0 : index
    %471 = vector.load %arg19[%c0_148, %c0_149, %c0_150] : memref<2x1x32xf32, #tpu.memory_space<vmem>>, vector<1x1x32xf32>
    %472 = vector.shape_cast %471 : vector<1x1x32xf32> to vector<1x32xf32>
    %cst_151 = arith.constant dense<0.000000e+00> : vector<8xf32>
    %473 = vector.multi_reduction <add>, %468, %cst_151 [1] : vector<8x32xf32> to vector<8xf32>
    %474 = vector.shape_cast %473 : vector<8xf32> to vector<8x1xf32>
    %cst_152 = arith.constant 3.200000e+01 : f32
    %475 = vector.broadcast %cst_152 : f32 to vector<8x1xf32>
    %476 = arith.divf %474, %475 : vector<8x1xf32>
    %477 = vector.broadcast %476 : vector<8x1xf32> to vector<8x32xf32>
    %478 = arith.subf %468, %477 : vector<8x32xf32>
    %479 = arith.mulf %478, %478 : vector<8x32xf32>
    %cst_153 = arith.constant dense<0.000000e+00> : vector<8xf32>
    %480 = vector.multi_reduction <add>, %479, %cst_153 [1] : vector<8x32xf32> to vector<8xf32>
    %481 = vector.shape_cast %480 : vector<8xf32> to vector<8x1xf32>
    %cst_154 = arith.constant 3.200000e+01 : f32
    %482 = vector.broadcast %cst_154 : f32 to vector<8x1xf32>
    %483 = arith.divf %481, %482 : vector<8x1xf32>
    %484 = vector.broadcast %476 : vector<8x1xf32> to vector<8x32xf32>
    %485 = arith.subf %468, %484 : vector<8x32xf32>
    %cst_155 = arith.constant 9.99999996E-13 : f32
    %486 = vector.broadcast %cst_155 : f32 to vector<8x1xf32>
    %487 = arith.addf %483, %486 : vector<8x1xf32>
    %488 = math.sqrt %487 : vector<8x1xf32>
    %489 = vector.broadcast %488 : vector<8x1xf32> to vector<8x32xf32>
    %490 = arith.divf %485, %489 : vector<8x32xf32>
    %491 = vector.broadcast %470 : vector<1x32xf32> to vector<8x32xf32>
    %492 = arith.mulf %491, %490 : vector<8x32xf32>
    %493 = vector.broadcast %472 : vector<1x32xf32> to vector<8x32xf32>
    %494 = arith.addf %492, %493 : vector<8x32xf32>
    %c0_156 = arith.constant 0 : index
    %c0_157 = arith.constant 0 : index
    %c0_158 = arith.constant 0 : index
    %495 = vector.load %arg20[%c0_156, %c0_157, %c0_158] : memref<2x32x64xf32, #tpu.memory_space<vmem>>, vector<1x32x64xf32>
    %496 = vector.shape_cast %495 : vector<1x32x64xf32> to vector<32x64xf32>
    %cst_159 = arith.constant dense<0.000000e+00> : vector<8x64xf32>
    %497 = tpu.matmul %494, %496, %cst_159 {dimension_numbers = #tpu.dot_dimension_numbers<[1], [0], [0], [1], [0, 0, 1, 1], [], []>} : vector<8x32xf32>, vector<32x64xf32>, vector<8x64xf32> -> vector<8x64xf32>
    %c0_160 = arith.constant 0 : index
    %c0_161 = arith.constant 0 : index
    %c0_162 = arith.constant 0 : index
    %498 = vector.load %arg21[%c0_160, %c0_161, %c0_162] : memref<2x1x64xf32, #tpu.memory_space<vmem>>, vector<1x1x64xf32>
    %499 = vector.shape_cast %498 : vector<1x1x64xf32> to vector<1x64xf32>
    %500 = vector.broadcast %499 : vector<1x64xf32> to vector<8x64xf32>
    %501 = arith.addf %497, %500 : vector<8x64xf32>
    %cst_163 = arith.constant 0.000000e+00 : f32
    %502 = vector.broadcast %cst_163 : f32 to vector<8x64xf32>
    %503 = arith.maximumf %501, %502 : vector<8x64xf32>
    %c0_164 = arith.constant 0 : index
    %c0_165 = arith.constant 0 : index
    %c0_166 = arith.constant 0 : index
    %504 = vector.load %arg22[%c0_164, %c0_165, %c0_166] : memref<2x64x32xf32, #tpu.memory_space<vmem>>, vector<1x64x32xf32>
    %505 = vector.shape_cast %504 : vector<1x64x32xf32> to vector<64x32xf32>
    %cst_167 = arith.constant dense<0.000000e+00> : vector<8x32xf32>
    %506 = tpu.matmul %503, %505, %cst_167 {dimension_numbers = #tpu.dot_dimension_numbers<[1], [0], [0], [1], [0, 0, 1, 1], [], []>} : vector<8x64xf32>, vector<64x32xf32>, vector<8x32xf32> -> vector<8x32xf32>
    %c0_168 = arith.constant 0 : index
    %c0_169 = arith.constant 0 : index
    %c0_170 = arith.constant 0 : index
    %507 = vector.load %arg23[%c0_168, %c0_169, %c0_170] : memref<2x1x32xf32, #tpu.memory_space<vmem>>, vector<1x1x32xf32>
    %508 = vector.shape_cast %507 : vector<1x1x32xf32> to vector<1x32xf32>
    %509 = vector.broadcast %508 : vector<1x32xf32> to vector<8x32xf32>
    %510 = arith.addf %506, %509 : vector<8x32xf32>
    %511 = arith.addf %510, %494 : vector<8x32xf32>
    %c0_171 = arith.constant 0 : index
    %c0_172 = arith.constant 0 : index
    %c0_173 = arith.constant 0 : index
    %512 = vector.load %arg24[%c0_171, %c0_172, %c0_173] : memref<2x1x32xf32, #tpu.memory_space<vmem>>, vector<1x1x32xf32>
    %513 = vector.shape_cast %512 : vector<1x1x32xf32> to vector<1x32xf32>
    %c0_174 = arith.constant 0 : index
    %c0_175 = arith.constant 0 : index
    %c0_176 = arith.constant 0 : index
    %514 = vector.load %arg25[%c0_174, %c0_175, %c0_176] : memref<2x1x32xf32, #tpu.memory_space<vmem>>, vector<1x1x32xf32>
    %515 = vector.shape_cast %514 : vector<1x1x32xf32> to vector<1x32xf32>
    %cst_177 = arith.constant dense<0.000000e+00> : vector<8xf32>
    %516 = vector.multi_reduction <add>, %511, %cst_177 [1] : vector<8x32xf32> to vector<8xf32>
    %517 = vector.shape_cast %516 : vector<8xf32> to vector<8x1xf32>
    %cst_178 = arith.constant 3.200000e+01 : f32
    %518 = vector.broadcast %cst_178 : f32 to vector<8x1xf32>
    %519 = arith.divf %517, %518 : vector<8x1xf32>
    %520 = vector.broadcast %519 : vector<8x1xf32> to vector<8x32xf32>
    %521 = arith.subf %511, %520 : vector<8x32xf32>
    %522 = arith.mulf %521, %521 : vector<8x32xf32>
    %cst_179 = arith.constant dense<0.000000e+00> : vector<8xf32>
    %523 = vector.multi_reduction <add>, %522, %cst_179 [1] : vector<8x32xf32> to vector<8xf32>
    %524 = vector.shape_cast %523 : vector<8xf32> to vector<8x1xf32>
    %cst_180 = arith.constant 3.200000e+01 : f32
    %525 = vector.broadcast %cst_180 : f32 to vector<8x1xf32>
    %526 = arith.divf %524, %525 : vector<8x1xf32>
    %527 = vector.broadcast %519 : vector<8x1xf32> to vector<8x32xf32>
    %528 = arith.subf %511, %527 : vector<8x32xf32>
    %cst_181 = arith.constant 9.99999996E-13 : f32
    %529 = vector.broadcast %cst_181 : f32 to vector<8x1xf32>
    %530 = arith.addf %526, %529 : vector<8x1xf32>
    %531 = math.sqrt %530 : vector<8x1xf32>
    %532 = vector.broadcast %531 : vector<8x1xf32> to vector<8x32xf32>
    %533 = arith.divf %528, %532 : vector<8x32xf32>
    %534 = vector.broadcast %513 : vector<1x32xf32> to vector<8x32xf32>
    %535 = arith.mulf %534, %533 : vector<8x32xf32>
    %536 = vector.broadcast %515 : vector<1x32xf32> to vector<8x32xf32>
    %537 = arith.addf %535, %536 : vector<8x32xf32>
    %c1_182 = arith.constant 1 : index
    %c0_183 = arith.constant 0 : index
    %c0_184 = arith.constant 0 : index
    %538 = vector.load %arg13[%c1_182, %c0_183, %c0_184] : memref<2x32x112xf32, #tpu.memory_space<vmem>>, vector<1x32x112xf32>
    %539 = vector.shape_cast %538 : vector<1x32x112xf32> to vector<32x112xf32>
    %cst_185 = arith.constant dense<0.000000e+00> : vector<8x112xf32>
    %540 = tpu.matmul %537, %539, %cst_185 {dimension_numbers = #tpu.dot_dimension_numbers<[1], [0], [0], [1], [0, 0, 1, 1], [], []>} : vector<8x32xf32>, vector<32x112xf32>, vector<8x112xf32> -> vector<8x112xf32>
    %541 = vector.extract_strided_slice %540 {offsets = [0, 0], sizes = [8, 8], strides = [1, 1]} : vector<8x112xf32> to vector<8x8xf32>
    %542 = vector.extract_strided_slice %540 {offsets = [0, 8], sizes = [8, 8], strides = [1, 1]} : vector<8x112xf32> to vector<8x8xf32>
    %543 = vector.extract_strided_slice %540 {offsets = [0, 16], sizes = [8, 8], strides = [1, 1]} : vector<8x112xf32> to vector<8x8xf32>
    %544 = vector.extract_strided_slice %540 {offsets = [0, 24], sizes = [8, 4], strides = [1, 1]} : vector<8x112xf32> to vector<8x4xf32>
    %c1_186 = arith.constant 1 : index
    %c0_187 = arith.constant 0 : index
    %c0_188 = arith.constant 0 : index
    %c0_189 = arith.constant 0 : index
    %545 = vector.load %arg14[%c1_186, %c0_187, %c0_188, %c0_189] : memref<2x4x4x6xf32, #tpu.memory_space<vmem>>, vector<1x1x4x6xf32>
    %546 = vector.shape_cast %545 : vector<1x1x4x6xf32> to vector<4x6xf32>
    %cst_190 = arith.constant dense<0.000000e+00> : vector<8x6xf32>
    %547 = tpu.matmul %544, %546, %cst_190 {dimension_numbers = #tpu.dot_dimension_numbers<[1], [0], [0], [1], [0, 0, 1, 1], [], []>} : vector<8x4xf32>, vector<4x6xf32>, vector<8x6xf32> -> vector<8x6xf32>
    %548 = vector.extract_strided_slice %547 {offsets = [0, 0], sizes = [8, 1], strides = [1, 1]} : vector<8x6xf32> to vector<8x1xf32>
    %549 = vector.broadcast %548 : vector<8x1xf32> to vector<8x8xf32>
    %550 = arith.mulf %549, %54 : vector<8x8xf32>
    %551 = vector.extract_strided_slice %547 {offsets = [0, 1], sizes = [8, 1], strides = [1, 1]} : vector<8x6xf32> to vector<8x1xf32>
    %552 = vector.broadcast %551 : vector<8x1xf32> to vector<8x8xf32>
    %553 = arith.mulf %552, %56 : vector<8x8xf32>
    %554 = arith.addf %550, %553 : vector<8x8xf32>
    %555 = vector.extract_strided_slice %547 {offsets = [0, 2], sizes = [8, 1], strides = [1, 1]} : vector<8x6xf32> to vector<8x1xf32>
    %556 = vector.broadcast %555 : vector<8x1xf32> to vector<8x8xf32>
    %557 = arith.mulf %556, %58 : vector<8x8xf32>
    %558 = arith.addf %554, %557 : vector<8x8xf32>
    %559 = vector.extract_strided_slice %547 {offsets = [0, 3], sizes = [8, 1], strides = [1, 1]} : vector<8x6xf32> to vector<8x1xf32>
    %560 = vector.broadcast %559 : vector<8x1xf32> to vector<8x8xf32>
    %561 = arith.mulf %560, %60 : vector<8x8xf32>
    %562 = arith.addf %558, %561 : vector<8x8xf32>
    %563 = vector.extract_strided_slice %547 {offsets = [0, 4], sizes = [8, 1], strides = [1, 1]} : vector<8x6xf32> to vector<8x1xf32>
    %564 = vector.broadcast %563 : vector<8x1xf32> to vector<8x8xf32>
    %565 = arith.mulf %564, %62 : vector<8x8xf32>
    %566 = arith.addf %562, %565 : vector<8x8xf32>
    %567 = vector.extract_strided_slice %547 {offsets = [0, 5], sizes = [8, 1], strides = [1, 1]} : vector<8x6xf32> to vector<8x1xf32>
    %568 = vector.broadcast %567 : vector<8x1xf32> to vector<8x8xf32>
    %569 = arith.mulf %568, %64 : vector<8x8xf32>
    %570 = arith.addf %566, %569 : vector<8x8xf32>
    %cst_191 = arith.constant dense<0.000000e+00> : vector<8x8xf32>
    %571 = tpu.matmul %541, %542, %cst_191 {dimension_numbers = #tpu.dot_dimension_numbers<[1], [1], [0], [0], [0, 0, 1, 0], [], []>} : vector<8x8xf32>, vector<8x8xf32>, vector<8x8xf32> -> vector<8x8xf32>
    %572 = arith.addf %571, %570 : vector<8x8xf32>
    %cst_192 = arith.constant 0.288675129 : f32
    %573 = vector.broadcast %cst_192 : f32 to vector<8x8xf32>
    %574 = arith.mulf %573, %572 : vector<8x8xf32>
    %575 = vector.broadcast %52 : vector<1x8xf32> to vector<8x8xf32>
    %576 = arith.addf %574, %575 : vector<8x8xf32>
    %cst_193 = arith.constant dense<0xFF800000> : vector<8xf32>
    %577 = vector.multi_reduction <maximumf>, %576, %cst_193 [1] : vector<8x8xf32> to vector<8xf32>
    %cst_194 = arith.constant 0xFF800000 : f32
    %578 = vector.broadcast %cst_194 : f32 to vector<8xf32>
    %579 = arith.maximumf %578, %577 : vector<8xf32>
    %580 = vector.shape_cast %579 : vector<8xf32> to vector<8x1xf32>
    %581 = vector.broadcast %580 : vector<8x1xf32> to vector<8x8xf32>
    %582 = arith.subf %576, %581 : vector<8x8xf32>
    %583 = math.exp %582 : vector<8x8xf32>
    %cst_195 = arith.constant dense<0.000000e+00> : vector<8xf32>
    %584 = vector.multi_reduction <add>, %583, %cst_195 [1] : vector<8x8xf32> to vector<8xf32>
    %585 = vector.shape_cast %584 : vector<8xf32> to vector<8x1xf32>
    %586 = vector.broadcast %585 : vector<8x1xf32> to vector<8x8xf32>
    %587 = arith.divf %583, %586 : vector<8x8xf32>
    %cst_196 = arith.constant dense<0.000000e+00> : vector<8x8xf32>
    %588 = tpu.matmul %587, %543, %cst_196 {dimension_numbers = #tpu.dot_dimension_numbers<[1], [0], [0], [1], [0, 0, 1, 1], [], []>} : vector<8x8xf32>, vector<8x8xf32>, vector<8x8xf32> -> vector<8x8xf32>
    %c1_197 = arith.constant 1 : index
    %c0_198 = arith.constant 0 : index
    %c0_199 = arith.constant 0 : index
    %c0_200 = arith.constant 0 : index
    %589 = vector.load %arg15[%c1_197, %c0_198, %c0_199, %c0_200] : memref<2x4x6x8xf32, #tpu.memory_space<vmem>>, vector<1x1x6x8xf32>
    %590 = vector.shape_cast %589 : vector<1x1x6x8xf32> to vector<6x8xf32>
    %591 = arith.mulf %587, %54 : vector<8x8xf32>
    %cst_201 = arith.constant dense<0.000000e+00> : vector<8xf32>
    %592 = vector.multi_reduction <add>, %591, %cst_201 [1] : vector<8x8xf32> to vector<8xf32>
    %593 = vector.shape_cast %592 : vector<8xf32> to vector<8x1xf32>
    %594 = vector.extract_strided_slice %590 {offsets = [0, 0], sizes = [1, 8], strides = [1, 1]} : vector<6x8xf32> to vector<1x8xf32>
    %595 = vector.broadcast %593 : vector<8x1xf32> to vector<8x8xf32>
    %596 = vector.broadcast %594 : vector<1x8xf32> to vector<8x8xf32>
    %597 = arith.mulf %595, %596 : vector<8x8xf32>
    %598 = arith.addf %588, %597 : vector<8x8xf32>
    %599 = arith.mulf %587, %56 : vector<8x8xf32>
    %cst_202 = arith.constant dense<0.000000e+00> : vector<8xf32>
    %600 = vector.multi_reduction <add>, %599, %cst_202 [1] : vector<8x8xf32> to vector<8xf32>
    %601 = vector.shape_cast %600 : vector<8xf32> to vector<8x1xf32>
    %602 = vector.extract_strided_slice %590 {offsets = [1, 0], sizes = [1, 8], strides = [1, 1]} : vector<6x8xf32> to vector<1x8xf32>
    %603 = vector.broadcast %601 : vector<8x1xf32> to vector<8x8xf32>
    %604 = vector.broadcast %602 : vector<1x8xf32> to vector<8x8xf32>
    %605 = arith.mulf %603, %604 : vector<8x8xf32>
    %606 = arith.addf %598, %605 : vector<8x8xf32>
    %607 = arith.mulf %587, %58 : vector<8x8xf32>
    %cst_203 = arith.constant dense<0.000000e+00> : vector<8xf32>
    %608 = vector.multi_reduction <add>, %607, %cst_203 [1] : vector<8x8xf32> to vector<8xf32>
    %609 = vector.shape_cast %608 : vector<8xf32> to vector<8x1xf32>
    %610 = vector.extract_strided_slice %590 {offsets = [2, 0], sizes = [1, 8], strides = [1, 1]} : vector<6x8xf32> to vector<1x8xf32>
    %611 = vector.broadcast %609 : vector<8x1xf32> to vector<8x8xf32>
    %612 = vector.broadcast %610 : vector<1x8xf32> to vector<8x8xf32>
    %613 = arith.mulf %611, %612 : vector<8x8xf32>
    %614 = arith.addf %606, %613 : vector<8x8xf32>
    %615 = arith.mulf %587, %60 : vector<8x8xf32>
    %cst_204 = arith.constant dense<0.000000e+00> : vector<8xf32>
    %616 = vector.multi_reduction <add>, %615, %cst_204 [1] : vector<8x8xf32> to vector<8xf32>
    %617 = vector.shape_cast %616 : vector<8xf32> to vector<8x1xf32>
    %618 = vector.extract_strided_slice %590 {offsets = [3, 0], sizes = [1, 8], strides = [1, 1]} : vector<6x8xf32> to vector<1x8xf32>
    %619 = vector.broadcast %617 : vector<8x1xf32> to vector<8x8xf32>
    %620 = vector.broadcast %618 : vector<1x8xf32> to vector<8x8xf32>
    %621 = arith.mulf %619, %620 : vector<8x8xf32>
    %622 = arith.addf %614, %621 : vector<8x8xf32>
    %623 = arith.mulf %587, %62 : vector<8x8xf32>
    %cst_205 = arith.constant dense<0.000000e+00> : vector<8xf32>
    %624 = vector.multi_reduction <add>, %623, %cst_205 [1] : vector<8x8xf32> to vector<8xf32>
    %625 = vector.shape_cast %624 : vector<8xf32> to vector<8x1xf32>
    %626 = vector.extract_strided_slice %590 {offsets = [4, 0], sizes = [1, 8], strides = [1, 1]} : vector<6x8xf32> to vector<1x8xf32>
    %627 = vector.broadcast %625 : vector<8x1xf32> to vector<8x8xf32>
    %628 = vector.broadcast %626 : vector<1x8xf32> to vector<8x8xf32>
    %629 = arith.mulf %627, %628 : vector<8x8xf32>
    %630 = arith.addf %622, %629 : vector<8x8xf32>
    %631 = arith.mulf %587, %64 : vector<8x8xf32>
    %cst_206 = arith.constant dense<0.000000e+00> : vector<8xf32>
    %632 = vector.multi_reduction <add>, %631, %cst_206 [1] : vector<8x8xf32> to vector<8xf32>
    %633 = vector.shape_cast %632 : vector<8xf32> to vector<8x1xf32>
    %634 = vector.extract_strided_slice %590 {offsets = [5, 0], sizes = [1, 8], strides = [1, 1]} : vector<6x8xf32> to vector<1x8xf32>
    %635 = vector.broadcast %633 : vector<8x1xf32> to vector<8x8xf32>
    %636 = vector.broadcast %634 : vector<1x8xf32> to vector<8x8xf32>
    %637 = arith.mulf %635, %636 : vector<8x8xf32>
    %638 = arith.addf %630, %637 : vector<8x8xf32>
    %639 = vector.extract_strided_slice %540 {offsets = [0, 28], sizes = [8, 8], strides = [1, 1]} : vector<8x112xf32> to vector<8x8xf32>
    %640 = vector.extract_strided_slice %540 {offsets = [0, 36], sizes = [8, 8], strides = [1, 1]} : vector<8x112xf32> to vector<8x8xf32>
    %641 = vector.extract_strided_slice %540 {offsets = [0, 44], sizes = [8, 8], strides = [1, 1]} : vector<8x112xf32> to vector<8x8xf32>
    %642 = vector.extract_strided_slice %540 {offsets = [0, 52], sizes = [8, 4], strides = [1, 1]} : vector<8x112xf32> to vector<8x4xf32>
    %c1_207 = arith.constant 1 : index
    %c1_208 = arith.constant 1 : index
    %c0_209 = arith.constant 0 : index
    %c0_210 = arith.constant 0 : index
    %643 = vector.load %arg14[%c1_207, %c1_208, %c0_209, %c0_210] : memref<2x4x4x6xf32, #tpu.memory_space<vmem>>, vector<1x1x4x6xf32>
    %644 = vector.shape_cast %643 : vector<1x1x4x6xf32> to vector<4x6xf32>
    %cst_211 = arith.constant dense<0.000000e+00> : vector<8x6xf32>
    %645 = tpu.matmul %642, %644, %cst_211 {dimension_numbers = #tpu.dot_dimension_numbers<[1], [0], [0], [1], [0, 0, 1, 1], [], []>} : vector<8x4xf32>, vector<4x6xf32>, vector<8x6xf32> -> vector<8x6xf32>
    %646 = vector.extract_strided_slice %645 {offsets = [0, 0], sizes = [8, 1], strides = [1, 1]} : vector<8x6xf32> to vector<8x1xf32>
    %647 = vector.broadcast %646 : vector<8x1xf32> to vector<8x8xf32>
    %648 = arith.mulf %647, %54 : vector<8x8xf32>
    %649 = vector.extract_strided_slice %645 {offsets = [0, 1], sizes = [8, 1], strides = [1, 1]} : vector<8x6xf32> to vector<8x1xf32>
    %650 = vector.broadcast %649 : vector<8x1xf32> to vector<8x8xf32>
    %651 = arith.mulf %650, %56 : vector<8x8xf32>
    %652 = arith.addf %648, %651 : vector<8x8xf32>
    %653 = vector.extract_strided_slice %645 {offsets = [0, 2], sizes = [8, 1], strides = [1, 1]} : vector<8x6xf32> to vector<8x1xf32>
    %654 = vector.broadcast %653 : vector<8x1xf32> to vector<8x8xf32>
    %655 = arith.mulf %654, %58 : vector<8x8xf32>
    %656 = arith.addf %652, %655 : vector<8x8xf32>
    %657 = vector.extract_strided_slice %645 {offsets = [0, 3], sizes = [8, 1], strides = [1, 1]} : vector<8x6xf32> to vector<8x1xf32>
    %658 = vector.broadcast %657 : vector<8x1xf32> to vector<8x8xf32>
    %659 = arith.mulf %658, %60 : vector<8x8xf32>
    %660 = arith.addf %656, %659 : vector<8x8xf32>
    %661 = vector.extract_strided_slice %645 {offsets = [0, 4], sizes = [8, 1], strides = [1, 1]} : vector<8x6xf32> to vector<8x1xf32>
    %662 = vector.broadcast %661 : vector<8x1xf32> to vector<8x8xf32>
    %663 = arith.mulf %662, %62 : vector<8x8xf32>
    %664 = arith.addf %660, %663 : vector<8x8xf32>
    %665 = vector.extract_strided_slice %645 {offsets = [0, 5], sizes = [8, 1], strides = [1, 1]} : vector<8x6xf32> to vector<8x1xf32>
    %666 = vector.broadcast %665 : vector<8x1xf32> to vector<8x8xf32>
    %667 = arith.mulf %666, %64 : vector<8x8xf32>
    %668 = arith.addf %664, %667 : vector<8x8xf32>
    %cst_212 = arith.constant dense<0.000000e+00> : vector<8x8xf32>
    %669 = tpu.matmul %639, %640, %cst_212 {dimension_numbers = #tpu.dot_dimension_numbers<[1], [1], [0], [0], [0, 0, 1, 0], [], []>} : vector<8x8xf32>, vector<8x8xf32>, vector<8x8xf32> -> vector<8x8xf32>
    %670 = arith.addf %669, %668 : vector<8x8xf32>
    %cst_213 = arith.constant 0.288675129 : f32
    %671 = vector.broadcast %cst_213 : f32 to vector<8x8xf32>
    %672 = arith.mulf %671, %670 : vector<8x8xf32>
    %673 = vector.broadcast %52 : vector<1x8xf32> to vector<8x8xf32>
    %674 = arith.addf %672, %673 : vector<8x8xf32>
    %cst_214 = arith.constant dense<0xFF800000> : vector<8xf32>
    %675 = vector.multi_reduction <maximumf>, %674, %cst_214 [1] : vector<8x8xf32> to vector<8xf32>
    %cst_215 = arith.constant 0xFF800000 : f32
    %676 = vector.broadcast %cst_215 : f32 to vector<8xf32>
    %677 = arith.maximumf %676, %675 : vector<8xf32>
    %678 = vector.shape_cast %677 : vector<8xf32> to vector<8x1xf32>
    %679 = vector.broadcast %678 : vector<8x1xf32> to vector<8x8xf32>
    %680 = arith.subf %674, %679 : vector<8x8xf32>
    %681 = math.exp %680 : vector<8x8xf32>
    %cst_216 = arith.constant dense<0.000000e+00> : vector<8xf32>
    %682 = vector.multi_reduction <add>, %681, %cst_216 [1] : vector<8x8xf32> to vector<8xf32>
    %683 = vector.shape_cast %682 : vector<8xf32> to vector<8x1xf32>
    %684 = vector.broadcast %683 : vector<8x1xf32> to vector<8x8xf32>
    %685 = arith.divf %681, %684 : vector<8x8xf32>
    %cst_217 = arith.constant dense<0.000000e+00> : vector<8x8xf32>
    %686 = tpu.matmul %685, %641, %cst_217 {dimension_numbers = #tpu.dot_dimension_numbers<[1], [0], [0], [1], [0, 0, 1, 1], [], []>} : vector<8x8xf32>, vector<8x8xf32>, vector<8x8xf32> -> vector<8x8xf32>
    %c1_218 = arith.constant 1 : index
    %c1_219 = arith.constant 1 : index
    %c0_220 = arith.constant 0 : index
    %c0_221 = arith.constant 0 : index
    %687 = vector.load %arg15[%c1_218, %c1_219, %c0_220, %c0_221] : memref<2x4x6x8xf32, #tpu.memory_space<vmem>>, vector<1x1x6x8xf32>
    %688 = vector.shape_cast %687 : vector<1x1x6x8xf32> to vector<6x8xf32>
    %689 = arith.mulf %685, %54 : vector<8x8xf32>
    %cst_222 = arith.constant dense<0.000000e+00> : vector<8xf32>
    %690 = vector.multi_reduction <add>, %689, %cst_222 [1] : vector<8x8xf32> to vector<8xf32>
    %691 = vector.shape_cast %690 : vector<8xf32> to vector<8x1xf32>
    %692 = vector.extract_strided_slice %688 {offsets = [0, 0], sizes = [1, 8], strides = [1, 1]} : vector<6x8xf32> to vector<1x8xf32>
    %693 = vector.broadcast %691 : vector<8x1xf32> to vector<8x8xf32>
    %694 = vector.broadcast %692 : vector<1x8xf32> to vector<8x8xf32>
    %695 = arith.mulf %693, %694 : vector<8x8xf32>
    %696 = arith.addf %686, %695 : vector<8x8xf32>
    %697 = arith.mulf %685, %56 : vector<8x8xf32>
    %cst_223 = arith.constant dense<0.000000e+00> : vector<8xf32>
    %698 = vector.multi_reduction <add>, %697, %cst_223 [1] : vector<8x8xf32> to vector<8xf32>
    %699 = vector.shape_cast %698 : vector<8xf32> to vector<8x1xf32>
    %700 = vector.extract_strided_slice %688 {offsets = [1, 0], sizes = [1, 8], strides = [1, 1]} : vector<6x8xf32> to vector<1x8xf32>
    %701 = vector.broadcast %699 : vector<8x1xf32> to vector<8x8xf32>
    %702 = vector.broadcast %700 : vector<1x8xf32> to vector<8x8xf32>
    %703 = arith.mulf %701, %702 : vector<8x8xf32>
    %704 = arith.addf %696, %703 : vector<8x8xf32>
    %705 = arith.mulf %685, %58 : vector<8x8xf32>
    %cst_224 = arith.constant dense<0.000000e+00> : vector<8xf32>
    %706 = vector.multi_reduction <add>, %705, %cst_224 [1] : vector<8x8xf32> to vector<8xf32>
    %707 = vector.shape_cast %706 : vector<8xf32> to vector<8x1xf32>
    %708 = vector.extract_strided_slice %688 {offsets = [2, 0], sizes = [1, 8], strides = [1, 1]} : vector<6x8xf32> to vector<1x8xf32>
    %709 = vector.broadcast %707 : vector<8x1xf32> to vector<8x8xf32>
    %710 = vector.broadcast %708 : vector<1x8xf32> to vector<8x8xf32>
    %711 = arith.mulf %709, %710 : vector<8x8xf32>
    %712 = arith.addf %704, %711 : vector<8x8xf32>
    %713 = arith.mulf %685, %60 : vector<8x8xf32>
    %cst_225 = arith.constant dense<0.000000e+00> : vector<8xf32>
    %714 = vector.multi_reduction <add>, %713, %cst_225 [1] : vector<8x8xf32> to vector<8xf32>
    %715 = vector.shape_cast %714 : vector<8xf32> to vector<8x1xf32>
    %716 = vector.extract_strided_slice %688 {offsets = [3, 0], sizes = [1, 8], strides = [1, 1]} : vector<6x8xf32> to vector<1x8xf32>
    %717 = vector.broadcast %715 : vector<8x1xf32> to vector<8x8xf32>
    %718 = vector.broadcast %716 : vector<1x8xf32> to vector<8x8xf32>
    %719 = arith.mulf %717, %718 : vector<8x8xf32>
    %720 = arith.addf %712, %719 : vector<8x8xf32>
    %721 = arith.mulf %685, %62 : vector<8x8xf32>
    %cst_226 = arith.constant dense<0.000000e+00> : vector<8xf32>
    %722 = vector.multi_reduction <add>, %721, %cst_226 [1] : vector<8x8xf32> to vector<8xf32>
    %723 = vector.shape_cast %722 : vector<8xf32> to vector<8x1xf32>
    %724 = vector.extract_strided_slice %688 {offsets = [4, 0], sizes = [1, 8], strides = [1, 1]} : vector<6x8xf32> to vector<1x8xf32>
    %725 = vector.broadcast %723 : vector<8x1xf32> to vector<8x8xf32>
    %726 = vector.broadcast %724 : vector<1x8xf32> to vector<8x8xf32>
    %727 = arith.mulf %725, %726 : vector<8x8xf32>
    %728 = arith.addf %720, %727 : vector<8x8xf32>
    %729 = arith.mulf %685, %64 : vector<8x8xf32>
    %cst_227 = arith.constant dense<0.000000e+00> : vector<8xf32>
    %730 = vector.multi_reduction <add>, %729, %cst_227 [1] : vector<8x8xf32> to vector<8xf32>
    %731 = vector.shape_cast %730 : vector<8xf32> to vector<8x1xf32>
    %732 = vector.extract_strided_slice %688 {offsets = [5, 0], sizes = [1, 8], strides = [1, 1]} : vector<6x8xf32> to vector<1x8xf32>
    %733 = vector.broadcast %731 : vector<8x1xf32> to vector<8x8xf32>
    %734 = vector.broadcast %732 : vector<1x8xf32> to vector<8x8xf32>
    %735 = arith.mulf %733, %734 : vector<8x8xf32>
    %736 = arith.addf %728, %735 : vector<8x8xf32>
    %737 = vector.extract_strided_slice %540 {offsets = [0, 56], sizes = [8, 8], strides = [1, 1]} : vector<8x112xf32> to vector<8x8xf32>
    %738 = vector.extract_strided_slice %540 {offsets = [0, 64], sizes = [8, 8], strides = [1, 1]} : vector<8x112xf32> to vector<8x8xf32>
    %739 = vector.extract_strided_slice %540 {offsets = [0, 72], sizes = [8, 8], strides = [1, 1]} : vector<8x112xf32> to vector<8x8xf32>
    %740 = vector.extract_strided_slice %540 {offsets = [0, 80], sizes = [8, 4], strides = [1, 1]} : vector<8x112xf32> to vector<8x4xf32>
    %c1_228 = arith.constant 1 : index
    %c2_229 = arith.constant 2 : index
    %c0_230 = arith.constant 0 : index
    %c0_231 = arith.constant 0 : index
    %741 = vector.load %arg14[%c1_228, %c2_229, %c0_230, %c0_231] : memref<2x4x4x6xf32, #tpu.memory_space<vmem>>, vector<1x1x4x6xf32>
    %742 = vector.shape_cast %741 : vector<1x1x4x6xf32> to vector<4x6xf32>
    %cst_232 = arith.constant dense<0.000000e+00> : vector<8x6xf32>
    %743 = tpu.matmul %740, %742, %cst_232 {dimension_numbers = #tpu.dot_dimension_numbers<[1], [0], [0], [1], [0, 0, 1, 1], [], []>} : vector<8x4xf32>, vector<4x6xf32>, vector<8x6xf32> -> vector<8x6xf32>
    %744 = vector.extract_strided_slice %743 {offsets = [0, 0], sizes = [8, 1], strides = [1, 1]} : vector<8x6xf32> to vector<8x1xf32>
    %745 = vector.broadcast %744 : vector<8x1xf32> to vector<8x8xf32>
    %746 = arith.mulf %745, %54 : vector<8x8xf32>
    %747 = vector.extract_strided_slice %743 {offsets = [0, 1], sizes = [8, 1], strides = [1, 1]} : vector<8x6xf32> to vector<8x1xf32>
    %748 = vector.broadcast %747 : vector<8x1xf32> to vector<8x8xf32>
    %749 = arith.mulf %748, %56 : vector<8x8xf32>
    %750 = arith.addf %746, %749 : vector<8x8xf32>
    %751 = vector.extract_strided_slice %743 {offsets = [0, 2], sizes = [8, 1], strides = [1, 1]} : vector<8x6xf32> to vector<8x1xf32>
    %752 = vector.broadcast %751 : vector<8x1xf32> to vector<8x8xf32>
    %753 = arith.mulf %752, %58 : vector<8x8xf32>
    %754 = arith.addf %750, %753 : vector<8x8xf32>
    %755 = vector.extract_strided_slice %743 {offsets = [0, 3], sizes = [8, 1], strides = [1, 1]} : vector<8x6xf32> to vector<8x1xf32>
    %756 = vector.broadcast %755 : vector<8x1xf32> to vector<8x8xf32>
    %757 = arith.mulf %756, %60 : vector<8x8xf32>
    %758 = arith.addf %754, %757 : vector<8x8xf32>
    %759 = vector.extract_strided_slice %743 {offsets = [0, 4], sizes = [8, 1], strides = [1, 1]} : vector<8x6xf32> to vector<8x1xf32>
    %760 = vector.broadcast %759 : vector<8x1xf32> to vector<8x8xf32>
    %761 = arith.mulf %760, %62 : vector<8x8xf32>
    %762 = arith.addf %758, %761 : vector<8x8xf32>
    %763 = vector.extract_strided_slice %743 {offsets = [0, 5], sizes = [8, 1], strides = [1, 1]} : vector<8x6xf32> to vector<8x1xf32>
    %764 = vector.broadcast %763 : vector<8x1xf32> to vector<8x8xf32>
    %765 = arith.mulf %764, %64 : vector<8x8xf32>
    %766 = arith.addf %762, %765 : vector<8x8xf32>
    %cst_233 = arith.constant dense<0.000000e+00> : vector<8x8xf32>
    %767 = tpu.matmul %737, %738, %cst_233 {dimension_numbers = #tpu.dot_dimension_numbers<[1], [1], [0], [0], [0, 0, 1, 0], [], []>} : vector<8x8xf32>, vector<8x8xf32>, vector<8x8xf32> -> vector<8x8xf32>
    %768 = arith.addf %767, %766 : vector<8x8xf32>
    %cst_234 = arith.constant 0.288675129 : f32
    %769 = vector.broadcast %cst_234 : f32 to vector<8x8xf32>
    %770 = arith.mulf %769, %768 : vector<8x8xf32>
    %771 = vector.broadcast %52 : vector<1x8xf32> to vector<8x8xf32>
    %772 = arith.addf %770, %771 : vector<8x8xf32>
    %cst_235 = arith.constant dense<0xFF800000> : vector<8xf32>
    %773 = vector.multi_reduction <maximumf>, %772, %cst_235 [1] : vector<8x8xf32> to vector<8xf32>
    %cst_236 = arith.constant 0xFF800000 : f32
    %774 = vector.broadcast %cst_236 : f32 to vector<8xf32>
    %775 = arith.maximumf %774, %773 : vector<8xf32>
    %776 = vector.shape_cast %775 : vector<8xf32> to vector<8x1xf32>
    %777 = vector.broadcast %776 : vector<8x1xf32> to vector<8x8xf32>
    %778 = arith.subf %772, %777 : vector<8x8xf32>
    %779 = math.exp %778 : vector<8x8xf32>
    %cst_237 = arith.constant dense<0.000000e+00> : vector<8xf32>
    %780 = vector.multi_reduction <add>, %779, %cst_237 [1] : vector<8x8xf32> to vector<8xf32>
    %781 = vector.shape_cast %780 : vector<8xf32> to vector<8x1xf32>
    %782 = vector.broadcast %781 : vector<8x1xf32> to vector<8x8xf32>
    %783 = arith.divf %779, %782 : vector<8x8xf32>
    %cst_238 = arith.constant dense<0.000000e+00> : vector<8x8xf32>
    %784 = tpu.matmul %783, %739, %cst_238 {dimension_numbers = #tpu.dot_dimension_numbers<[1], [0], [0], [1], [0, 0, 1, 1], [], []>} : vector<8x8xf32>, vector<8x8xf32>, vector<8x8xf32> -> vector<8x8xf32>
    %c1_239 = arith.constant 1 : index
    %c2_240 = arith.constant 2 : index
    %c0_241 = arith.constant 0 : index
    %c0_242 = arith.constant 0 : index
    %785 = vector.load %arg15[%c1_239, %c2_240, %c0_241, %c0_242] : memref<2x4x6x8xf32, #tpu.memory_space<vmem>>, vector<1x1x6x8xf32>
    %786 = vector.shape_cast %785 : vector<1x1x6x8xf32> to vector<6x8xf32>
    %787 = arith.mulf %783, %54 : vector<8x8xf32>
    %cst_243 = arith.constant dense<0.000000e+00> : vector<8xf32>
    %788 = vector.multi_reduction <add>, %787, %cst_243 [1] : vector<8x8xf32> to vector<8xf32>
    %789 = vector.shape_cast %788 : vector<8xf32> to vector<8x1xf32>
    %790 = vector.extract_strided_slice %786 {offsets = [0, 0], sizes = [1, 8], strides = [1, 1]} : vector<6x8xf32> to vector<1x8xf32>
    %791 = vector.broadcast %789 : vector<8x1xf32> to vector<8x8xf32>
    %792 = vector.broadcast %790 : vector<1x8xf32> to vector<8x8xf32>
    %793 = arith.mulf %791, %792 : vector<8x8xf32>
    %794 = arith.addf %784, %793 : vector<8x8xf32>
    %795 = arith.mulf %783, %56 : vector<8x8xf32>
    %cst_244 = arith.constant dense<0.000000e+00> : vector<8xf32>
    %796 = vector.multi_reduction <add>, %795, %cst_244 [1] : vector<8x8xf32> to vector<8xf32>
    %797 = vector.shape_cast %796 : vector<8xf32> to vector<8x1xf32>
    %798 = vector.extract_strided_slice %786 {offsets = [1, 0], sizes = [1, 8], strides = [1, 1]} : vector<6x8xf32> to vector<1x8xf32>
    %799 = vector.broadcast %797 : vector<8x1xf32> to vector<8x8xf32>
    %800 = vector.broadcast %798 : vector<1x8xf32> to vector<8x8xf32>
    %801 = arith.mulf %799, %800 : vector<8x8xf32>
    %802 = arith.addf %794, %801 : vector<8x8xf32>
    %803 = arith.mulf %783, %58 : vector<8x8xf32>
    %cst_245 = arith.constant dense<0.000000e+00> : vector<8xf32>
    %804 = vector.multi_reduction <add>, %803, %cst_245 [1] : vector<8x8xf32> to vector<8xf32>
    %805 = vector.shape_cast %804 : vector<8xf32> to vector<8x1xf32>
    %806 = vector.extract_strided_slice %786 {offsets = [2, 0], sizes = [1, 8], strides = [1, 1]} : vector<6x8xf32> to vector<1x8xf32>
    %807 = vector.broadcast %805 : vector<8x1xf32> to vector<8x8xf32>
    %808 = vector.broadcast %806 : vector<1x8xf32> to vector<8x8xf32>
    %809 = arith.mulf %807, %808 : vector<8x8xf32>
    %810 = arith.addf %802, %809 : vector<8x8xf32>
    %811 = arith.mulf %783, %60 : vector<8x8xf32>
    %cst_246 = arith.constant dense<0.000000e+00> : vector<8xf32>
    %812 = vector.multi_reduction <add>, %811, %cst_246 [1] : vector<8x8xf32> to vector<8xf32>
    %813 = vector.shape_cast %812 : vector<8xf32> to vector<8x1xf32>
    %814 = vector.extract_strided_slice %786 {offsets = [3, 0], sizes = [1, 8], strides = [1, 1]} : vector<6x8xf32> to vector<1x8xf32>
    %815 = vector.broadcast %813 : vector<8x1xf32> to vector<8x8xf32>
    %816 = vector.broadcast %814 : vector<1x8xf32> to vector<8x8xf32>
    %817 = arith.mulf %815, %816 : vector<8x8xf32>
    %818 = arith.addf %810, %817 : vector<8x8xf32>
    %819 = arith.mulf %783, %62 : vector<8x8xf32>
    %cst_247 = arith.constant dense<0.000000e+00> : vector<8xf32>
    %820 = vector.multi_reduction <add>, %819, %cst_247 [1] : vector<8x8xf32> to vector<8xf32>
    %821 = vector.shape_cast %820 : vector<8xf32> to vector<8x1xf32>
    %822 = vector.extract_strided_slice %786 {offsets = [4, 0], sizes = [1, 8], strides = [1, 1]} : vector<6x8xf32> to vector<1x8xf32>
    %823 = vector.broadcast %821 : vector<8x1xf32> to vector<8x8xf32>
    %824 = vector.broadcast %822 : vector<1x8xf32> to vector<8x8xf32>
    %825 = arith.mulf %823, %824 : vector<8x8xf32>
    %826 = arith.addf %818, %825 : vector<8x8xf32>
    %827 = arith.mulf %783, %64 : vector<8x8xf32>
    %cst_248 = arith.constant dense<0.000000e+00> : vector<8xf32>
    %828 = vector.multi_reduction <add>, %827, %cst_248 [1] : vector<8x8xf32> to vector<8xf32>
    %829 = vector.shape_cast %828 : vector<8xf32> to vector<8x1xf32>
    %830 = vector.extract_strided_slice %786 {offsets = [5, 0], sizes = [1, 8], strides = [1, 1]} : vector<6x8xf32> to vector<1x8xf32>
    %831 = vector.broadcast %829 : vector<8x1xf32> to vector<8x8xf32>
    %832 = vector.broadcast %830 : vector<1x8xf32> to vector<8x8xf32>
    %833 = arith.mulf %831, %832 : vector<8x8xf32>
    %834 = arith.addf %826, %833 : vector<8x8xf32>
    %835 = vector.extract_strided_slice %540 {offsets = [0, 84], sizes = [8, 8], strides = [1, 1]} : vector<8x112xf32> to vector<8x8xf32>
    %836 = vector.extract_strided_slice %540 {offsets = [0, 92], sizes = [8, 8], strides = [1, 1]} : vector<8x112xf32> to vector<8x8xf32>
    %837 = vector.extract_strided_slice %540 {offsets = [0, 100], sizes = [8, 8], strides = [1, 1]} : vector<8x112xf32> to vector<8x8xf32>
    %838 = vector.extract_strided_slice %540 {offsets = [0, 108], sizes = [8, 4], strides = [1, 1]} : vector<8x112xf32> to vector<8x4xf32>
    %c1_249 = arith.constant 1 : index
    %c3_250 = arith.constant 3 : index
    %c0_251 = arith.constant 0 : index
    %c0_252 = arith.constant 0 : index
    %839 = vector.load %arg14[%c1_249, %c3_250, %c0_251, %c0_252] : memref<2x4x4x6xf32, #tpu.memory_space<vmem>>, vector<1x1x4x6xf32>
    %840 = vector.shape_cast %839 : vector<1x1x4x6xf32> to vector<4x6xf32>
    %cst_253 = arith.constant dense<0.000000e+00> : vector<8x6xf32>
    %841 = tpu.matmul %838, %840, %cst_253 {dimension_numbers = #tpu.dot_dimension_numbers<[1], [0], [0], [1], [0, 0, 1, 1], [], []>} : vector<8x4xf32>, vector<4x6xf32>, vector<8x6xf32> -> vector<8x6xf32>
    %842 = vector.extract_strided_slice %841 {offsets = [0, 0], sizes = [8, 1], strides = [1, 1]} : vector<8x6xf32> to vector<8x1xf32>
    %843 = vector.broadcast %842 : vector<8x1xf32> to vector<8x8xf32>
    %844 = arith.mulf %843, %54 : vector<8x8xf32>
    %845 = vector.extract_strided_slice %841 {offsets = [0, 1], sizes = [8, 1], strides = [1, 1]} : vector<8x6xf32> to vector<8x1xf32>
    %846 = vector.broadcast %845 : vector<8x1xf32> to vector<8x8xf32>
    %847 = arith.mulf %846, %56 : vector<8x8xf32>
    %848 = arith.addf %844, %847 : vector<8x8xf32>
    %849 = vector.extract_strided_slice %841 {offsets = [0, 2], sizes = [8, 1], strides = [1, 1]} : vector<8x6xf32> to vector<8x1xf32>
    %850 = vector.broadcast %849 : vector<8x1xf32> to vector<8x8xf32>
    %851 = arith.mulf %850, %58 : vector<8x8xf32>
    %852 = arith.addf %848, %851 : vector<8x8xf32>
    %853 = vector.extract_strided_slice %841 {offsets = [0, 3], sizes = [8, 1], strides = [1, 1]} : vector<8x6xf32> to vector<8x1xf32>
    %854 = vector.broadcast %853 : vector<8x1xf32> to vector<8x8xf32>
    %855 = arith.mulf %854, %60 : vector<8x8xf32>
    %856 = arith.addf %852, %855 : vector<8x8xf32>
    %857 = vector.extract_strided_slice %841 {offsets = [0, 4], sizes = [8, 1], strides = [1, 1]} : vector<8x6xf32> to vector<8x1xf32>
    %858 = vector.broadcast %857 : vector<8x1xf32> to vector<8x8xf32>
    %859 = arith.mulf %858, %62 : vector<8x8xf32>
    %860 = arith.addf %856, %859 : vector<8x8xf32>
    %861 = vector.extract_strided_slice %841 {offsets = [0, 5], sizes = [8, 1], strides = [1, 1]} : vector<8x6xf32> to vector<8x1xf32>
    %862 = vector.broadcast %861 : vector<8x1xf32> to vector<8x8xf32>
    %863 = arith.mulf %862, %64 : vector<8x8xf32>
    %864 = arith.addf %860, %863 : vector<8x8xf32>
    %cst_254 = arith.constant dense<0.000000e+00> : vector<8x8xf32>
    %865 = tpu.matmul %835, %836, %cst_254 {dimension_numbers = #tpu.dot_dimension_numbers<[1], [1], [0], [0], [0, 0, 1, 0], [], []>} : vector<8x8xf32>, vector<8x8xf32>, vector<8x8xf32> -> vector<8x8xf32>
    %866 = arith.addf %865, %864 : vector<8x8xf32>
    %cst_255 = arith.constant 0.288675129 : f32
    %867 = vector.broadcast %cst_255 : f32 to vector<8x8xf32>
    %868 = arith.mulf %867, %866 : vector<8x8xf32>
    %869 = vector.broadcast %52 : vector<1x8xf32> to vector<8x8xf32>
    %870 = arith.addf %868, %869 : vector<8x8xf32>
    %cst_256 = arith.constant dense<0xFF800000> : vector<8xf32>
    %871 = vector.multi_reduction <maximumf>, %870, %cst_256 [1] : vector<8x8xf32> to vector<8xf32>
    %cst_257 = arith.constant 0xFF800000 : f32
    %872 = vector.broadcast %cst_257 : f32 to vector<8xf32>
    %873 = arith.maximumf %872, %871 : vector<8xf32>
    %874 = vector.shape_cast %873 : vector<8xf32> to vector<8x1xf32>
    %875 = vector.broadcast %874 : vector<8x1xf32> to vector<8x8xf32>
    %876 = arith.subf %870, %875 : vector<8x8xf32>
    %877 = math.exp %876 : vector<8x8xf32>
    %cst_258 = arith.constant dense<0.000000e+00> : vector<8xf32>
    %878 = vector.multi_reduction <add>, %877, %cst_258 [1] : vector<8x8xf32> to vector<8xf32>
    %879 = vector.shape_cast %878 : vector<8xf32> to vector<8x1xf32>
    %880 = vector.broadcast %879 : vector<8x1xf32> to vector<8x8xf32>
    %881 = arith.divf %877, %880 : vector<8x8xf32>
    %cst_259 = arith.constant dense<0.000000e+00> : vector<8x8xf32>
    %882 = tpu.matmul %881, %837, %cst_259 {dimension_numbers = #tpu.dot_dimension_numbers<[1], [0], [0], [1], [0, 0, 1, 1], [], []>} : vector<8x8xf32>, vector<8x8xf32>, vector<8x8xf32> -> vector<8x8xf32>
    %c1_260 = arith.constant 1 : index
    %c3_261 = arith.constant 3 : index
    %c0_262 = arith.constant 0 : index
    %c0_263 = arith.constant 0 : index
    %883 = vector.load %arg15[%c1_260, %c3_261, %c0_262, %c0_263] : memref<2x4x6x8xf32, #tpu.memory_space<vmem>>, vector<1x1x6x8xf32>
    %884 = vector.shape_cast %883 : vector<1x1x6x8xf32> to vector<6x8xf32>
    %885 = arith.mulf %881, %54 : vector<8x8xf32>
    %cst_264 = arith.constant dense<0.000000e+00> : vector<8xf32>
    %886 = vector.multi_reduction <add>, %885, %cst_264 [1] : vector<8x8xf32> to vector<8xf32>
    %887 = vector.shape_cast %886 : vector<8xf32> to vector<8x1xf32>
    %888 = vector.extract_strided_slice %884 {offsets = [0, 0], sizes = [1, 8], strides = [1, 1]} : vector<6x8xf32> to vector<1x8xf32>
    %889 = vector.broadcast %887 : vector<8x1xf32> to vector<8x8xf32>
    %890 = vector.broadcast %888 : vector<1x8xf32> to vector<8x8xf32>
    %891 = arith.mulf %889, %890 : vector<8x8xf32>
    %892 = arith.addf %882, %891 : vector<8x8xf32>
    %893 = arith.mulf %881, %56 : vector<8x8xf32>
    %cst_265 = arith.constant dense<0.000000e+00> : vector<8xf32>
    %894 = vector.multi_reduction <add>, %893, %cst_265 [1] : vector<8x8xf32> to vector<8xf32>
    %895 = vector.shape_cast %894 : vector<8xf32> to vector<8x1xf32>
    %896 = vector.extract_strided_slice %884 {offsets = [1, 0], sizes = [1, 8], strides = [1, 1]} : vector<6x8xf32> to vector<1x8xf32>
    %897 = vector.broadcast %895 : vector<8x1xf32> to vector<8x8xf32>
    %898 = vector.broadcast %896 : vector<1x8xf32> to vector<8x8xf32>
    %899 = arith.mulf %897, %898 : vector<8x8xf32>
    %900 = arith.addf %892, %899 : vector<8x8xf32>
    %901 = arith.mulf %881, %58 : vector<8x8xf32>
    %cst_266 = arith.constant dense<0.000000e+00> : vector<8xf32>
    %902 = vector.multi_reduction <add>, %901, %cst_266 [1] : vector<8x8xf32> to vector<8xf32>
    %903 = vector.shape_cast %902 : vector<8xf32> to vector<8x1xf32>
    %904 = vector.extract_strided_slice %884 {offsets = [2, 0], sizes = [1, 8], strides = [1, 1]} : vector<6x8xf32> to vector<1x8xf32>
    %905 = vector.broadcast %903 : vector<8x1xf32> to vector<8x8xf32>
    %906 = vector.broadcast %904 : vector<1x8xf32> to vector<8x8xf32>
    %907 = arith.mulf %905, %906 : vector<8x8xf32>
    %908 = arith.addf %900, %907 : vector<8x8xf32>
    %909 = arith.mulf %881, %60 : vector<8x8xf32>
    %cst_267 = arith.constant dense<0.000000e+00> : vector<8xf32>
    %910 = vector.multi_reduction <add>, %909, %cst_267 [1] : vector<8x8xf32> to vector<8xf32>
    %911 = vector.shape_cast %910 : vector<8xf32> to vector<8x1xf32>
    %912 = vector.extract_strided_slice %884 {offsets = [3, 0], sizes = [1, 8], strides = [1, 1]} : vector<6x8xf32> to vector<1x8xf32>
    %913 = vector.broadcast %911 : vector<8x1xf32> to vector<8x8xf32>
    %914 = vector.broadcast %912 : vector<1x8xf32> to vector<8x8xf32>
    %915 = arith.mulf %913, %914 : vector<8x8xf32>
    %916 = arith.addf %908, %915 : vector<8x8xf32>
    %917 = arith.mulf %881, %62 : vector<8x8xf32>
    %cst_268 = arith.constant dense<0.000000e+00> : vector<8xf32>
    %918 = vector.multi_reduction <add>, %917, %cst_268 [1] : vector<8x8xf32> to vector<8xf32>
    %919 = vector.shape_cast %918 : vector<8xf32> to vector<8x1xf32>
    %920 = vector.extract_strided_slice %884 {offsets = [4, 0], sizes = [1, 8], strides = [1, 1]} : vector<6x8xf32> to vector<1x8xf32>
    %921 = vector.broadcast %919 : vector<8x1xf32> to vector<8x8xf32>
    %922 = vector.broadcast %920 : vector<1x8xf32> to vector<8x8xf32>
    %923 = arith.mulf %921, %922 : vector<8x8xf32>
    %924 = arith.addf %916, %923 : vector<8x8xf32>
    %925 = arith.mulf %881, %64 : vector<8x8xf32>
    %cst_269 = arith.constant dense<0.000000e+00> : vector<8xf32>
    %926 = vector.multi_reduction <add>, %925, %cst_269 [1] : vector<8x8xf32> to vector<8xf32>
    %927 = vector.shape_cast %926 : vector<8xf32> to vector<8x1xf32>
    %928 = vector.extract_strided_slice %884 {offsets = [5, 0], sizes = [1, 8], strides = [1, 1]} : vector<6x8xf32> to vector<1x8xf32>
    %929 = vector.broadcast %927 : vector<8x1xf32> to vector<8x8xf32>
    %930 = vector.broadcast %928 : vector<1x8xf32> to vector<8x8xf32>
    %931 = arith.mulf %929, %930 : vector<8x8xf32>
    %932 = arith.addf %924, %931 : vector<8x8xf32>
    %933 = tpu.concatenate %638, %736, %834, %932 in 1 : vector<8x8xf32>, vector<8x8xf32>, vector<8x8xf32>, vector<8x8xf32> -> vector<8x32xf32>
    %c1_270 = arith.constant 1 : index
    %c0_271 = arith.constant 0 : index
    %c0_272 = arith.constant 0 : index
    %934 = vector.load %arg16[%c1_270, %c0_271, %c0_272] : memref<2x32x32xf32, #tpu.memory_space<vmem>>, vector<1x32x32xf32>
    %935 = vector.shape_cast %934 : vector<1x32x32xf32> to vector<32x32xf32>
    %cst_273 = arith.constant dense<0.000000e+00> : vector<8x32xf32>
    %936 = tpu.matmul %933, %935, %cst_273 {dimension_numbers = #tpu.dot_dimension_numbers<[1], [0], [0], [1], [0, 0, 1, 1], [], []>} : vector<8x32xf32>, vector<32x32xf32>, vector<8x32xf32> -> vector<8x32xf32>
    %c1_274 = arith.constant 1 : index
    %c0_275 = arith.constant 0 : index
    %c0_276 = arith.constant 0 : index
    %937 = vector.load %arg17[%c1_274, %c0_275, %c0_276] : memref<2x1x32xf32, #tpu.memory_space<vmem>>, vector<1x1x32xf32>
    %938 = vector.shape_cast %937 : vector<1x1x32xf32> to vector<1x32xf32>
    %939 = vector.broadcast %938 : vector<1x32xf32> to vector<8x32xf32>
    %940 = arith.addf %936, %939 : vector<8x32xf32>
    %941 = arith.addf %940, %537 : vector<8x32xf32>
    %c1_277 = arith.constant 1 : index
    %c0_278 = arith.constant 0 : index
    %c0_279 = arith.constant 0 : index
    %942 = vector.load %arg18[%c1_277, %c0_278, %c0_279] : memref<2x1x32xf32, #tpu.memory_space<vmem>>, vector<1x1x32xf32>
    %943 = vector.shape_cast %942 : vector<1x1x32xf32> to vector<1x32xf32>
    %c1_280 = arith.constant 1 : index
    %c0_281 = arith.constant 0 : index
    %c0_282 = arith.constant 0 : index
    %944 = vector.load %arg19[%c1_280, %c0_281, %c0_282] : memref<2x1x32xf32, #tpu.memory_space<vmem>>, vector<1x1x32xf32>
    %945 = vector.shape_cast %944 : vector<1x1x32xf32> to vector<1x32xf32>
    %cst_283 = arith.constant dense<0.000000e+00> : vector<8xf32>
    %946 = vector.multi_reduction <add>, %941, %cst_283 [1] : vector<8x32xf32> to vector<8xf32>
    %947 = vector.shape_cast %946 : vector<8xf32> to vector<8x1xf32>
    %cst_284 = arith.constant 3.200000e+01 : f32
    %948 = vector.broadcast %cst_284 : f32 to vector<8x1xf32>
    %949 = arith.divf %947, %948 : vector<8x1xf32>
    %950 = vector.broadcast %949 : vector<8x1xf32> to vector<8x32xf32>
    %951 = arith.subf %941, %950 : vector<8x32xf32>
    %952 = arith.mulf %951, %951 : vector<8x32xf32>
    %cst_285 = arith.constant dense<0.000000e+00> : vector<8xf32>
    %953 = vector.multi_reduction <add>, %952, %cst_285 [1] : vector<8x32xf32> to vector<8xf32>
    %954 = vector.shape_cast %953 : vector<8xf32> to vector<8x1xf32>
    %cst_286 = arith.constant 3.200000e+01 : f32
    %955 = vector.broadcast %cst_286 : f32 to vector<8x1xf32>
    %956 = arith.divf %954, %955 : vector<8x1xf32>
    %957 = vector.broadcast %949 : vector<8x1xf32> to vector<8x32xf32>
    %958 = arith.subf %941, %957 : vector<8x32xf32>
    %cst_287 = arith.constant 9.99999996E-13 : f32
    %959 = vector.broadcast %cst_287 : f32 to vector<8x1xf32>
    %960 = arith.addf %956, %959 : vector<8x1xf32>
    %961 = math.sqrt %960 : vector<8x1xf32>
    %962 = vector.broadcast %961 : vector<8x1xf32> to vector<8x32xf32>
    %963 = arith.divf %958, %962 : vector<8x32xf32>
    %964 = vector.broadcast %943 : vector<1x32xf32> to vector<8x32xf32>
    %965 = arith.mulf %964, %963 : vector<8x32xf32>
    %966 = vector.broadcast %945 : vector<1x32xf32> to vector<8x32xf32>
    %967 = arith.addf %965, %966 : vector<8x32xf32>
    %c1_288 = arith.constant 1 : index
    %c0_289 = arith.constant 0 : index
    %c0_290 = arith.constant 0 : index
    %968 = vector.load %arg20[%c1_288, %c0_289, %c0_290] : memref<2x32x64xf32, #tpu.memory_space<vmem>>, vector<1x32x64xf32>
    %969 = vector.shape_cast %968 : vector<1x32x64xf32> to vector<32x64xf32>
    %cst_291 = arith.constant dense<0.000000e+00> : vector<8x64xf32>
    %970 = tpu.matmul %967, %969, %cst_291 {dimension_numbers = #tpu.dot_dimension_numbers<[1], [0], [0], [1], [0, 0, 1, 1], [], []>} : vector<8x32xf32>, vector<32x64xf32>, vector<8x64xf32> -> vector<8x64xf32>
    %c1_292 = arith.constant 1 : index
    %c0_293 = arith.constant 0 : index
    %c0_294 = arith.constant 0 : index
    %971 = vector.load %arg21[%c1_292, %c0_293, %c0_294] : memref<2x1x64xf32, #tpu.memory_space<vmem>>, vector<1x1x64xf32>
    %972 = vector.shape_cast %971 : vector<1x1x64xf32> to vector<1x64xf32>
    %973 = vector.broadcast %972 : vector<1x64xf32> to vector<8x64xf32>
    %974 = arith.addf %970, %973 : vector<8x64xf32>
    %cst_295 = arith.constant 0.000000e+00 : f32
    %975 = vector.broadcast %cst_295 : f32 to vector<8x64xf32>
    %976 = arith.maximumf %974, %975 : vector<8x64xf32>
    %c1_296 = arith.constant 1 : index
    %c0_297 = arith.constant 0 : index
    %c0_298 = arith.constant 0 : index
    %977 = vector.load %arg22[%c1_296, %c0_297, %c0_298] : memref<2x64x32xf32, #tpu.memory_space<vmem>>, vector<1x64x32xf32>
    %978 = vector.shape_cast %977 : vector<1x64x32xf32> to vector<64x32xf32>
    %cst_299 = arith.constant dense<0.000000e+00> : vector<8x32xf32>
    %979 = tpu.matmul %976, %978, %cst_299 {dimension_numbers = #tpu.dot_dimension_numbers<[1], [0], [0], [1], [0, 0, 1, 1], [], []>} : vector<8x64xf32>, vector<64x32xf32>, vector<8x32xf32> -> vector<8x32xf32>
    %c1_300 = arith.constant 1 : index
    %c0_301 = arith.constant 0 : index
    %c0_302 = arith.constant 0 : index
    %980 = vector.load %arg23[%c1_300, %c0_301, %c0_302] : memref<2x1x32xf32, #tpu.memory_space<vmem>>, vector<1x1x32xf32>
    %981 = vector.shape_cast %980 : vector<1x1x32xf32> to vector<1x32xf32>
    %982 = vector.broadcast %981 : vector<1x32xf32> to vector<8x32xf32>
    %983 = arith.addf %979, %982 : vector<8x32xf32>
    %984 = arith.addf %983, %967 : vector<8x32xf32>
    %c1_303 = arith.constant 1 : index
    %c0_304 = arith.constant 0 : index
    %c0_305 = arith.constant 0 : index
    %985 = vector.load %arg24[%c1_303, %c0_304, %c0_305] : memref<2x1x32xf32, #tpu.memory_space<vmem>>, vector<1x1x32xf32>
    %986 = vector.shape_cast %985 : vector<1x1x32xf32> to vector<1x32xf32>
    %c1_306 = arith.constant 1 : index
    %c0_307 = arith.constant 0 : index
    %c0_308 = arith.constant 0 : index
    %987 = vector.load %arg25[%c1_306, %c0_307, %c0_308] : memref<2x1x32xf32, #tpu.memory_space<vmem>>, vector<1x1x32xf32>
    %988 = vector.shape_cast %987 : vector<1x1x32xf32> to vector<1x32xf32>
    %cst_309 = arith.constant dense<0.000000e+00> : vector<8xf32>
    %989 = vector.multi_reduction <add>, %984, %cst_309 [1] : vector<8x32xf32> to vector<8xf32>
    %990 = vector.shape_cast %989 : vector<8xf32> to vector<8x1xf32>
    %cst_310 = arith.constant 3.200000e+01 : f32
    %991 = vector.broadcast %cst_310 : f32 to vector<8x1xf32>
    %992 = arith.divf %990, %991 : vector<8x1xf32>
    %993 = vector.broadcast %992 : vector<8x1xf32> to vector<8x32xf32>
    %994 = arith.subf %984, %993 : vector<8x32xf32>
    %995 = arith.mulf %994, %994 : vector<8x32xf32>
    %cst_311 = arith.constant dense<0.000000e+00> : vector<8xf32>
    %996 = vector.multi_reduction <add>, %995, %cst_311 [1] : vector<8x32xf32> to vector<8xf32>
    %997 = vector.shape_cast %996 : vector<8xf32> to vector<8x1xf32>
    %cst_312 = arith.constant 3.200000e+01 : f32
    %998 = vector.broadcast %cst_312 : f32 to vector<8x1xf32>
    %999 = arith.divf %997, %998 : vector<8x1xf32>
    %1000 = vector.broadcast %992 : vector<8x1xf32> to vector<8x32xf32>
    %1001 = arith.subf %984, %1000 : vector<8x32xf32>
    %cst_313 = arith.constant 9.99999996E-13 : f32
    %1002 = vector.broadcast %cst_313 : f32 to vector<8x1xf32>
    %1003 = arith.addf %999, %1002 : vector<8x1xf32>
    %1004 = math.sqrt %1003 : vector<8x1xf32>
    %1005 = vector.broadcast %1004 : vector<8x1xf32> to vector<8x32xf32>
    %1006 = arith.divf %1001, %1005 : vector<8x32xf32>
    %1007 = vector.broadcast %986 : vector<1x32xf32> to vector<8x32xf32>
    %1008 = arith.mulf %1007, %1006 : vector<8x32xf32>
    %1009 = vector.broadcast %988 : vector<1x32xf32> to vector<8x32xf32>
    %1010 = arith.addf %1008, %1009 : vector<8x32xf32>
    %c0_314 = arith.constant 0 : index
    %c0_315 = arith.constant 0 : index
    %c0_316 = arith.constant 0 : index
    %1011 = vector.load %arg5[%c0_314, %c0_315, %c0_316] : memref<1x8x1xf32, #tpu.memory_space<vmem>>, vector<1x8x1xf32>
    %1012 = vector.shape_cast %1011 : vector<1x8x1xf32> to vector<8x1xf32>
    %cst_317 = arith.constant 0.000000e+00 : f32
    %1013 = vector.broadcast %cst_317 : f32 to vector<8x32xf32>
    %1014 = arith.maximumf %1010, %1013 : vector<8x32xf32>
    %1015 = vector.broadcast %1012 : vector<8x1xf32> to vector<8x32xf32>
    %1016 = arith.mulf %1014, %1015 : vector<8x32xf32>
    %cst_318 = arith.constant dense<0.000000e+00> : vector<32xf32>
    %1017 = vector.multi_reduction <add>, %1016, %cst_318 [0] : vector<8x32xf32> to vector<32xf32>
    %1018 = vector.shape_cast %1017 : vector<32xf32> to vector<1x32xf32>
    %1019 = vector.shape_cast %1012 : vector<8x1xf32> to vector<1x8x1xf32>
    %cst_319 = arith.constant dense<0.000000e+00> : vector<1xf32>
    %1020 = vector.multi_reduction <add>, %1019, %cst_319 [1, 2] : vector<1x8x1xf32> to vector<1xf32>
    %1021 = vector.shape_cast %1020 : vector<1xf32> to vector<1x1x1xf32>
    %1022 = vector.extract %1021[0, 0, 0] : f32 from vector<1x1x1xf32>
    %1023 = vector.broadcast %1022 : f32 to vector<1x1xf32>
    %1024 = vector.broadcast %1023 : vector<1x1xf32> to vector<1x32xf32>
    %1025 = arith.divf %1018, %1024 : vector<1x32xf32>
    %c0_320 = arith.constant 0 : index
    %c0_321 = arith.constant 0 : index
    %1026 = vector.load %arg26[%c0_320, %c0_321] : memref<32x4xf32, #tpu.memory_space<vmem>>, vector<32x4xf32>
    %cst_322 = arith.constant dense<0.000000e+00> : vector<1x4xf32>
    %1027 = tpu.matmul %1025, %1026, %cst_322 {dimension_numbers = #tpu.dot_dimension_numbers<[1], [0], [0], [1], [0, 0, 1, 1], [], []>} : vector<1x32xf32>, vector<32x4xf32>, vector<1x4xf32> -> vector<1x4xf32>
    %c0_323 = arith.constant 0 : index
    %c0_324 = arith.constant 0 : index
    %1028 = vector.load %arg27[%c0_323, %c0_324] : memref<1x4xf32, #tpu.memory_space<vmem>>, vector<1x4xf32>
    %1029 = arith.addf %1027, %1028 : vector<1x4xf32>
    %c0_325 = arith.constant 0 : index
    %c0_326 = arith.constant 0 : index
    %c0_327 = arith.constant 0 : index
    %1030 = vector.load %arg28[%c0_325, %c0_326, %c0_327] : memref<1x1x4xf32, #tpu.memory_space<vmem>>, vector<1x1x4xf32>
    %1031 = vector.shape_cast %1030 : vector<1x1x4xf32> to vector<1x4xf32>
    %1032 = vector.shape_cast %1029 : vector<1x4xf32> to vector<1x1x4xf32>
    tpu.vector_store %arg28[%c0_325, %c0_326, %c0_327], %1032 {strides = array<i32>} : memref<1x1x4xf32, #tpu.memory_space<vmem>>, vector<1x1x4xf32>,
    return
  }
  func.func @transform_0(%arg0: i32) -> (i32, i32, i32) {
    %c0_i32 = arith.constant 0 : i32
    %c0_i32_0 = arith.constant 0 : i32
    %c0_i32_1 = arith.constant 0 : i32
    return %arg0, %c0_i32, %c0_i32_0 : i32, i32, i32
  }
  func.func @transform_1(%arg0: i32) -> (i32, i32, i32) {
    %c0_i32 = arith.constant 0 : i32
    %c0_i32_0 = arith.constant 0 : i32
    %c0_i32_1 = arith.constant 0 : i32
    return %arg0, %c0_i32, %c0_i32_0 : i32, i32, i32
  }
  func.func @transform_2(%arg0: i32) -> (i32, i32, i32, i32) {
    %c0_i32 = arith.constant 0 : i32
    %c0_i32_0 = arith.constant 0 : i32
    %c0_i32_1 = arith.constant 0 : i32
    %c0_i32_2 = arith.constant 0 : i32
    return %arg0, %c0_i32, %c0_i32_0, %c0_i32_1 : i32, i32, i32, i32
  }
  func.func @transform_3(%arg0: i32) -> (i32, i32, i32) {
    %c0_i32 = arith.constant 0 : i32
    %c0_i32_0 = arith.constant 0 : i32
    %c0_i32_1 = arith.constant 0 : i32
    return %arg0, %c0_i32, %c0_i32_0 : i32, i32, i32
  }
  func.func @transform_4(%arg0: i32) -> (i32, i32, i32) {
    %c0_i32 = arith.constant 0 : i32
    %c0_i32_0 = arith.constant 0 : i32
    %c0_i32_1 = arith.constant 0 : i32
    return %arg0, %c0_i32, %c0_i32_0 : i32, i32, i32
  }
  func.func @transform_5(%arg0: i32) -> (i32, i32) {
    %c0_i32 = arith.constant 0 : i32
    %c0_i32_0 = arith.constant 0 : i32
    %c0_i32_1 = arith.constant 0 : i32
    return %c0_i32, %c0_i32_0 : i32, i32
  }
  func.func @transform_6(%arg0: i32) -> (i32, i32) {
    %c0_i32 = arith.constant 0 : i32
    %c0_i32_0 = arith.constant 0 : i32
    %c0_i32_1 = arith.constant 0 : i32
    return %c0_i32, %c0_i32_0 : i32, i32
  }
  func.func @transform_7(%arg0: i32) -> (i32, i32) {
    %c0_i32 = arith.constant 0 : i32
    %c0_i32_0 = arith.constant 0 : i32
    %c0_i32_1 = arith.constant 0 : i32
    return %c0_i32, %c0_i32_0 : i32, i32
  }
  func.func @transform_8(%arg0: i32) -> (i32, i32) {
    %c0_i32 = arith.constant 0 : i32
    %c0_i32_0 = arith.constant 0 : i32
    %c0_i32_1 = arith.constant 0 : i32
    return %c0_i32, %c0_i32_0 : i32, i32
  }
  func.func @transform_9(%arg0: i32) -> (i32, i32) {
    %c0_i32 = arith.constant 0 : i32
    %c0_i32_0 = arith.constant 0 : i32
    %c0_i32_1 = arith.constant 0 : i32
    return %c0_i32, %c0_i32_0 : i32, i32
  }
  func.func @transform_10(%arg0: i32) -> (i32, i32) {
    %c0_i32 = arith.constant 0 : i32
    %c0_i32_0 = arith.constant 0 : i32
    %c0_i32_1 = arith.constant 0 : i32
    return %c0_i32, %c0_i32_0 : i32, i32
  }
  func.func @transform_11(%arg0: i32) -> (i32, i32) {
    %c0_i32 = arith.constant 0 : i32
    %c0_i32_0 = arith.constant 0 : i32
    %c0_i32_1 = arith.constant 0 : i32
    return %c0_i32, %c0_i32_0 : i32, i32
  }
  func.func @transform_12(%arg0: i32) -> (i32, i32, i32) {
    %c0_i32 = arith.constant 0 : i32
    %c0_i32_0 = arith.constant 0 : i32
    %c0_i32_1 = arith.constant 0 : i32
    %c0_i32_2 = arith.constant 0 : i32
    return %c0_i32, %c0_i32_0, %c0_i32_1 : i32, i32, i32
  }
  func.func @transform_13(%arg0: i32) -> (i32, i32, i32, i32) {
    %c0_i32 = arith.constant 0 : i32
    %c0_i32_0 = arith.constant 0 : i32
    %c0_i32_1 = arith.constant 0 : i32
    %c0_i32_2 = arith.constant 0 : i32
    %c0_i32_3 = arith.constant 0 : i32
    return %c0_i32, %c0_i32_0, %c0_i32_1, %c0_i32_2 : i32, i32, i32, i32
  }
  func.func @transform_14(%arg0: i32) -> (i32, i32, i32, i32) {
    %c0_i32 = arith.constant 0 : i32
    %c0_i32_0 = arith.constant 0 : i32
    %c0_i32_1 = arith.constant 0 : i32
    %c0_i32_2 = arith.constant 0 : i32
    %c0_i32_3 = arith.constant 0 : i32
    return %c0_i32, %c0_i32_0, %c0_i32_1, %c0_i32_2 : i32, i32, i32, i32
  }
  func.func @transform_15(%arg0: i32) -> (i32, i32, i32) {
    %c0_i32 = arith.constant 0 : i32
    %c0_i32_0 = arith.constant 0 : i32
    %c0_i32_1 = arith.constant 0 : i32
    %c0_i32_2 = arith.constant 0 : i32
    return %c0_i32, %c0_i32_0, %c0_i32_1 : i32, i32, i32
  }
  func.func @transform_16(%arg0: i32) -> (i32, i32, i32) {
    %c0_i32 = arith.constant 0 : i32
    %c0_i32_0 = arith.constant 0 : i32
    %c0_i32_1 = arith.constant 0 : i32
    %c0_i32_2 = arith.constant 0 : i32
    return %c0_i32, %c0_i32_0, %c0_i32_1 : i32, i32, i32
  }
  func.func @transform_17(%arg0: i32) -> (i32, i32, i32) {
    %c0_i32 = arith.constant 0 : i32
    %c0_i32_0 = arith.constant 0 : i32
    %c0_i32_1 = arith.constant 0 : i32
    %c0_i32_2 = arith.constant 0 : i32
    return %c0_i32, %c0_i32_0, %c0_i32_1 : i32, i32, i32
  }
  func.func @transform_18(%arg0: i32) -> (i32, i32, i32) {
    %c0_i32 = arith.constant 0 : i32
    %c0_i32_0 = arith.constant 0 : i32
    %c0_i32_1 = arith.constant 0 : i32
    %c0_i32_2 = arith.constant 0 : i32
    return %c0_i32, %c0_i32_0, %c0_i32_1 : i32, i32, i32
  }
  func.func @transform_19(%arg0: i32) -> (i32, i32, i32) {
    %c0_i32 = arith.constant 0 : i32
    %c0_i32_0 = arith.constant 0 : i32
    %c0_i32_1 = arith.constant 0 : i32
    %c0_i32_2 = arith.constant 0 : i32
    return %c0_i32, %c0_i32_0, %c0_i32_1 : i32, i32, i32
  }
  func.func @transform_20(%arg0: i32) -> (i32, i32, i32) {
    %c0_i32 = arith.constant 0 : i32
    %c0_i32_0 = arith.constant 0 : i32
    %c0_i32_1 = arith.constant 0 : i32
    %c0_i32_2 = arith.constant 0 : i32
    return %c0_i32, %c0_i32_0, %c0_i32_1 : i32, i32, i32
  }
  func.func @transform_21(%arg0: i32) -> (i32, i32, i32) {
    %c0_i32 = arith.constant 0 : i32
    %c0_i32_0 = arith.constant 0 : i32
    %c0_i32_1 = arith.constant 0 : i32
    %c0_i32_2 = arith.constant 0 : i32
    return %c0_i32, %c0_i32_0, %c0_i32_1 : i32, i32, i32
  }
  func.func @transform_22(%arg0: i32) -> (i32, i32, i32) {
    %c0_i32 = arith.constant 0 : i32
    %c0_i32_0 = arith.constant 0 : i32
    %c0_i32_1 = arith.constant 0 : i32
    %c0_i32_2 = arith.constant 0 : i32
    return %c0_i32, %c0_i32_0, %c0_i32_1 : i32, i32, i32
  }
  func.func @transform_23(%arg0: i32) -> (i32, i32, i32) {
    %c0_i32 = arith.constant 0 : i32
    %c0_i32_0 = arith.constant 0 : i32
    %c0_i32_1 = arith.constant 0 : i32
    %c0_i32_2 = arith.constant 0 : i32
    return %c0_i32, %c0_i32_0, %c0_i32_1 : i32, i32, i32
  }
  func.func @transform_24(%arg0: i32) -> (i32, i32, i32) {
    %c0_i32 = arith.constant 0 : i32
    %c0_i32_0 = arith.constant 0 : i32
    %c0_i32_1 = arith.constant 0 : i32
    %c0_i32_2 = arith.constant 0 : i32
    return %c0_i32, %c0_i32_0, %c0_i32_1 : i32, i32, i32
  }
  func.func @transform_25(%arg0: i32) -> (i32, i32) {
    %c0_i32 = arith.constant 0 : i32
    %c0_i32_0 = arith.constant 0 : i32
    %c0_i32_1 = arith.constant 0 : i32
    return %c0_i32, %c0_i32_0 : i32, i32
  }
  func.func @transform_26(%arg0: i32) -> (i32, i32) {
    %c0_i32 = arith.constant 0 : i32
    %c0_i32_0 = arith.constant 0 : i32
    %c0_i32_1 = arith.constant 0 : i32
    return %c0_i32, %c0_i32_0 : i32, i32
  }
  func.func @transform_27(%arg0: i32) -> (i32, i32, i32) {
    %c0_i32 = arith.constant 0 : i32
    %c0_i32_0 = arith.constant 0 : i32
    %c0_i32_1 = arith.constant 0 : i32
    return %arg0, %c0_i32, %c0_i32_0 : i32, i32, i32
  }
}

</mosaic_0001>

<bundles_post_ra>
// kernel: tpu_custom_call.1
= control target key start
LH: loop header
LB: loop body
LE: loop exit
PB: predicated region body
PF: predicated region fallthrough
CT: control target
= control target key end

     0   :  { %s4949_s0 = inlined_call_operand.vmem [shape: s32[2,8,1], index: 0, kind: input, shape index: {}]   ;;  %s4950_s1 = inlined_call_operand.vmem [shape: f32[2,8,4], index: 1, kind: input, shape index: {}]   ;;  %s4951_s2 = inlined_call_operand.vmem [shape: f32[2,6,8,8], index: 2, kind: input, shape index: {}]   ;;  %s4952_s3 = inlined_call_operand.vmem [shape: f32[2,1,8], index: 3, kind: input, shape index: {}]   ;;  %s4953_s4 = inlined_call_operand.vmem [shape: f32[2,8,1], index: 4, kind: input, shape index: {}]   ;;  %s4954_s5 = inlined_call_operand.vmem [shape: f32[8,32], index: 5, kind: input, shape index: {}]   ;;  %s4955_s6 = inlined_call_operand.vmem [shape: f32[4,32], index: 6, kind: input, shape index: {}]   ;;  %s4956_s7 = inlined_call_operand.hbm [shape: f32[1,32], index: 7, kind: input, shape index: {}]   ;;  %s4957_s8 = inlined_call_operand.vmem [shape: f32[32,32], index: 8, kind: input, shape index: {}]   ;;  %s4958_s9 = inlined_call_operand.hbm [shape: f32[1,32], index: 9, kind: input, shape index: {}]   ;;  %s4959_s10 = inlined_call_operand.vmem [shape: f32[1,32], index: 10, kind: input, shape index: {}]   ;;  %s4960_s11 = inlined_call_operand.hbm [shape: f32[1,32], index: 11, kind: input, shape index: {}]   ;;  %s4961_s12 = inlined_call_operand.vmem [shape: f32[2,32,112], index: 12, kind: input, shape index: {}]   ;;  %s4962_s13 = inlined_call_operand.hbm [shape: f32[2,4,4,6], index: 13, kind: input, shape index: {}]   ;;  %s4963_s14 = inlined_call_operand.vmem [shape: f32[2,4,6,8], index: 14, kind: input, shape index: {}]   ;;  %s4964_s15 = inlined_call_operand.vmem [shape: f32[2,32,32], index: 15, kind: input, shape index: {}]   ;;  %s4965_s16 = inlined_call_operand.vmem [shape: f32[2,1,32], index: 16, kind: input, shape index: {}]   ;;  %s4966_s17 = inlined_call_operand.vmem [shape: f32[2,1,32], index: 17, kind: input, shape index: {}]   ;;  %s4967_s18 = inlined_call_operand.vmem [shape: f32[2,1,32], index: 18, kind: input, shape index: {}]   ;;  %s4968_s19 = inlined_call_operand.hbm [shape: f32[2,32,64], index: 19, kind: input, shape index: {}]   ;;  %s4969_s20 = inlined_call_operand.vmem [shape: f32[2,1,64], index: 20, kind: input, shape index: {}]   ;;  %s4970_s21 = inlined_call_operand.vmem [shape: f32[2,64,32], index: 21, kind: input, shape index: {}]   ;;  %s4971_s22 = inlined_call_operand.vmem [shape: f32[2,1,32], index: 22, kind: input, shape index: {}]   ;;  %s4972_s23 = inlined_call_operand.vmem [shape: f32[2,1,32], index: 23, kind: input, shape index: {}]   ;;  %s4973_s24 = inlined_call_operand.vmem [shape: f32[2,1,32], index: 24, kind: input, shape index: {}]   ;;  %s4974_s25 = inlined_call_operand.vmem [shape: f32[32,4], index: 25, kind: input, shape index: {}]   ;;  %s4975_s26 = inlined_call_operand.vmem [shape: f32[1,4], index: 26, kind: input, shape index: {}]   ;;  %s4976_s27 = inlined_call_operand.hbm [shape: f32[2,1,4], index: 27, kind: output, shape index: {}]  }
   0x1   :  { %5000 = sst [smem:[#allocation24_spill]] %s4949_s0 }
   0x2   :  { %5001 = sst [smem:[#allocation25_spill]] %s4950_s1 }
   0x3   :  { %5002 = sst [smem:[#allocation26_spill]] %s4951_s2 }
   0x4   :  { %5003 = sst [smem:[#allocation27_spill]] %s4952_s3 }
   0x5   :  { %5004 = sst [smem:[#allocation28_spill]] %s4953_s4 }
   0x6   :  { %5005 = sst [smem:[#allocation29_spill]] %s4954_s5 }
   0x7   :  { %5006 = sst [smem:[#allocation30_spill]] %s4955_s6 }
   0x8   :  { %5007 = sst [smem:[#allocation31_spill]] %s4956_s7 }
   0x9   :  { %5008 = sst [smem:[#allocation32_spill]] %s4957_s8 }
   0xa   :  { %5009 = sst [smem:[#allocation33_spill]] %s4958_s9 }
   0xb   :  { %5010 = sst [smem:[#allocation34_spill]] %s4959_s10 }
   0xc   :  { %5011 = sst [smem:[#allocation35_spill]] %s4960_s11 }
   0xd   :  { %5012 = sst [smem:[#allocation36_spill]] %s4962_s13 }
   0xe   :  { %5013 = sst [smem:[#allocation37_spill]] %s4973_s24 }
   0xf   :  { %5014 = sst [smem:[#allocation38_spill]] %s4974_s25 }
  0x10   :  { %5015 = sst [smem:[#allocation39_spill]] %s4975_s26 }
  0x11   :  { %5016 = sst [smem:[#allocation40_spill]] %s4976_s27 }
  0x12   :  { %32 = vsyncpa [#allocation3], 0 }
  0x13   :  { %33 = vsyncpa [#allocation6], 0 }
  0x14   :  { %34 = vsyncpa [#allocation9], 0 }
  0x15   :  { %35 = vsyncpa [#allocation4], 0 }
  0x16   :  { %37 = vsyncpa [#allocation4 + $0x1], 0  ;;  %s4117_s7 = smov 0   ;;  %s4119_s4 = smov 0  }
  0x17   :  { %s4121_s8 = smov 0   ;;  %s4123_s30 = smov 0  }
  0x18 LB: > { %5017 = sst [smem:[#allocation16_spill]] %s3928_s7  ;;  %s4138_s9 = sadd.s32 4294967295, %s3940_s30   ;;  %s3940_s30 = sphi %s4123_s30, %s5061_s30   ;;  %s3936_s8 = sphi %s4121_s8, %s5064_s8   ;;  %s3932_s4 = sphi %s4119_s4, %s5063_s4   ;;  %s3928_s7 = sphi %s4117_s7, %s5062_s7  }
  0x19   : > { %5018 = sst [smem:[#allocation17_spill]] %s3932_s4  ;;  %s3356_s5 = sadd.s32 4294967294, %s3940_s30  }
  0x1a   : > { %5019 = sst [smem:[#allocation18_spill]] %s3936_s8  ;;  %s4142_s28 = sadd.s32 1, %s3940_s30  }
  0x1b   : > { %5020 = sst [smem:[#allocation19_spill]] %s3940_s30  ;;  %s642_s0 = sadd.s32 1, %s3936_s8 }
  0x1c   : > { %5021 = sst [smem:[#allocation20_spill]] %s4142_s28  ;;  %s639_s10 = ssub.s32 %s3940_s30, %s4142_s28 }
  0x1d   : > { %p652_p0 = scmp.ne.s32.totalorder %s3936_s8, %s3932_s4  ;;  %p640_p1 = scmp.eq.s32.totalorder %s639_s10, 0 }
  0x1e   : > { %p653_p2 = scmp.eq.s32.totalorder %s4138_s9, 1  ;;  %p658_p3 = scmp.ne.s32.totalorder %s3932_s4, %s3928_s7 }
  0x1f   : > { %p659_p4 = scmp.eq.s32.totalorder %s3356_s5, 1  ;;  %p3357_p7 = scmp.ge.s32.totalorder %s3940_s30, 1 }
  0x20   : > { %s4153_s29 = scalar_select %p640_p1, %s3936_s8, %s642_s0  }
  0x21   : > { %p4155_p5 = por %p653_p2, %p652_p0  ;;  %p4159_p6 = por %p659_p4, %p658_p3 }
  0x22   : > { %5022 = sst [smem:[#allocation21_spill]] %s4153_s29  ;;  %p666_p8 = scmp.lt.s32.totalorder %s3940_s30, 3 }
  0x23   : > { %s5023_s1 = scalar_select %p4155_p5, 1, 0 }
  0x24   : > { %s5025_s6 = scalar_select %p4159_p6, 1, 0 }
  0x25   : > { %5024 = sst [smem:[#allocation22_spill]] %s5023_s1  ;;  %p3510_p9 = scmp.eq.s32.totalorder %s4138_s9, 0 }
  0x26   : > { %5026 = sst [smem:[#allocation23_spill]] %s5025_s6  ;;  %p4166_p10 = pnand %p3357_p7, %p666_p8 }
  0x27   : > { %s5028_s5 = sld [smem:[#allocation33_spill]]  ;;  %s3942_s10 = smov [#allocation5]  }
  0x28   : > { %p3490_p11 = pneg %p4166_p10  ;;  %s701_s29 = sshll.u32 %s3942_s10, 4  ;;  %s702_s29 = int_to_ptr.vmem [resolvable:$true] %s701_s29 }
  0x29   : > { %s5029_s13 = sld [smem:[#allocation36_spill]]  ;;  %s3943_s2 = smov [#allocation8]  }
  0x2a   : > { %p4180_p12 = pnand %p3510_p9, %p3490_p11  ;;  %s730_s3 = sshll.u32 %s3943_s2, 4  ;;  %s731_s3 = int_to_ptr.vmem [resolvable:$true] %s730_s3 }
  0x2b   : > { %s3945_s10 = smov 4   ;;  %s3946_s1 = smov [#allocation2]  }
  0x2c   : > { %s686_s26 = sshll.u32 %s3946_s1, 4  ;;  %s5032_s2 = sld [smem:[#allocation35_spill]]  ;;  %s687_s26 = int_to_ptr.vmem [resolvable:$true] %s686_s26 }
  0x2d   : > { %s699_s0 = sshll.u32 %s5028_s5, 4  ;;  %s3944_s5 = smov 64   ;;  %s700_s0 = int_to_ptr.hbm [resolvable:$true] %s699_s0 }
  0x2e   : > { %3496 = dma.hbm_to_vmem [thread:$0]  (!%p4180_p12), %s700_s0, 16, %s702_s29, [#allocation6]  }
  0x2f   : > { %s728_s6 = sshll.u32 %s5029_s13, 4  ;;  %s5031_s13 = sld [smem:[#allocation31_spill]]  ;;  %s729_s6 = int_to_ptr.hbm [resolvable:$true] %s728_s6 }
  0x30   : > { %3502 = dma.hbm_to_vmem [thread:$0]  (!%p4180_p12), %s729_s6, 512, %s731_s3, [#allocation9], %s3944_s5, %s3944_s5, %s3945_s10  }
  0x31   : > { %s3947_s29 = smov [#allocation7]   ;;  %s757_s3 = sshll.u32 %s4968_s19, 4  ;;  %s758_s3 = int_to_ptr.hbm [resolvable:$true] %s757_s3 }
  0x32   : > { %s714_s25 = sshll.u32 %s5032_s2, 4  ;;  %s716_s0 = sshll.u32 %s3947_s29, 4  ;;  %s715_s25 = int_to_ptr.hbm [resolvable:$true] %s714_s25  ;;  %s717_s0 = int_to_ptr.vmem [resolvable:$true] %s716_s0 }
  0x33   : > { %3499 = dma.hbm_to_vmem [thread:$0]  (!%p4180_p12), %s715_s25, 16, %s717_s0, [#allocation6]  }
  0x34   : > { %s3949_s5 = smov 128   ;;  %s3950_s10 = smov 8  }
  0x35   : > { %s684_s30 = sshll.u32 %s5031_s13, 4  ;;  %s3948_s13 = smov [#allocation10]   ;;  %s685_s30 = int_to_ptr.hbm [resolvable:$true] %s684_s30 }
  0x36   : > { %3493 = dma.hbm_to_vmem [thread:$0]  (!%p4180_p12), %s685_s30, 16, %s687_s26, [#allocation3]  }
  0x37   : > { %s759_s1 = sshll.u32 %s3948_s13, 4  ;;  %831 = sbr.rel (%p4166_p10) target bundleno = 5956 (0x1744), region = 128  ;;  %s760_s1 = int_to_ptr.vmem [resolvable:$true] %s759_s1 }
  0x38   : > { %3505 = dma.hbm_to_vmem [thread:$0]  (!%p4180_p12), %s758_s3, 1024, %s760_s1, [#allocation9], %s3949_s5, %s3949_s5, %s3950_s10  }
  0x3c   : > { %3911 = dma.done.wait (%p3510_p9), [#allocation3], 16  }
  0x3d   : > { %3913 = vsyncadd (%p3510_p9), [#allocation3], 4294967280 }
  0x3e   : > { %3915 = dma.done.wait (%p3510_p9), [#allocation6], 32  }
  0x3f   : > { %3917 = vsyncadd (%p3510_p9), [#allocation6], 4294967264 }
  0x40   : > { %3919 = dma.done.wait (%p3510_p9), [#allocation9], 1536  }
  0x41   : > { %3921 = vsyncadd (%p3510_p9), [#allocation9], 4294965760  ;;  %p938_p13 = scmp.lt.s32.totalorder %s4138_s9, 1  ;;  %v3951_v0 = vmov 0   ;;  %vm978_vm0 = vcmask 1043456   ;;  %s5033_s7 = sld [smem:[#allocation25_spill]]  ;;  %v959_v9 = vlaneseq }
  0x42   : > { %3588 = vset.pattern.permute.xlu0 %v3951_v0  ;;  %3589 = vset.pattern.permute.xlu2 %v3951_v0  ;;  %vm974_vm1 = vcmask 31744   ;;  %s5034_s8 = sld [smem:[#allocation30_spill]]  ;;  %vm1035_vm2 = vcmask 64512   ;;  %v3952_v12 = vmov 0.0   ;;  %v3634_v14 = vld [vmem:[#allocation2] ss:$0 sm:$0xff] }
  0x43   : > { %s4221_s24 = scalar_select %p938_p13, %s4138_s9, 1  ;;  %v960_v10 = vand.u32 127, %v959_v9  ;;  %vm1011_vm4 = vcmask 261120   ;;  %v3635_v18 = vld [vmem:[#allocation5] ss:$0 sm:$0xff]  ;;  %v3953_v24 = vmov 32.0  }
  0x44   : > { %s5035_s29 = sld [smem:[#allocation24_spill]]  ;;  %v1131_v36 = vld [vmem:[%s4961_s12 + $0x18] sm:$0xff]  ;;  %v1130_v37 = vld [vmem:[%s4961_s12 + $0x10] sm:$0xff]  ;;  %v1129_v38 = vld [vmem:[%s4961_s12 + $0x8] sm:$0xff]  ;;  %s3957_s30 = smov 100  }
  0x45   : > { %s4224_s25 = sshll.u32 %s4221_s24, 3  ;;  %s5036_s13 = sld [smem:[#allocation32_spill]]  ;;  %v1128_v39 = vld [vmem:[%s4961_s12] sm:$0xff] }
  0x46   : > { %s5037_s27 = sld [smem:[#allocation29_spill]]  ;;  %s3958_s11 = smov 120  }
  0x47   : > { %s945_s4 = scalar_lea.vmem %s5033_s7, %s4224_s25  ;;  %s5038_s26 = sld [smem:[#allocation34_spill]] }
  0x48   : > { %v969_v1 = vld [vmem:[%s5034_s8] sm:$0xf]  ;;  %s3955_s7 = smov 76   ;;  %s3465_s8 = smul.u32 48, %s4221_s24 }
  0x49   : > { %v968_v2 = vld [vmem:[%s945_s4] sm:$0xff]  ;;  %3375 = vmatpush.msk.msra.mxu0 %vm978_vm0, %v969_v1  ;;  %s3956_s4 = smov 92   ;;  %s5040_s1 = sld [smem:[#allocation27_spill]] }
  0x4a   : > { %s941_s0 = scalar_lea.vmem %s5035_s29, %s4224_s25  ;;  %3376 = vmatmul.msk.f32.vlgmr.msra.gmra.mxu0 %vm974_vm1, %v968_v2  ;;  %v3637_v2 = vld [vmem:[#allocation7] ss:$0 sm:$0xff]  ;;  %s5039_s29 = sld [smem:[#allocation26_spill]] }
  0x4b   : > { %v958_v3 = vld [vmem:[%s941_s0] sm:$0xff]  ;;  %v1006_v4 = vld [vmem:[%s5036_s13 + $0x18] sm:$0xff]  ;;  %v1005_v5 = vld [vmem:[%s5036_s13 + $0x10] sm:$0xff]  ;;  %s4996_s10 = smov 48   ;;  %s4998_s28 = smov 36  }
  0x4c   : > { %962 = vperm.xlu0 %3588, %v958_v3   ;;  %1027 = vmatpush.msra.mxu1 %v1006_v4  ;;  %v967_v6 = vld [vmem:[%s5037_s27] sm:$0xff]  ;;  %v1004_v7 = vld [vmem:[%s5036_s13 + $0x8] sm:$0xff]  ;;  %s3954_s27 = smov 104   ;;  %s3969_s2 = smov 20  }
  0x4d   : > { %1054 = vmatpush.msra.mxu2 %v967_v6  ;;  %v1003_v8 = vld [vmem:[%s5036_s13] sm:$0xff]  ;;  %s4993_s6 = smov 44   ;;  %s4990_s3 = smov 28  }
  0x4e   : > { %1028 = vmatpush.msra.mxu1 %v1005_v5  ;;  %v3636_v62 = vld [vmem:[%s5038_s26] ss:$0 sm:$0xff]  ;;  %v1155_v5 = vld [vmem:[#allocation8] sm:$0xf]  ;;  %s3966_s26 = smov 72  }
  0x4f   : > { %1147 = vmatpush.msrb.mxu2 %v1131_v36  ;;  %3385 = vmatpush.msk.msrb.mxu0 %vm978_vm0, %v1155_v5  ;;  %s953_s5 = scalar_lea.vmem %s5040_s1, %s4221_s24  ;;  %s4999_s24 = smov 84  }
  0x50   : > { %1029 = vmatpush.msra.mxu1 %v1004_v7  ;;  %v1344_v7 = vld [vmem:[#allocation8 + $0x4] sm:$0xf]  ;;  %s4319_s0 = scalar_lea.vmem %s5039_s29, %s3465_s8  ;;  %s3967_s8 = smov 112  }
  0x51   : > { %1148 = vmatpush.msrb.mxu2 %v1130_v37  ;;  %3390 = vmatpush.msk.msra.mxu3 %vm978_vm0, %v1344_v7  ;;  %v4342_v37 = vld [vmem:[%s4319_s0 + $0x20] sm:$0xff]  ;;  %s4994_s29 = smov 64   ;;  %s4991_s1 = smov 56  }
  0x52   : > { %1030 = vmatpush.msra.mxu1 %v1003_v8 }
  0x53   : > { %1149 = vmatpush.msrb.mxu2 %v1129_v38 }
  0x55   : > { %1150 = vmatpush.msrb.mxu2 %v1128_v39 }
  0xbe   : > { %v963_v11 = vpop.permute.xlu0 %962 }
  0xbf   : > { %vm964_vm3 = vcmp.eq.s32.totalorder %v963_v11, %v960_v10 }
  0xc0   : > { %v3374_v13 = vsel %vm964_vm3, 1.0, %v3952_v12 }
  0xc1   : > { %3378 = vmatmul.msk.f32.vlgmr.msra.gmra.mxu2 %vm1035_vm2, %v3374_v13  ;;  %v3959_v13 = vmov 1  }
  0xc2   : > { %3590 = vset.pattern.permute.xlu1 %v3959_v13 }
  0xc7   : > { %v999_v15 = vpop.f32.mrf.mxu0 }
  0xc8   : > { %v1000_v16 = vadd.f32 %v3634_v14, %v999_v15  ;;  %v3960_v15 = vmov 5  }
  0xca   : > { %3652 = vtanh.f32 %v1000_v16 }
  0xcb   : > { %3654 = vrcp.f32 %v3953_v24 }
  0xd0   : > { %v3653_v17 = vpop.eup %3652 }
  0xd1   : > { %3377 = vmatmul.msk.f32.vlgmr.msra.gmra.mxu1 %vm1011_vm4, %v3653_v17  ;;  %v3655_v25 = vpop.eup %3654  ;;  %v3961_v17 = vmov 3  }
  0xd2   : > { %v1065_v26 = vmul.f32 32.0, %v3655_v25  ;;  %vm1069_vm5 = vweird.f32 %v3655_v25 }
  0xd4   : > { %v1066_v27 = vsub.f32 1.0, %v1065_v26 }
  0xd6   : > { %v1067_v28 = vmul.f32 %v3655_v25, %v1066_v27  ;;  %v4330_v27 = vld [vmem:[%s4319_s0 + $0x10] sm:$0xff] }
  0xd8   : > { %v1068_v29 = vadd.f32 %v3655_v25, %v1067_v28  ;;  %v4333_v28 = vld [vmem:[%s4319_s0 + $0x18] sm:$0xff] }
  0xda   : > { %v4257_v30 = vsel %vm1069_vm5, %v3655_v25, %v1068_v29  ;;  %v4326_v25 = vld [vmem:[%s4319_s0] sm:$0xff] }
 0x144   : > { %v1056_v20 = vpop.f32.mrf.mxu2 }
 0x14e   : > { %v1032_v19 = vpop.f32.mrf.mxu1 }
 0x14f   : > { %v1033_v21 = vadd.f32 %v3635_v18, %v1032_v19  ;;  %v3962_v18 = vmov 2   ;;  %v3963_v19 = vmov 4  }
 0x151   : > { %v1057_v22 = vadd.f32 %v1056_v20, %v1033_v21 }
 0x153   : > { %v1061_v23 = vsel %vm1011_vm4, %v1057_v22, 0.0 }
 0x154   : > { %1062 = vadd.xlane.f32.xlu0 %v1061_v23 }
 0x1c7   : > { %v1063_v31 = vpop.xlane.xlu0 %1062 }
 0x1c8   : > { %v1071_v32 = vmul.f32 %v4257_v30, %v1063_v31 }
 0x1ca   : > { %v1072_v33 = vsub.f32 %v1057_v22, %v1071_v32  ;;  %v4322_v22 = vld [vmem:[%s4319_s0 + $0x8] sm:$0xff] }
 0x1cc   : > { %v1073_v34 = vmul.f32 %v1072_v33, %v1072_v33 }
 0x1ce   : > { %v1074_v35 = vsel %vm1011_vm4, %v1073_v34, 0.0  ;;  %v1114_v34 = vld [vmem:[%s953_s5] sm:$0x1]  ;;  %s5053_s5 = sld [smem:[#allocation38_spill]] }
 0x1cf   : > { %1075 = vadd.xlane.f32.xlu1 %v1074_v35  ;;  %v1115_v38 = vsub.f32 1.0, %v1114_v34 }
 0x242   : > { %v1076_v40 = vpop.xlane.xlu1 %1075 }
 0x243   : > { %v1077_v41 = vmul.f32 %v1076_v40, %v4257_v30 }
 0x245   : > { %v1078_v42 = vadd.f32 1e-12, %v1077_v41  ;;  %v4346_v41 = vld [vmem:[%s4319_s0 + $0x28] sm:$0xff] }
 0x247   : > { %3656 = vrsqrt.f32 %v1078_v42  ;;  %vm1086_vm6 = vcmp.eq.f32.partialorder %v1078_v42, inf  ;;  %v1089_v50 = vand.u32 2147483648, %v1078_v42  ;;  %vm1088_vm7 = vcmp.eq.f32.partialorder %v1078_v42, 0.0 }
 0x24d   : > { %v3657_v43 = vpop.eup %3656 }
 0x24e   : > { %v1080_v44 = vmul.f32 %v3657_v43, %v1078_v42 }
 0x250   : > { %v1081_v45 = vmul.f32 %v3657_v43, %v1080_v44 }
 0x252   : > { %v1082_v46 = vmul.f32 0.5, %v1081_v45 }
 0x254   : > { %v1083_v47 = vsub.f32 1.5, %v1082_v46 }
 0x256   : > { %v1084_v48 = vmul.f32 %v3657_v43, %v1083_v47  ;;  %v1116_v43 = vmul.f32 -10000.0, %v1115_v38 }
 0x258   : > { %v1085_v49 = vmul.f32 %v1084_v48, %v1078_v42 }
 0x25a   : > { %v1087_v51 = vsel %vm1086_vm6, %v1078_v42, %v1085_v49  ;;  %v4349_v49 = vperm.slane %v1116_v43, 0 }
 0x25b   : > { %v1090_v52 = vsel %vm1088_vm7, %v1089_v50, %v1087_v51 }
 0x25c   : > { %3658 = vrcp.f32 %v1090_v52  ;;  %v1102_v56 = vand.u32 2147483648, %v1090_v52  ;;  %v1100_v58 = vand.u32 2147483647, %v1090_v52  ;;  %vm1096_vm9 = vweird.f32 %v1090_v52 }
 0x25e   : > { %v1103_v60 = vor.u32 1.1754944e-38, %v1102_v56  ;;  %vm1101_vm11 = vcmp.eq.f32.partialorder %v1100_v58, 8.507059e+37 }
 0x262   : > { %v3659_v53 = vpop.eup %3658 }
 0x263   : > { %v1092_v54 = vmul.f32 %v3659_v53, %v1090_v52  ;;  %vm1097_vm8 = vweird.f32 %v3659_v53 }
 0x264   : > { %vm1098_vm10 = vmor %vm1096_vm9, %vm1097_vm8 }
 0x265   : > { %v1093_v55 = vsub.f32 1.0, %v1092_v54 }
 0x267   : > { %v1094_v57 = vmul.f32 %v3659_v53, %v1093_v55 }
 0x269   : > { %v1095_v59 = vadd.f32 %v3659_v53, %v1094_v57 }
 0x26b   : > { %v1099_v61 = vsel %vm1098_vm10, %v3659_v53, %v1095_v59 }
 0x26c   : > { %v1104_v63 = vsel %vm1101_vm11, %v1103_v60, %v1099_v61 }
 0x26d   : > { %v1105_v1 = vmul.f32 %v1104_v63, %v1072_v33 }
 0x26f   : > { %v1109_v3 = vmul.f32 %v3636_v62, %v1105_v1 }
 0x271   : > { %v4277_v4 = vadd.f32 %v3637_v2, %v1109_v3 }
 0x273   : > { %3384 = vmatmul.msk.f32.vlgmr.msrb.gmra.mxu2 %vm1011_vm4, %v4277_v4 }
 0x2f6   : > { %v4282_v6 = vpop.f32.mrf.mxu2 }
 0x2f7   : > { %1157 = vrot.lane.b32.xlu2 %v4282_v6, %s3954_s27  ;;  %1345 = vrot.lane.b32.xlu1 %v4282_v6, %s3955_s7 }
 0x2ff   : > { %1410 = vrot.lane.b32.xlu2 %v4282_v6, %s3956_s4 }
 0x307   : > { %1408 = vrot.lane.b32.xlu2 %v4282_v6, %s3957_s30 }
 0x30f   : > { %1220 = vrot.lane.b32.xlu2 %v4282_v6, %s3958_s11 }
 0x351   : > { %v1158_v8 = vpop.permute.xlu2 %1157 }
 0x352   : > { %3386 = vmatmul.msk.f32.vlgmr.msrb.gmra.mxu0 %vm974_vm1, %v1158_v8 }
 0x359   : > { %v1411_v9 = vpop.permute.xlu2 %1410 }
 0x35a   : > { %3392 = vmatpush.xpose.msk.msra.mxu0 %vm1035_vm2, %v1411_v9 }
 0x361   : > { %v1409_v10 = vpop.permute.xlu2 %1408 }
 0x362   : > { %3393 = vmatmul.msk.f32.vlgmr.msra.gmra.mxu0 %vm1035_vm2, %v1409_v10 }
 0x369   : > { %v1221_v11 = vpop.permute.xlu2 %1220  ;;  %v1346_v12 = vpop.permute.xlu1 %1345 }
 0x36a   : > { %3387 = vmatpush.xpose.msk.msra.mxu2 %vm1035_vm2, %v1221_v11  ;;  %3391 = vmatmul.msk.f32.vlgmr.msra.gmra.mxu3 %vm974_vm1, %v1346_v12 }
 0x36d   : > { %3388 = vmatmul.msk.f32.vlgmr.msra.gmra.mxu2 %vm1035_vm2, %v4282_v6 }
 0x3cf   : > { %v1181_v14 = vpop.f32.mrf.mxu0 }
 0x3d0   : > { %1186 = vperm.xlu0 %3588, %v1181_v14  }
 0x3d8   : > { %3599 = vset.pattern.permute.xlu0 %v3960_v15 }
 0x3d9   : > { %1215 = vperm.xlu0 %3599, %v1181_v14  }
 0x3df   : > { %v1433_v47 = vpop.f32.mrf.mxu0 }
 0x3e1   : > { %3601 = vset.pattern.permute.xlu0 %v3959_v13 }
 0x3ed   : > { %v1369_v16 = vpop.f32.mrf.mxu3 }
 0x3ee   : > { %1379 = vperm.xlu1 %3590, %v1369_v16   ;;  %1374 = vperm.xlu2 %3589, %v1369_v16  }
 0x3f0   : > { %v1243_v9 = vpop.f32.mrf.mxu2 }
 0x3f6   : > { %3592 = vset.pattern.permute.xlu1 %v3961_v17  ;;  %3591 = vset.pattern.permute.xlu2 %v3962_v18 }
 0x3f7   : > { %1391 = vperm.xlu1 %3592, %v1369_v16   ;;  %1385 = vperm.xlu2 %3591, %v1369_v16  }
 0x3ff   : > { %3595 = vset.pattern.permute.xlu1 %v3960_v15  ;;  %3593 = vset.pattern.permute.xlu2 %v3963_v19 }
 0x400   : > { %1403 = vperm.xlu1 %3595, %v1369_v16   ;;  %1397 = vperm.xlu2 %3593, %v1369_v16  }
 0x408   : > { %3596 = vset.pattern.permute.xlu1 %v3962_v18  ;;  %3594 = vset.pattern.permute.xlu2 %v3959_v13 }
 0x409   : > { %1197 = vperm.xlu1 %3596, %v1181_v14   ;;  %1191 = vperm.xlu2 %3594, %v1181_v14  }
 0x411   : > { %3598 = vset.pattern.permute.xlu1 %v3963_v19  ;;  %3597 = vset.pattern.permute.xlu2 %v3961_v17 }
 0x412   : > { %1209 = vperm.xlu1 %3598, %v1181_v14   ;;  %1203 = vperm.xlu2 %3597, %v1181_v14  }
 0x41a   : > { %3604 = vset.pattern.permute.xlu1 %v3959_v13  ;;  %3600 = vset.pattern.permute.xlu2 %v3951_v0 }
 0x442   : > { %v1187_v52 = vpop.permute.xlu0 %1186 }
 0x443   : > { %v1189_v56 = vmul.f32 %v1187_v52, %v4326_v25 }
 0x448   : > { %v1375_v20 = vpop.permute.xlu2 %1374 }
 0x449   : > { %v1377_v26 = vmul.f32 %v1375_v20, %v4326_v25 }
 0x44b   : > { %v1216_v63 = vpop.permute.xlu0 %1215 }
 0x44c   : > { %v1218_v5 = vmul.f32 %v4346_v41, %v1216_v63 }
 0x451   : > { %v1386_v23 = vpop.permute.xlu2 %1385 }
 0x452   : > { %v1388_v32 = vmul.f32 %v4330_v27, %v1386_v23 }
 0x45a   : > { %v1398_v35 = vpop.permute.xlu2 %1397 }
 0x45b   : > { %v1400_v40 = vmul.f32 %v4342_v37, %v1398_v35  ;;  %v1720_v35 = vld [vmem:[#allocation8 + $0xc] sm:$0xf] }
 0x460   : > { %v1380_v21 = vpop.permute.xlu1 %1379 }
 0x461   : > { %v1382_v24 = vmul.f32 %v4322_v22, %v1380_v21 }
 0x463   : > { %v1383_v29 = vadd.f32 %v1382_v24, %v1377_v26  ;;  %v1192_v48 = vpop.permute.xlu2 %1191 }
 0x464   : > { %v1194_v53 = vmul.f32 %v4322_v22, %v1192_v48 }
 0x465   : > { %v1389_v36 = vadd.f32 %v1388_v32, %v1383_v29 }
 0x466   : > { %v1195_v59 = vadd.f32 %v1194_v53, %v1189_v56 }
 0x469   : > { %v1392_v31 = vpop.permute.xlu1 %1391 }
 0x46a   : > { %v1394_v33 = vmul.f32 %v4333_v28, %v1392_v31 }
 0x46c   : > { %v1395_v39 = vadd.f32 %v1394_v33, %v1389_v36  ;;  %v1204_v60 = vpop.permute.xlu2 %1203 }
 0x46d   : > { %v1206_v62 = vmul.f32 %v4333_v28, %v1204_v60 }
 0x46e   : > { %v1401_v44 = vadd.f32 %v1400_v40, %v1395_v39 }
 0x472   : > { %v1404_v42 = vpop.permute.xlu1 %1403 }
 0x473   : > { %v1406_v45 = vmul.f32 %v4346_v41, %v1404_v42 }
 0x475   : > { %v1407_v46 = vadd.f32 %v1406_v45, %v1401_v44 }
 0x477   : > { %v1434_v50 = vadd.f32 %v1433_v47, %v1407_v46 }
 0x479   : > { %v1436_v51 = vmul.f32 0.28867513, %v1434_v50 }
 0x47b   : > { %v1198_v54 = vpop.permute.xlu1 %1197  ;;  %v1437_v55 = vadd.f32 %v1436_v51, %v4349_v49  ;;  %v1532_v51 = vld [vmem:[#allocation8 + $0x8] sm:$0xf] }
 0x47c   : > { %v1200_v57 = vmul.f32 %v4330_v27, %v1198_v54 }
 0x47d   : > { %v1438_v58 = vsel %vm1035_vm2, %v1437_v55, -inf }
 0x47e   : > { %1439 = vmax.xlane.f32.xlu2 %v1438_v58  ;;  %v1201_v61 = vadd.f32 %v1200_v57, %v1195_v59 }
 0x480   : > { %v1207_v2 = vadd.f32 %v1206_v62, %v1201_v61 }
 0x484   : > { %v1210_v1 = vpop.permute.xlu1 %1209 }
 0x485   : > { %v1212_v3 = vmul.f32 %v4342_v37, %v1210_v1 }
 0x487   : > { %v1213_v7 = vadd.f32 %v1212_v3, %v1207_v2 }
 0x489   : > { %v1219_v8 = vadd.f32 %v1218_v5, %v1213_v7 }
 0x48b   : > { %v1244_v10 = vadd.f32 %v1243_v9, %v1219_v8 }
 0x48d   : > { %v1246_v11 = vmul.f32 0.28867513, %v1244_v10 }
 0x48f   : > { %v1250_v12 = vadd.f32 %v4349_v49, %v1246_v11 }
 0x491   : > { %v1251_v14 = vsel %vm1035_vm2, %v1250_v12, -inf }
 0x492   : > { %1252 = vmax.xlane.f32.xlu1 %v1251_v14 }
 0x4ab   : > { %1470 = vrot.lane.b32.xlu1 %v4282_v6, %s4999_s24 }
 0x4b3   : > { %1533 = vrot.lane.b32.xlu1 %v4282_v6, %s4996_s10  ;;  %s5056_s10 = sld [smem:[#allocation39_spill]] }
 0x4bb   : > { %1596 = vrot.lane.b32.xlu1 %v4282_v6, %s3966_s26 }
 0x4f1   : > { %v1440_v16 = vpop.xlane.xlu2 %1439 }
 0x4f2   : > { %v1441_v20 = vsub.f32 %v1437_v55, %v1440_v16 }
 0x4f4   : > { %v1442_v21 = vmul.f32 1.442695, %v1441_v20 }
 0x4f6   : > { %3660 = vpow2.f32 %v1442_v21 }
 0x4fc   : > { %v3661_v23 = vpop.eup %3660 }
 0x4fd   : > { %v1444_v24 = vsel %vm1035_vm2, %v3661_v23, 0.0 }
 0x4fe   : > { %1445 = vadd.xlane.f32.xlu0 %v1444_v24 }
 0x505   : > { %v1253_v26 = vpop.xlane.xlu1 %1252 }
 0x506   : > { %v1254_v29 = vsub.f32 %v1250_v12, %v1253_v26 }
 0x508   : > { %v1255_v31 = vmul.f32 1.442695, %v1254_v29 }
 0x50a   : > { %3662 = vpow2.f32 %v1255_v31 }
 0x510   : > { %v3663_v32 = vpop.eup %3662 }
 0x511   : > { %v1257_v33 = vsel %vm1035_vm2, %v3663_v32, 0.0 }
 0x512   : > { %1258 = vadd.xlane.f32.xlu2 %v1257_v33  ;;  %1282 = vrot.lane.b32.xlu0 %v4282_v6, %s3967_s8 }
 0x51a   : > { %1786 = vrot.lane.b32.xlu0 %v4282_v6, %s4998_s28  ;;  %s5051_s28 = smov 24  }
 0x51d   : > { %v1471_v34 = vpop.permute.xlu1 %1470 }
 0x51e   : > { %1491 = vmatpush.msrb.mxu2 %v1471_v34 }
 0x520   : > { %3402 = vmatpush.msk.msra.mxu2 %vm978_vm0, %v1720_v35 }
 0x525   : > { %v1534_v57 = vpop.permute.xlu1 %1533 }
 0x52a   : > { %1721 = vrot.lane.b32.xlu2 %v4282_v6, %s3969_s2 }
 0x52d   : > { %v1597_v7 = vpop.permute.xlu1 %1596 }
 0x532   : > { %1598 = vrot.lane.b32.xlu2 %v4282_v6, %s4994_s29  ;;  %s4997_s29 = smov 24  }
 0x53a   : > { %1784 = vrot.lane.b32.xlu2 %v4282_v6, %s4993_s6 }
 0x571   : > { %v1446_v36 = vpop.xlane.xlu0 %1445 }
 0x572   : > { %3664 = vrcp.f32 %v1446_v36  ;;  %v1458_v42 = vand.u32 2147483648, %v1446_v36  ;;  %v1456_v44 = vand.u32 2147483647, %v1446_v36  ;;  %vm1452_vm13 = vweird.f32 %v1446_v36 }
 0x574   : > { %v1459_v46 = vor.u32 1.1754944e-38, %v1458_v42  ;;  %vm1457_vm15 = vcmp.eq.f32.partialorder %v1456_v44, 8.507059e+37 }
 0x578   : > { %v3665_v38 = vpop.eup %3664 }
 0x579   : > { %v1448_v39 = vmul.f32 %v3665_v38, %v1446_v36  ;;  %vm1453_vm12 = vweird.f32 %v3665_v38 }
 0x57a   : > { %vm1454_vm14 = vmor %vm1452_vm13, %vm1453_vm12 }
 0x57b   : > { %v1449_v40 = vsub.f32 1.0, %v1448_v39 }
 0x57d   : > { %v1450_v43 = vmul.f32 %v3665_v38, %v1449_v40 }
 0x57f   : > { %v1451_v45 = vadd.f32 %v3665_v38, %v1450_v43 }
 0x581   : > { %v1455_v47 = vsel %vm1454_vm14, %v3665_v38, %v1451_v45 }
 0x582   : > { %v1460_v48 = vsel %vm1457_vm15, %v1459_v46, %v1455_v47 }
 0x583   : > { %v4380_v50 = vmul.f32 %v3661_v23, %v1460_v48 }
 0x584   : > { %v1283_v52 = vpop.permute.xlu0 %1282 }
 0x585   : > { %1303 = vmatpush.msrb.mxu1 %v1283_v52  ;;  %3395 = vmatmul.msk.f32.vlgmr.msrb.gmra.mxu2 %vm1035_vm2, %v4380_v50  ;;  %v1259_v53 = vpop.xlane.xlu2 %1258 }
 0x586   : > { %3666 = vrcp.f32 %v1259_v53  ;;  %v1271_v59 = vand.u32 2147483648, %v1259_v53  ;;  %v1269_v61 = vand.u32 2147483647, %v1259_v53  ;;  %vm1265_vm5 = vweird.f32 %v1259_v53 }
 0x587   : > { %3396 = vmatpush.msk.msra.mxu1 %vm978_vm0, %v1532_v51 }
 0x588   : > { %v1272_v63 = vor.u32 1.1754944e-38, %v1271_v59  ;;  %vm1270_vm7 = vcmp.eq.f32.partialorder %v1269_v61, 8.507059e+37 }
 0x58c   : > { %v3667_v54 = vpop.eup %3666  ;;  %v1787_v8 = vpop.permute.xlu0 %1786 }
 0x58d   : > { %v1261_v55 = vmul.f32 %v3667_v54, %v1259_v53  ;;  %v1722_v56 = vpop.permute.xlu2 %1721  ;;  %vm1266_vm3 = vweird.f32 %v3667_v54 }
 0x58e   : > { %3403 = vmatmul.msk.f32.vlgmr.msra.gmra.mxu2 %vm974_vm1, %v1722_v56  ;;  %vm1267_vm6 = vmor %vm1265_vm5, %vm1266_vm3  ;;  %vm1920_vm3 = vcmask 130048   ;;  %vm1922_vm5 = vcmask 195584  }
 0x58f   : > { %v1262_v58 = vsub.f32 1.0, %v1261_v55 }
 0x591   : > { %v1263_v60 = vmul.f32 %v3667_v54, %v1262_v58 }
 0x593   : > { %v1264_v62 = vadd.f32 %v3667_v54, %v1263_v60 }
 0x595   : > { %v1268_v1 = vsel %vm1267_vm6, %v3667_v54, %v1264_v62  ;;  %v1599_v2 = vpop.permute.xlu2 %1598 }
 0x596   : > { %v1273_v3 = vsel %vm1270_vm7, %v1272_v63, %v1268_v1  ;;  %3398 = vmatpush.xpose.msk.msrb.mxu3 %vm1035_vm2, %v1599_v2 }
 0x597   : > { %v4387_v5 = vmul.f32 %v3663_v32, %v1273_v3 }
 0x599   : > { %3389 = vmatmul.msk.f32.vlgmr.msrb.gmra.mxu1 %vm1035_vm2, %v4387_v5  ;;  %3399 = vmatmul.msk.f32.vlgmr.msrb.gmra.mxu3 %vm1035_vm2, %v1597_v7 }
 0x59a   : > { %3404 = vmatpush.xpose.msk.msrb.mxu1 %vm1035_vm2, %v1787_v8 }
 0x59d   : > { %v1785_v9 = vpop.permute.xlu2 %1784 }
 0x5a1   : > { %3397 = vmatmul.msk.f32.vlgmr.msra.gmra.mxu1 %vm974_vm1, %v1534_v57 }
 0x5a9   : > { %3405 = vmatmul.msk.f32.vlgmr.msrb.gmra.mxu1 %vm1035_vm2, %v1785_v9 }
 0x608   : > { %v4395_v10 = vpop.f32.mrf.mxu2 }
 0x611   : > { %v1745_v11 = vpop.f32.mrf.mxu2 }
 0x612   : > { %1755 = vperm.xlu1 %3604, %v1745_v11  }
 0x616   : > { %v4397_v12 = vpop.f32.mrf.mxu1 }
 0x61a   : > { %3607 = vset.pattern.permute.xlu1 %v3961_v17 }
 0x61b   : > { %1767 = vperm.xlu1 %3607, %v1745_v11  }
 0x61c   : > { %v1621_v2 = vpop.f32.mrf.mxu3 }
 0x61e   : > { %v1557_v14 = vpop.f32.mrf.mxu1 }
 0x61f   : > { %1567 = vperm.xlu0 %3601, %v1557_v14   ;;  %1562 = vperm.xlu2 %3600, %v1557_v14  }
 0x623   : > { %3608 = vset.pattern.permute.xlu1 %v3963_v19 }
 0x624   : > { %1773 = vperm.xlu1 %3608, %v1745_v11  }
 0x626   : > { %v1809_v57 = vpop.f32.mrf.mxu1 }
 0x627   : > { %3603 = vset.pattern.permute.xlu0 %v3951_v0  ;;  %3602 = vset.pattern.permute.xlu2 %v3962_v18 }
 0x628   : > { %1573 = vperm.xlu2 %3602, %v1557_v14   ;;  %1750 = vperm.xlu0 %3603, %v1745_v11  }
 0x62c   : > { %3609 = vset.pattern.permute.xlu1 %v3960_v15 }
 0x62d   : > { %1779 = vperm.xlu1 %3609, %v1745_v11  }
 0x630   : > { %1761 = vperm.xlu2 %3602, %v1745_v11   ;;  %3606 = vset.pattern.permute.xlu0 %v3963_v19 }
 0x631   : > { %1585 = vperm.xlu0 %3606, %v1557_v14  }
 0x635   : > { %1591 = vperm.xlu1 %3609, %v1557_v14  }
 0x638   : > { %3605 = vset.pattern.permute.xlu2 %v3961_v17 }
 0x639   : > { %1579 = vperm.xlu2 %3605, %v1557_v14   ;;  %3611 = vset.pattern.permute.xlu0 %v3959_v13 }
 0x63d   : > { %3610 = vset.pattern.permute.xlu1 %v3951_v0 }
 0x641   : > { %3612 = vset.pattern.permute.xlu2 %v3962_v18 }
 0x679   : > { %v1563_v16 = vpop.permute.xlu2 %1562 }
 0x67a   : > { %v1565_v35 = vmul.f32 %v1563_v16, %v4326_v25 }
 0x682   : > { %v1574_v21 = vpop.permute.xlu2 %1573 }
 0x683   : > { %v1576_v44 = vmul.f32 %v4330_v27, %v1574_v21 }
 0x684   : > { %v1756_v20 = vpop.permute.xlu1 %1755 }
 0x685   : > { %v1758_v33 = vmul.f32 %v4322_v22, %v1756_v20 }
 0x68a   : > { %v1762_v29 = vpop.permute.xlu2 %1761 }
 0x68b   : > { %v1764_v36 = vmul.f32 %v4330_v27, %v1762_v29 }
 0x68d   : > { %v1768_v23 = vpop.permute.xlu1 %1767 }
 0x68e   : > { %v1770_v40 = vmul.f32 %v4333_v28, %v1768_v23 }
 0x691   : > { %v1568_v24 = vpop.permute.xlu0 %1567 }
 0x692   : > { %v1570_v31 = vmul.f32 %v4322_v22, %v1568_v24 }
 0x693   : > { %v1580_v45 = vpop.permute.xlu2 %1579 }
 0x694   : > { %v1571_v39 = vadd.f32 %v1570_v31, %v1565_v35  ;;  %v1582_v54 = vmul.f32 %v4333_v28, %v1580_v45  ;;  %v1276_v45 = vmul.f32 %v4387_v5, %v4326_v25 }
 0x696   : > { %v1774_v26 = vpop.permute.xlu1 %1773  ;;  %v1577_v48 = vadd.f32 %v1576_v44, %v1571_v39 }
 0x697   : > { %v1776_v46 = vmul.f32 %v4342_v37, %v1774_v26 }
 0x698   : > { %v1583_v58 = vadd.f32 %v1582_v54, %v1577_v48 }
 0x69a   : > { %v1751_v32 = vpop.permute.xlu0 %1750 }
 0x69b   : > { %v1753_v34 = vmul.f32 %v1751_v32, %v4326_v25 }
 0x69d   : > { %v1759_v38 = vadd.f32 %v1758_v33, %v1753_v34  ;;  %v1464_v33 = vmul.f32 %v4380_v50, %v4326_v25 }
 0x69f   : > { %v1765_v42 = vadd.f32 %v1764_v36, %v1759_v38  ;;  %v1780_v43 = vpop.permute.xlu1 %1779  ;;  %v1465_v35 = vsel %vm1035_vm2, %v1464_v33, 0.0  ;;  %v1496_v36 = vmul.f32 %v4322_v22, %v4380_v50 }
 0x6a0   : > { %v1782_v52 = vmul.f32 %v4346_v41, %v1780_v43  ;;  %v1510_v43 = vmul.f32 %v4333_v28, %v4380_v50 }
 0x6a1   : > { %v1771_v47 = vadd.f32 %v1770_v40, %v1765_v42  ;;  %v1497_v38 = vsel %vm1035_vm2, %v1496_v36, 0.0  ;;  %v1503_v40 = vmul.f32 %v4330_v27, %v4380_v50 }
 0x6a2   : > { %v1511_v44 = vsel %vm1035_vm2, %v1510_v43, 0.0 }
 0x6a3   : > { %v1777_v51 = vadd.f32 %v1776_v46, %v1771_v47  ;;  %v1586_v53 = vpop.permute.xlu0 %1585  ;;  %v1504_v42 = vsel %vm1035_vm2, %v1503_v40, 0.0  ;;  %v1277_v46 = vsel %vm1035_vm2, %v1276_v45, 0.0  ;;  %v1517_v47 = vmul.f32 %v4342_v37, %v4380_v50 }
 0x6a4   : > { %v1588_v55 = vmul.f32 %v4342_v37, %v1586_v53 }
 0x6a5   : > { %v1783_v56 = vadd.f32 %v1782_v52, %v1777_v51  ;;  %v1518_v48 = vsel %vm1035_vm2, %v1517_v47, 0.0  ;;  %v1524_v51 = vmul.f32 %v4346_v41, %v4380_v50 }
 0x6a6   : > { %v1589_v61 = vadd.f32 %v1588_v55, %v1583_v58 }
 0x6a7   : > { %v1810_v59 = vadd.f32 %v1809_v57, %v1783_v56  ;;  %v1592_v60 = vpop.permute.xlu1 %1591 }
 0x6a8   : > { %v1594_v62 = vmul.f32 %v4346_v41, %v1592_v60 }
 0x6a9   : > { %v1812_v63 = vmul.f32 0.28867513, %v1810_v59 }
 0x6aa   : > { %v1595_v1 = vadd.f32 %v1594_v62, %v1589_v61 }
 0x6ab   : > { %v1813_v3 = vadd.f32 %v1812_v63, %v4349_v49 }
 0x6ac   : > { %v1622_v7 = vadd.f32 %v1621_v2, %v1595_v1 }
 0x6ad   : > { %v1814_v8 = vsel %vm1035_vm2, %v1813_v3, -inf }
 0x6ae   : > { %1815 = vmax.xlane.f32.xlu2 %v1814_v8  ;;  %v1624_v9 = vmul.f32 0.28867513, %v1622_v7 }
 0x6b0   : > { %v1625_v11 = vadd.f32 %v1624_v9, %v4349_v49 }
 0x6b2   : > { %v1626_v14 = vsel %vm1035_vm2, %v1625_v11, -inf }
 0x6b3   : > { %1627 = vmax.xlane.f32.xlu1 %v1626_v14 }
 0x6cc   : > { %1846 = vrot.lane.b32.xlu1 %v4282_v6, %s4990_s3  ;;  %s4992_s3 = smov 8  }
 0x721   : > { %v1816_v16 = vpop.xlane.xlu2 %1815 }
 0x722   : > { %v1817_v20 = vsub.f32 %v1813_v3, %v1816_v16 }
 0x724   : > { %v1818_v21 = vmul.f32 1.442695, %v1817_v20 }
 0x726   : > { %3668 = vpow2.f32 %v1818_v21  ;;  %v1628_v23 = vpop.xlane.xlu1 %1627 }
 0x727   : > { %v1629_v24 = vsub.f32 %v1625_v11, %v1628_v23 }
 0x729   : > { %v1630_v26 = vmul.f32 1.442695, %v1629_v24 }
 0x72b   : > { %3670 = vpow2.f32 %v1630_v26 }
 0x72c   : > { %v3669_v29 = vpop.eup %3668 }
 0x72d   : > { %v1820_v31 = vsel %vm1035_vm2, %v3669_v29, 0.0 }
 0x72e   : > { %1821 = vadd.xlane.f32.xlu0 %v1820_v31 }
 0x731   : > { %v4428_v32 = vpop.eup %3670 }
 0x732   : > { %v1632_v34 = vsel %vm1035_vm2, %v4428_v32, 0.0 }
 0x733   : > { %1633 = vadd.xlane.f32.xlu2 %v1632_v34 }
 0x736   : > { %1466 = vadd.xlane.f32.xlu0 %v1465_v35 }
 0x73e   : > { %v1847_v39 = vpop.permute.xlu1 %1846  ;;  %1498 = vadd.xlane.f32.xlu0 %v1497_v38 }
 0x73f   : > { %1867 = vmatpush.msra.mxu3 %v1847_v39 }
 0x746   : > { %1505 = vadd.xlane.f32.xlu0 %v1504_v42 }
 0x74b   : > { %1658 = vrot.lane.b32.xlu2 %v4282_v6, %s4991_s1  ;;  %v1525_v6 = vsel %vm1035_vm2, %v1524_v51, 0.0  ;;  %v1336_v51 = vmul.f32 %v4346_v41, %v4387_v5  ;;  %s4995_s1 = smov 16  }
 0x74e   : > { %1512 = vadd.xlane.f32.xlu0 %v1511_v44 }
 0x756   : > { %1278 = vadd.xlane.f32.xlu0 %v1277_v46 }
 0x774   : > { %1519 = vadd.xlane.f32.xlu2 %v1518_v48 }
 0x77c   : > { %1526 = vadd.xlane.f32.xlu2 %v1525_v6 }
 0x7a1   : > { %v1822_v52 = vpop.xlane.xlu0 %1821 }
 0x7a2   : > { %3672 = vrcp.f32 %v1822_v52  ;;  %v1834_v57 = vand.u32 2147483648, %v1822_v52  ;;  %v1832_v60 = vand.u32 2147483647, %v1822_v52  ;;  %vm1828_vm9 = vweird.f32 %v1822_v52 }
 0x7a4   : > { %v1835_v50 = vor.u32 1.1754944e-38, %v1834_v57  ;;  %vm1833_vm11 = vcmp.eq.f32.partialorder %v1832_v60, 8.507059e+37 }
 0x7a6   : > { %v1634_v53 = vpop.xlane.xlu2 %1633 }
 0x7a7   : > { %3674 = vrcp.f32 %v1634_v53  ;;  %v1646_v3 = vand.u32 2147483648, %v1634_v53  ;;  %v1644_v9 = vand.u32 2147483647, %v1634_v53  ;;  %vm1640_vm13 = vweird.f32 %v1634_v53 }
 0x7a8   : > { %v3673_v54 = vpop.eup %3672 }
 0x7a9   : > { %v1824_v55 = vmul.f32 %v3673_v54, %v1822_v52  ;;  %vm1829_vm8 = vweird.f32 %v3673_v54  ;;  %v1647_v16 = vor.u32 1.1754944e-38, %v1646_v3  ;;  %vm1645_vm15 = vcmp.eq.f32.partialorder %v1644_v9, 8.507059e+37 }
 0x7aa   : > { %vm1830_vm10 = vmor %vm1828_vm9, %vm1829_vm8 }
 0x7ab   : > { %v1825_v56 = vsub.f32 1.0, %v1824_v55  ;;  %v1467_v55 = vpop.xlane.xlu0 %1466 }
 0x7ad   : > { %v3675_v58 = vpop.eup %3674  ;;  %v1826_v59 = vmul.f32 %v3673_v54, %v1825_v56  ;;  %v1308_v56 = vmul.f32 %v4322_v22, %v4387_v5 }
 0x7ae   : > { %v1636_v61 = vmul.f32 %v3675_v58, %v1634_v53  ;;  %v1659_v62 = vpop.permute.xlu2 %1658  ;;  %vm1641_vm12 = vweird.f32 %v3675_v58  ;;  %v1337_v53 = vsel %vm1035_vm2, %v1336_v51, 0.0 }
 0x7af   : > { %v1827_v63 = vadd.f32 %v3673_v54, %v1826_v59  ;;  %1679 = vmatpush.msrb.mxu0 %v1659_v62  ;;  %vm1642_vm14 = vmor %vm1640_vm13, %vm1641_vm12  ;;  %v1309_v57 = vsel %vm1035_vm2, %v1308_v56, 0.0  ;;  %v3394_v62 = vld [vmem:[%s4963_s14 + $0x8] sm:$0x3f]  ;;  %vm2048_vm12 = vcmask 523264  }
 0x7b0   : > { %v1637_v1 = vsub.f32 1.0, %v1636_v61  ;;  %v1514_v9 = vperm.slane %v3394_v62, 3 }
 0x7b1   : > { %v1831_v2 = vsel %vm1830_vm10, %v3673_v54, %v1827_v63 }
 0x7b2   : > { %v1836_v7 = vsel %vm1833_vm11, %v1835_v50, %v1831_v2  ;;  %v1638_v8 = vmul.f32 %v3675_v58, %v1637_v1  ;;  %v1468_v1 = vperm.slane %v3394_v62, 0 }
 0x7b3   : > { %v1837_v11 = vmul.f32 %v3669_v29, %v1836_v7  ;;  %v1507_v7 = vperm.slane %v3394_v62, 2 }
 0x7b4   : > { %v1639_v14 = vadd.f32 %v3675_v58, %v1638_v8  ;;  %v1469_v3 = vmul.f32 %v1468_v1, %v1467_v55 }
 0x7b5   : > { %3407 = vmatmul.msk.f32.vlgmr.msra.gmra.mxu3 %vm1035_vm2, %v1837_v11  ;;  %v1900_v43 = vmul.f32 %v4346_v41, %v1837_v11  ;;  %v1872_v44 = vmul.f32 %v4322_v22, %v1837_v11  ;;  %v1840_v48 = vmul.f32 %v1837_v11, %v4326_v25  ;;  %v1879_v6 = vmul.f32 %v4330_v27, %v1837_v11 }
 0x7b6   : > { %v1643_v20 = vsel %vm1642_vm14, %v3675_v58, %v1639_v14  ;;  %v1499_v58 = vpop.xlane.xlu0 %1498  ;;  %v1893_v59 = vmul.f32 %v4342_v37, %v1837_v11  ;;  %v1494_v14 = vadd.f32 %v4395_v10, %v1469_v3  ;;  %v3400_v10 = vld [vmem:[%s4963_s14 + $0x10] sm:$0x3f] }
 0x7b7   : > { %v1648_v21 = vsel %vm1645_vm15, %v1647_v16, %v1643_v20  ;;  %v1901_v46 = vsel %vm1035_vm2, %v1900_v43, 0.0  ;;  %v1873_v47 = vsel %vm1035_vm2, %v1872_v44, 0.0  ;;  %v1841_v52 = vsel %vm1035_vm2, %v1840_v48, 0.0 }
 0x7b8   : > { %v1649_v23 = vmul.f32 %v4428_v32, %v1648_v21  ;;  %v1315_v32 = vmul.f32 %v4330_v27, %v4387_v5  ;;  %v1880_v54 = vsel %vm1035_vm2, %v1879_v6, 0.0  ;;  %v1894_v61 = vsel %vm1035_vm2, %v1893_v59, 0.0 }
 0x7b9   : > { %v1528_v21 = vperm.slane %v3394_v62, 5  ;;  %v1695_v43 = vperm.slane %v3400_v10, 2  ;;  %v1716_v56 = vperm.slane %v3400_v10, 5 }
 0x7ba   : > { %3401 = vmatmul.msk.f32.vlgmr.msrb.gmra.mxu0 %vm1035_vm2, %v1649_v23  ;;  %v1698_v24 = vmul.f32 %v4333_v28, %v1649_v23  ;;  %v1684_v26 = vmul.f32 %v4322_v22, %v1649_v23  ;;  %v1652_v31 = vmul.f32 %v1649_v23, %v4326_v25  ;;  %v1705_v35 = vmul.f32 %v4342_v37, %v1649_v23 }
 0x7bb   : > { %v1691_v36 = vmul.f32 %v4330_v27, %v1649_v23  ;;  %v1316_v39 = vsel %vm1035_vm2, %v1315_v32, 0.0  ;;  %v1712_v42 = vmul.f32 %v4346_v41, %v1649_v23  ;;  %v1886_v25 = vmul.f32 %v4333_v28, %v1837_v11 }
 0x7bc   : > { %v1699_v29 = vsel %vm1035_vm2, %v1698_v24, 0.0  ;;  %v1685_v33 = vsel %vm1035_vm2, %v1684_v26, 0.0  ;;  %v1653_v34 = vsel %vm1035_vm2, %v1652_v31, 0.0  ;;  %v1706_v38 = vsel %vm1035_vm2, %v1705_v35, 0.0 }
 0x7bd   : > { %1700 = vadd.xlane.f32.xlu1 %v1699_v29  ;;  %1686 = vadd.xlane.f32.xlu2 %v1685_v33  ;;  %v1692_v40 = vsel %vm1035_vm2, %v1691_v36, 0.0  ;;  %v1713_v45 = vsel %vm1035_vm2, %v1712_v42, 0.0  ;;  %v1887_v27 = vsel %vm1035_vm2, %v1886_v25, 0.0  ;;  %v1329_v41 = vmul.f32 %v4342_v37, %v4387_v5 }
 0x7be   : > { %1654 = vadd.xlane.f32.xlu0 %v1653_v34  ;;  %v1322_v22 = vmul.f32 %v4333_v28, %v4387_v5  ;;  %v1506_v63 = vpop.xlane.xlu0 %1505  ;;  %v1500_v37 = vperm.slane %v3394_v62, 1  ;;  %v1521_v28 = vperm.slane %v3394_v62, 4 }
 0x7bf   : > { %v1330_v60 = vsel %vm1035_vm2, %v1329_v41, 0.0  ;;  %v1508_v16 = vmul.f32 %v1507_v7, %v1506_v63 }
 0x7c0   : > { %v1323_v50 = vsel %vm1035_vm2, %v1322_v22, 0.0  ;;  %v1501_v8 = vmul.f32 %v1500_v37, %v1499_v58 }
 0x7c2   : > { %v1502_v5 = vadd.f32 %v1501_v8, %v1494_v14 }
 0x7c4   : > { %v1509_v24 = vadd.f32 %v1508_v16, %v1502_v5  ;;  %v1927_v16 = vld [vmem:[%s4964_s15 + $0x18] sm:$0xff] }
 0x7c5   : > { %1707 = vadd.xlane.f32.xlu1 %v1706_v38  ;;  %1317 = vadd.xlane.f32.xlu2 %v1316_v39  ;;  %v1656_v38 = vperm.slane %v3400_v10, 0  ;;  %v1688_v39 = vperm.slane %v3400_v10, 1 }
 0x7c6   : > { %1693 = vadd.xlane.f32.xlu0 %v1692_v40  ;;  %v1513_v11 = vpop.xlane.xlu0 %1512  ;;  %1947 = vmatpush.msra.mxu0 %v1927_v16  ;;  %v2007_v16 = vld [vmem:[#allocation10 + $0x18] sm:$0xff] }
 0x7c7   : > { %v1515_v20 = vmul.f32 %v1514_v9, %v1513_v11  ;;  %2027 = vmatpush.msrb.mxu2 %v2007_v16  ;;  %v3412_v16 = vld [vmem:[%s4961_s12 + $0x28] sm:$0xff] }
 0x7c9   : > { %v1516_v31 = vadd.f32 %v1515_v20, %v1509_v24 }
 0x7cd   : > { %1714 = vadd.xlane.f32.xlu1 %v1713_v45  ;;  %1902 = vadd.xlane.f32.xlu2 %v1901_v46  ;;  %v1702_v45 = vperm.slane %v3400_v10, 3 }
 0x7ce   : > { %1874 = vadd.xlane.f32.xlu0 %v1873_v47  ;;  %v4502_v35 = vpop.xlane.xlu0 %1278 }
 0x7d5   : > { %1842 = vadd.xlane.f32.xlu1 %v1841_v52  ;;  %1338 = vadd.xlane.f32.xlu2 %v1337_v53  ;;  %v1709_v52 = vperm.slane %v3400_v10, 4 }
 0x7d6   : > { %1881 = vadd.xlane.f32.xlu0 %v1880_v54 }
 0x7dd   : > { %1310 = vadd.xlane.f32.xlu1 %v1309_v57 }
 0x7de   : > { %1888 = vadd.xlane.f32.xlu0 %v1887_v27 }
 0x7e5   : > { %1331 = vadd.xlane.f32.xlu1 %v1330_v60 }
 0x7e6   : > { %1895 = vadd.xlane.f32.xlu0 %v1894_v61  ;;  %v3406_v61 = vld [vmem:[%s4963_s14 + $0x18] sm:$0x3f] }
 0x7e7   : > { %v1520_v2 = vpop.xlane.xlu2 %1519  ;;  %v1844_v22 = vperm.slane %v3406_v61, 0  ;;  %v1876_v1 = vperm.slane %v3406_v61, 1  ;;  %v1883_v9 = vperm.slane %v3406_v61, 2  ;;  %v1890_v11 = vperm.slane %v3406_v61, 3 }
 0x7e8   : > { %v1522_v26 = vmul.f32 %v1521_v28, %v1520_v2  ;;  %v1926_v28 = vld [vmem:[%s4964_s15 + $0x10] sm:$0xff]  ;;  %v1904_v24 = vperm.slane %v3406_v61, 5 }
 0x7e9   : > { %1948 = vmatpush.msra.mxu0 %v1926_v28  ;;  %v2006_v28 = vld [vmem:[#allocation10 + $0x10] sm:$0xff] }
 0x7ea   : > { %v1523_v33 = vadd.f32 %v1522_v26, %v1516_v31  ;;  %2028 = vmatpush.msrb.mxu2 %v2006_v28  ;;  %v3411_v28 = vld [vmem:[%s4961_s12 + $0x20] sm:$0xff] }
 0x7ee   : > { %1324 = vadd.xlane.f32.xlu0 %v1323_v50 }
 0x7ef   : > { %v1527_v23 = vpop.xlane.xlu2 %1526 }
 0x7f0   : > { %v1529_v29 = vmul.f32 %v1528_v21, %v1527_v23  ;;  %v1897_v21 = vperm.slane %v3406_v61, 4  ;;  %v1925_v23 = vld [vmem:[%s4964_s15 + $0x8] sm:$0xff] }
 0x7f1   : > { %1949 = vmatpush.msra.mxu0 %v1925_v23 }
 0x7f2   : > { %v1530_v34 = vadd.f32 %v1529_v29, %v1523_v33 }
 0x802   : > { %1908 = vrot.lane.b32.xlu0 %v1530_v34, %s4992_s3  ;;  %s5049_s3 = smov 8  }
 0x830   : > { %v1701_v32 = vpop.xlane.xlu1 %1700  ;;  %v1687_v40 = vpop.xlane.xlu2 %1686 }
 0x831   : > { %v1655_v36 = vpop.xlane.xlu0 %1654  ;;  %v1689_v46 = vmul.f32 %v1688_v39, %v1687_v40  ;;  %v1703_v54 = vmul.f32 %v1702_v45, %v1701_v32  ;;  %v1275_v39 = vld [vmem:[%s4963_s14] sm:$0x3f] }
 0x832   : > { %v1657_v42 = vmul.f32 %v1656_v38, %v1655_v36  ;;  %v1924_v38 = vld [vmem:[%s4964_s15] sm:$0xff]  ;;  %v1280_v40 = vperm.slane %v1275_v39, 0 }
 0x833   : > { %1950 = vmatpush.msra.mxu0 %v1924_v38  ;;  %v2040_v38 = vld [vmem:[%s4970_s21 + $0x20] sm:$0xff] }
 0x837   : > { %v1681_v44 = vpop.f32.mrf.mxu0 }
 0x838   : > { %v1682_v47 = vadd.f32 %v1681_v44, %v1657_v42  ;;  %v1708_v48 = vpop.xlane.xlu1 %1707  ;;  %v1869_v2 = vpop.f32.mrf.mxu3  ;;  %v1312_v42 = vperm.slane %v1275_v39, 1  ;;  %v1281_v44 = vmul.f32 %v1280_v40, %v4502_v35 }
 0x839   : > { %v1694_v51 = vpop.xlane.xlu0 %1693  ;;  %v1710_v25 = vmul.f32 %v1709_v52, %v1708_v48  ;;  %v1318_v37 = vpop.xlane.xlu2 %1317  ;;  %v1326_v48 = vperm.slane %v1275_v39, 3 }
 0x83a   : > { %v1690_v6 = vadd.f32 %v1689_v46, %v1682_v47  ;;  %v1696_v53 = vmul.f32 %v1695_v43, %v1694_v51  ;;  %v1306_v46 = vadd.f32 %v4397_v12, %v1281_v44  ;;  %v1319_v47 = vperm.slane %v1275_v39, 2 }
 0x83c   : > { %v1697_v55 = vadd.f32 %v1696_v53, %v1690_v6  ;;  %v1320_v52 = vmul.f32 %v1319_v47, %v1318_v37 }
 0x83e   : > { %v1704_v57 = vadd.f32 %v1703_v54, %v1697_v55  ;;  %v1333_v54 = vperm.slane %v1275_v39, 4 }
 0x840   : > { %v1715_v27 = vpop.xlane.xlu1 %1714  ;;  %v1711_v41 = vadd.f32 %v1710_v25, %v1704_v57  ;;  %v1340_v57 = vperm.slane %v1275_v39, 5 }
 0x841   : > { %v1717_v58 = vmul.f32 %v1716_v56, %v1715_v27  ;;  %v1875_v59 = vpop.xlane.xlu0 %1874  ;;  %v1903_v31 = vpop.xlane.xlu2 %1902 }
 0x842   : > { %v1877_v8 = vmul.f32 %v1876_v1, %v1875_v59  ;;  %v1905_v10 = vmul.f32 %v1904_v24, %v1903_v31 }
 0x843   : > { %v1718_v60 = vadd.f32 %v1717_v58, %v1711_v41 }
 0x845   : > { %1912 = vrot.lane.b32.xlu1 %v1718_v60, %s4995_s1  ;;  %s5050_s1 = smov 16  }
 0x848   : > { %v1843_v62 = vpop.xlane.xlu1 %1842 }
 0x849   : > { %v1882_v63 = vpop.xlane.xlu0 %1881  ;;  %v1845_v50 = vmul.f32 %v1844_v22, %v1843_v62  ;;  %v1339_v41 = vpop.xlane.xlu2 %1338 }
 0x84a   : > { %v1884_v5 = vmul.f32 %v1883_v9, %v1882_v63  ;;  %v1341_v59 = vmul.f32 %v1340_v57, %v1339_v41  ;;  %v3640_v57 = vld [vmem:[%s4967_s18] ss:$0 sm:$0xff] }
 0x84b   : > { %v1870_v3 = vadd.f32 %v1869_v2, %v1845_v50  ;;  %v3638_v50 = vld [vmem:[%s4965_s16] ss:$0 sm:$0xff] }
 0x84d   : > { %v1878_v14 = vadd.f32 %v1877_v8, %v1870_v3 }
 0x84f   : > { %v1885_v26 = vadd.f32 %v1884_v5, %v1878_v14  ;;  %v2005_v5 = vld [vmem:[#allocation10 + $0x8] sm:$0xff] }
 0x850   : > { %v1311_v43 = vpop.xlane.xlu1 %1310  ;;  %2029 = vmatpush.msrb.mxu2 %v2005_v5 }
 0x851   : > { %v1889_v7 = vpop.xlane.xlu0 %1888  ;;  %v1313_v45 = vmul.f32 %v1312_v42, %v1311_v43  ;;  %v2039_v42 = vld [vmem:[%s4970_s21 + $0x18] sm:$0xff] }
 0x852   : > { %v1891_v20 = vmul.f32 %v1890_v11, %v1889_v7 }
 0x853   : > { %v1314_v6 = vadd.f32 %v1313_v45, %v1306_v46 }
 0x854   : > { %v1892_v33 = vadd.f32 %v1891_v20, %v1885_v26  ;;  %v2004_v20 = vld [vmem:[#allocation10] sm:$0xff] }
 0x855   : > { %v1321_v55 = vadd.f32 %v1320_v52, %v1314_v6  ;;  %2030 = vmatpush.msrb.mxu2 %v2004_v20 }
 0x858   : > { %v1332_v56 = vpop.xlane.xlu1 %1331 }
 0x859   : > { %v1896_v29 = vpop.xlane.xlu0 %1895  ;;  %v1334_v27 = vmul.f32 %v1333_v54, %v1332_v56 }
 0x85a   : > { %v1898_v34 = vmul.f32 %v1897_v21, %v1896_v29 }
 0x85c   : > { %v1899_v32 = vadd.f32 %v1898_v34, %v1892_v33  ;;  %v2043_v33 = vld [vmem:[%s4970_s21 + $0x38] sm:$0xff]  ;;  %v2042_v34 = vld [vmem:[%s4970_s21 + $0x30] sm:$0xff] }
 0x85d   : > { %2060 = vmatpush.msra.mxu1 %v2043_v33 }
 0x85e   : > { %v1906_v36 = vadd.f32 %v1905_v10, %v1899_v32  ;;  %v2041_v32 = vld [vmem:[%s4970_s21 + $0x28] sm:$0xff] }
 0x85f   : > { %2061 = vmatpush.msra.mxu1 %v2042_v34 }
 0x860   : > { %1916 = vrot.lane.b32.xlu2 %v1906_v36, %s4997_s29  ;;  %s5041_s29 = sld [smem:[#allocation37_spill]] }
 0x861   : > { %v1325_v51 = vpop.xlane.xlu0 %1324  ;;  %2062 = vmatpush.msra.mxu1 %v2041_v32 }
 0x862   : > { %v1327_v53 = vmul.f32 %v1326_v48, %v1325_v51 }
 0x863   : > { %2063 = vmatpush.msra.mxu1 %v2040_v38 }
 0x864   : > { %v1328_v25 = vadd.f32 %v1327_v53, %v1321_v55  ;;  %v3639_v55 = vld [vmem:[%s4966_s17] ss:$0 sm:$0xff] }
 0x865   : > { %2064 = vmatpush.msra.mxu1 %v2039_v42 }
 0x866   : > { %v1335_v58 = vadd.f32 %v1334_v27, %v1328_v25 }
 0x868   : > { %v1342_v35 = vadd.f32 %v1341_v59, %v1335_v58  ;;  %v2038_v58 = vld [vmem:[%s4970_s21 + $0x10] sm:$0xff]  ;;  %v2037_v59 = vld [vmem:[%s4970_s21 + $0x8] sm:$0xff] }
 0x869   : > { %2065 = vmatpush.msra.mxu1 %v2038_v58 }
 0x86b   : > { %2066 = vmatpush.msra.mxu1 %v2037_v59 }
 0x874   : > { %v1909_v60 = vpop.permute.xlu0 %1908 }
 0x875   : > { %v1919_v12 = vsel %vm1035_vm2, %v1342_v35, %v1909_v60  ;;  %v2036_v60 = vld [vmem:[%s4970_s21] sm:$0xff] }
 0x876   : > { %2067 = vmatpush.msra.mxu1 %v2036_v60  ;;  %v3641_v35 = vld [vmem:[%s4969_s20] ss:$0 sm:$0xff] }
 0x8b7   : > { %v1913_v61 = vpop.permute.xlu1 %1912 }
 0x8b8   : > { %v1921_v22 = vsel %vm1920_vm3, %v1919_v12, %v1913_v61 }
 0x8ba   : > { %v1917_v62 = vpop.permute.xlu2 %1916 }
 0x8bb   : > { %v1923_v63 = vsel %vm1922_vm5, %v1921_v22, %v1917_v62  ;;  %v3642_v62 = vld [vmem:[%s4971_s22] ss:$0 sm:$0xff] }
 0x8bc   : > { %3408 = vmatmul.msk.f32.vlgmr.msra.gmra.mxu0 %vm1011_vm4, %v1923_v63 }
 0x939   : > { %v1952_v1 = vpop.f32.mrf.mxu0 }
 0x93a   : > { %v1953_v2 = vadd.f32 %v3638_v50, %v1952_v1 }
 0x93c   : > { %v1955_v37 = vadd.f32 %v1953_v2, %v4277_v4 }
 0x93e   : > { %v1958_v3 = vsel %vm1011_vm4, %v1955_v37, 0.0 }
 0x93f   : > { %1959 = vadd.xlane.f32.xlu0 %v1958_v3 }
 0x9b2   : > { %v1960_v7 = vpop.xlane.xlu0 %1959 }
 0x9b3   : > { %v1961_v8 = vmul.f32 %v1960_v7, %v4257_v30 }
 0x9b5   : > { %v1962_v9 = vsub.f32 %v1955_v37, %v1961_v8 }
 0x9b7   : > { %v1963_v11 = vmul.f32 %v1962_v9, %v1962_v9 }
 0x9b9   : > { %v1964_v14 = vsel %vm1011_vm4, %v1963_v11, 0.0  ;;  %v3414_v11 = vld [vmem:[%s4961_s12 + $0x38] sm:$0xff] }
 0x9ba   : > { %1965 = vadd.xlane.f32.xlu1 %v1964_v14  ;;  %v3413_v14 = vld [vmem:[%s4961_s12 + $0x30] sm:$0xff]  ;;  %2141 = vmatpush.msrb.mxu3 %v3414_v11 }
 0x9bc   : > { %2142 = vmatpush.msrb.mxu3 %v3413_v14 }
 0x9be   : > { %2143 = vmatpush.msrb.mxu3 %v3412_v16  ;;  %v4655_v16 = vld [vmem:[%s4319_s0 + $0x20] sm:$0xff] }
 0x9c0   : > { %2144 = vmatpush.msrb.mxu3 %v3411_v28 }
 0xa2d   : > { %v1966_v4 = vpop.xlane.xlu1 %1965 }
 0xa2e   : > { %v1967_v21 = vmul.f32 %v1966_v4, %v4257_v30 }
 0xa30   : > { %v1968_v23 = vadd.f32 1e-12, %v1967_v21 }
 0xa32   : > { %3676 = vrsqrt.f32 %v1968_v23  ;;  %vm1976_vm6 = vcmp.eq.f32.partialorder %v1968_v23, inf  ;;  %v1979_v40 = vand.u32 2147483648, %v1968_v23  ;;  %vm1978_vm7 = vcmp.eq.f32.partialorder %v1968_v23, 0.0 }
 0xa38   : > { %v3677_v24 = vpop.eup %3676 }
 0xa39   : > { %v1970_v26 = vmul.f32 %v3677_v24, %v1968_v23 }
 0xa3b   : > { %v1971_v31 = vmul.f32 %v3677_v24, %v1970_v26 }
 0xa3d   : > { %v1972_v29 = vmul.f32 0.5, %v1971_v31 }
 0xa3f   : > { %v1973_v10 = vsub.f32 1.5, %v1972_v29 }
 0xa41   : > { %v1974_v36 = vmul.f32 %v3677_v24, %v1973_v10 }
 0xa43   : > { %v1975_v39 = vmul.f32 %v1974_v36, %v1968_v23 }
 0xa45   : > { %v1977_v43 = vsel %vm1976_vm6, %v1968_v23, %v1975_v39 }
 0xa46   : > { %v1980_v44 = vsel %vm1978_vm7, %v1979_v40, %v1977_v43 }
 0xa47   : > { %3678 = vrcp.f32 %v1980_v44  ;;  %v1992_v48 = vand.u32 2147483648, %v1980_v44  ;;  %v1990_v6 = vand.u32 2147483647, %v1980_v44  ;;  %vm1986_vm9 = vweird.f32 %v1980_v44 }
 0xa49   : > { %v1993_v53 = vor.u32 1.1754944e-38, %v1992_v48  ;;  %vm1991_vm11 = vcmp.eq.f32.partialorder %v1990_v6, 8.507059e+37  ;;  %v3644_v6 = vld [vmem:[%s5041_s29] ss:$0 sm:$0xff] }
 0xa4d   : > { %v3679_v45 = vpop.eup %3678 }
 0xa4e   : > { %v1982_v46 = vmul.f32 %v3679_v45, %v1980_v44  ;;  %vm1987_vm8 = vweird.f32 %v3679_v45 }
 0xa4f   : > { %vm1988_vm10 = vmor %vm1986_vm9, %vm1987_vm8 }
 0xa50   : > { %v1983_v47 = vsub.f32 1.0, %v1982_v46 }
 0xa52   : > { %v1984_v51 = vmul.f32 %v3679_v45, %v1983_v47  ;;  %v3643_v47 = vld [vmem:[%s4972_s23] ss:$0 sm:$0xff] }
 0xa54   : > { %v1985_v52 = vadd.f32 %v3679_v45, %v1984_v51 }
 0xa56   : > { %v1989_v54 = vsel %vm1988_vm10, %v3679_v45, %v1985_v52 }
 0xa57   : > { %v1994_v56 = vsel %vm1991_vm11, %v1993_v53, %v1989_v54 }
 0xa58   : > { %v1995_v25 = vmul.f32 %v1994_v56, %v1962_v9  ;;  %v2337_v56 = vld [vmem:[#allocation8 + $0x14] sm:$0xf] }
 0xa5a   : > { %v1999_v27 = vmul.f32 %v3639_v55, %v1995_v25  ;;  %v2150_v55 = vld [vmem:[#allocation8 + $0x10] sm:$0xf] }
 0xa5b   : > { %3416 = vmatpush.msk.msrb.mxu0 %vm978_vm0, %v2150_v55 }
 0xa5c   : > { %v2003_v41 = vadd.f32 %v3640_v57, %v1999_v27 }
 0xa5d   : > { %3422 = vmatpush.msk.msra.mxu0 %vm978_vm0, %v2337_v56 }
 0xa5e   : > { %3409 = vmatmul.msk.f32.vlgmr.msrb.gmra.mxu2 %vm1011_vm4, %v2003_v41 }
 0xae1   : > { %v2032_v12 = vpop.f32.mrf.mxu2 }
 0xae2   : > { %v2033_v61 = vadd.f32 %v3641_v35, %v2032_v12 }
 0xae4   : > { %v2035_v22 = vmax.f32 %v2033_v61, 0.0 }
 0xae6   : > { %3410 = vmatmul.msk.f32.vlgmr.msra.gmra.mxu1 %vm2048_vm12, %v2035_v22  ;;  %v4639_v22 = vld [vmem:[%s4319_s0] sm:$0xff] }
 0xb63   : > { %v2069_v63 = vpop.f32.mrf.mxu1 }
 0xb64   : > { %v2070_v50 = vadd.f32 %v3642_v62, %v2069_v63  ;;  %v4643_v63 = vld [vmem:[%s4319_s0 + $0x8] sm:$0xff] }
 0xb66   : > { %v2072_v1 = vadd.f32 %v2070_v50, %v2003_v41 }
 0xb68   : > { %v2075_v2 = vsel %vm1011_vm4, %v2072_v1, 0.0 }
 0xb69   : > { %2076 = vadd.xlane.f32.xlu2 %v2075_v2 }
 0xbdc   : > { %v2077_v37 = vpop.xlane.xlu2 %2076 }
 0xbdd   : > { %v2078_v3 = vmul.f32 %v2077_v37, %v4257_v30  ;;  %v4647_v37 = vld [vmem:[%s4319_s0 + $0x10] sm:$0xff] }
 0xbdf   : > { %v2079_v7 = vsub.f32 %v2072_v1, %v2078_v3 }
 0xbe1   : > { %v2080_v8 = vmul.f32 %v2079_v7, %v2079_v7 }
 0xbe3   : > { %v2081_v9 = vsel %vm1011_vm4, %v2080_v8, 0.0 }
 0xbe4   : > { %2082 = vadd.xlane.f32.xlu0 %v2081_v9 }
 0xc57   : > { %v2083_v5 = vpop.xlane.xlu0 %2082 }
 0xc58   : > { %v2084_v20 = vmul.f32 %v2083_v5, %v4257_v30 }
 0xc5a   : > { %v2085_v4 = vadd.f32 1e-12, %v2084_v20 }
 0xc5c   : > { %3680 = vrsqrt.f32 %v2085_v4  ;;  %vm2093_vm13 = vcmp.eq.f32.partialorder %v2085_v4, inf  ;;  %v2096_v34 = vand.u32 2147483648, %v2085_v4  ;;  %vm2095_vm14 = vcmp.eq.f32.partialorder %v2085_v4, 0.0 }
 0xc62   : > { %v3681_v21 = vpop.eup %3680 }
 0xc63   : > { %v2087_v23 = vmul.f32 %v3681_v21, %v2085_v4 }
 0xc65   : > { %v2088_v24 = vmul.f32 %v3681_v21, %v2087_v23 }
 0xc67   : > { %v2089_v26 = vmul.f32 0.5, %v2088_v24 }
 0xc69   : > { %v2090_v31 = vsub.f32 1.5, %v2089_v26 }
 0xc6b   : > { %v2091_v29 = vmul.f32 %v3681_v21, %v2090_v31 }
 0xc6d   : > { %v2092_v33 = vmul.f32 %v2091_v29, %v2085_v4 }
 0xc6f   : > { %v2094_v10 = vsel %vm2093_vm13, %v2085_v4, %v2092_v33  ;;  %v4659_v4 = vld [vmem:[%s4319_s0 + $0x28] sm:$0xff] }
 0xc70   : > { %v2097_v32 = vsel %vm2095_vm14, %v2096_v34, %v2094_v10 }
 0xc71   : > { %3682 = vrcp.f32 %v2097_v32  ;;  %v2109_v40 = vand.u32 2147483648, %v2097_v32  ;;  %v2107_v43 = vand.u32 2147483647, %v2097_v32  ;;  %vm2103_vm6 = vweird.f32 %v2097_v32 }
 0xc73   : > { %v2110_v45 = vor.u32 1.1754944e-38, %v2109_v40  ;;  %vm2108_vm8 = vcmp.eq.f32.partialorder %v2107_v43, 8.507059e+37 }
 0xc77   : > { %v3683_v36 = vpop.eup %3682 }
 0xc78   : > { %v2099_v38 = vmul.f32 %v3683_v36, %v2097_v32  ;;  %vm2104_vm15 = vweird.f32 %v3683_v36 }
 0xc79   : > { %vm2105_vm7 = vmor %vm2103_vm6, %vm2104_vm15 }
 0xc7a   : > { %v2100_v39 = vsub.f32 1.0, %v2099_v38 }
 0xc7c   : > { %v2101_v42 = vmul.f32 %v3683_v36, %v2100_v39 }
 0xc7e   : > { %v2102_v44 = vadd.f32 %v3683_v36, %v2101_v42 }
 0xc80   : > { %v2106_v46 = vsel %vm2105_vm7, %v3683_v36, %v2102_v44 }
 0xc81   : > { %v2111_v48 = vsel %vm2108_vm8, %v2110_v45, %v2106_v46 }
 0xc82   : > { %v2112_v51 = vmul.f32 %v2111_v48, %v2079_v7  ;;  %v4651_v7 = vld [vmem:[%s4319_s0 + $0x18] sm:$0xff]  ;;  %s5047_s0 = smov 56  }
 0xc84   : > { %v2116_v52 = vmul.f32 %v3643_v47, %v2112_v51 }
 0xc86   : > { %v4601_v53 = vadd.f32 %v3644_v6, %v2116_v52 }
 0xc88   : > { %3415 = vmatmul.msk.f32.vlgmr.msrb.gmra.mxu3 %vm1011_vm4, %v4601_v53 }
 0xd0b   : > { %v4605_v54 = vpop.f32.mrf.mxu3 }
 0xd0c   : > { %2215 = vrot.lane.b32.xlu2 %v4605_v54, %s3958_s11  ;;  %2338 = vrot.lane.b32.xlu1 %v4605_v54, %s3955_s7  ;;  %s5043_s7 = smov 36   ;;  %s5046_s11 = smov 44  }
 0xd0d   : > { %2152 = vrot.lane.b32.xlu0 %v4605_v54, %s3954_s27  ;;  %s5042_s27 = smov 84  }
 0xd14   : > { %2401 = vrot.lane.b32.xlu2 %v4605_v54, %s3957_s30  ;;  %s5045_s30 = smov 64  }
 0xd15   : > { %2403 = vrot.lane.b32.xlu0 %v4605_v54, %s3956_s4  ;;  %s5044_s4 = smov 48  }
 0xd66   : > { %v2216_v25 = vpop.permute.xlu2 %2215 }
 0xd67   : > { %3418 = vmatpush.xpose.msk.msra.mxu2 %vm1035_vm2, %v2216_v25 }
 0xd6a   : > { %3419 = vmatmul.msk.f32.vlgmr.msra.gmra.mxu2 %vm1035_vm2, %v4605_v54 }
 0xd6e   : > { %v2402_v58 = vpop.permute.xlu2 %2401 }
 0xd7e   : > { %v2339_v27 = vpop.permute.xlu1 %2338 }
 0xd7f   : > { %v2153_v57 = vpop.permute.xlu0 %2152 }
 0xd80   : > { %3417 = vmatmul.msk.f32.vlgmr.msrb.gmra.mxu0 %vm974_vm1, %v2153_v57 }
 0xd87   : > { %v2404_v41 = vpop.permute.xlu0 %2403 }
 0xd88   : > { %3423 = vmatmul.msk.f32.vlgmr.msra.gmra.mxu0 %vm974_vm1, %v2339_v27  ;;  %3424 = vmatpush.xpose.msk.msrb.mxu2 %vm1035_vm2, %v2404_v41 }
 0xd8b   : > { %3425 = vmatmul.msk.f32.vlgmr.msrb.gmra.mxu2 %vm1035_vm2, %v2402_v58 }
 0xded   : > { %v2238_v24 = vpop.f32.mrf.mxu2 }
 0xdfd   : > { %v2176_v59 = vpop.f32.mrf.mxu0 }
 0xdfe   : > { %2192 = vperm.xlu2 %3612, %v2176_v59   ;;  %2186 = vperm.xlu0 %3611, %v2176_v59  }
 0xdff   : > { %2181 = vperm.xlu1 %3610, %v2176_v59  }
 0xe05   : > { %v2362_v60 = vpop.f32.mrf.mxu0 }
 0xe06   : > { %3614 = vset.pattern.permute.xlu2 %v3963_v19  ;;  %3616 = vset.pattern.permute.xlu0 %v3951_v0 }
 0xe07   : > { %3613 = vset.pattern.permute.xlu1 %v3961_v17  ;;  %2204 = vperm.xlu2 %3614, %v2176_v59  }
 0xe08   : > { %2198 = vperm.xlu1 %3613, %v2176_v59   ;;  %2367 = vperm.xlu0 %3616, %v2362_v60  }
 0xe0e   : > { %v2426_v55 = vpop.f32.mrf.mxu2 }
 0xe0f   : > { %3617 = vset.pattern.permute.xlu2 %v3959_v13 }
 0xe10   : > { %3615 = vset.pattern.permute.xlu1 %v3960_v15  ;;  %3621 = vset.pattern.permute.xlu0 %v3960_v15 }
 0xe11   : > { %2210 = vperm.xlu1 %3615, %v2176_v59   ;;  %2372 = vperm.xlu2 %3617, %v2362_v60  }
 0xe12   : > { %2396 = vperm.xlu0 %3621, %v2362_v60  }
 0xe19   : > { %3618 = vset.pattern.permute.xlu1 %v3962_v18  ;;  %3619 = vset.pattern.permute.xlu2 %v3961_v17 }
 0xe1a   : > { %2378 = vperm.xlu1 %3618, %v2362_v60   ;;  %2384 = vperm.xlu2 %3619, %v2362_v60  }
 0xe1b   : > { %3622 = vset.pattern.permute.xlu0 %v3951_v0 }
 0xe22   : > { %3620 = vset.pattern.permute.xlu1 %v3963_v19  ;;  %3624 = vset.pattern.permute.xlu2 %v3962_v18 }
 0xe23   : > { %2390 = vperm.xlu1 %3620, %v2362_v60  }
 0xe2b   : > { %3623 = vset.pattern.permute.xlu1 %v3959_v13 }
 0xe58   : > { %v2193_v12 = vpop.permute.xlu2 %2192 }
 0xe59   : > { %v2195_v3 = vmul.f32 %v4647_v37, %v2193_v12 }
 0xe61   : > { %v2205_v9 = vpop.permute.xlu2 %2204 }
 0xe62   : > { %v2207_v28 = vmul.f32 %v4655_v16, %v2205_v9 }
 0xe6b   : > { %v2373_v26 = vpop.permute.xlu2 %2372 }
 0xe6c   : > { %v2375_v36 = vmul.f32 %v4643_v63, %v2373_v26 }
 0xe70   : > { %v2187_v61 = vpop.permute.xlu0 %2186 }
 0xe71   : > { %v2182_v35 = vpop.permute.xlu1 %2181  ;;  %v2189_v50 = vmul.f32 %v4643_v63, %v2187_v61 }
 0xe72   : > { %v2184_v62 = vmul.f32 %v4639_v22, %v2182_v35 }
 0xe74   : > { %v2190_v1 = vadd.f32 %v2189_v50, %v2184_v62  ;;  %v2385_v42 = vpop.permute.xlu2 %2384 }
 0xe75   : > { %v2387_v44 = vmul.f32 %v4651_v7, %v2385_v42 }
 0xe76   : > { %v2196_v11 = vadd.f32 %v2195_v3, %v2190_v1  ;;  %v2525_v3 = vld [vmem:[#allocation8 + $0x18] sm:$0xf] }
 0xe7a   : > { %v2199_v2 = vpop.permute.xlu1 %2198  ;;  %v2368_v29 = vpop.permute.xlu0 %2367 }
 0xe7b   : > { %v2201_v8 = vmul.f32 %v4651_v7, %v2199_v2  ;;  %v2370_v34 = vmul.f32 %v4639_v22, %v2368_v29  ;;  %v2713_v29 = vld [vmem:[#allocation8 + $0x1c] sm:$0xf] }
 0xe7d   : > { %v2202_v14 = vadd.f32 %v2201_v8, %v2196_v11  ;;  %v2376_v40 = vadd.f32 %v2375_v36, %v2370_v34 }
 0xe7f   : > { %v2208_v20 = vadd.f32 %v2207_v28, %v2202_v14 }
 0xe83   : > { %v2211_v5 = vpop.permute.xlu1 %2210 }
 0xe84   : > { %v2213_v21 = vmul.f32 %v4659_v4, %v2211_v5  ;;  %v2397_v45 = vpop.permute.xlu0 %2396 }
 0xe85   : > { %v2399_v51 = vmul.f32 %v4659_v4, %v2397_v45 }
 0xe86   : > { %v2214_v23 = vadd.f32 %v2213_v21, %v2208_v20 }
 0xe88   : > { %v2239_v31 = vadd.f32 %v2238_v24, %v2214_v23 }
 0xe8a   : > { %v2241_v33 = vmul.f32 0.28867513, %v2239_v31 }
 0xe8c   : > { %v2379_v10 = vpop.permute.xlu1 %2378  ;;  %v2242_v32 = vadd.f32 %v2241_v33, %v4349_v49 }
 0xe8d   : > { %v2381_v38 = vmul.f32 %v4647_v37, %v2379_v10 }
 0xe8e   : > { %v2243_v39 = vsel %vm1035_vm2, %v2242_v32, -inf }
 0xe8f   : > { %2244 = vmax.xlane.f32.xlu2 %v2243_v39  ;;  %v2382_v43 = vadd.f32 %v2381_v38, %v2376_v40 }
 0xe91   : > { %v2388_v47 = vadd.f32 %v2387_v44, %v2382_v43 }
 0xe95   : > { %v2391_v46 = vpop.permute.xlu1 %2390 }
 0xe96   : > { %v2393_v48 = vmul.f32 %v4655_v16, %v2391_v46 }
 0xe98   : > { %v2394_v6 = vadd.f32 %v2393_v48, %v2388_v47 }
 0xe9a   : > { %v2400_v52 = vadd.f32 %v2399_v51, %v2394_v6 }
 0xe9c   : > { %v2427_v56 = vadd.f32 %v2426_v55, %v2400_v52 }
 0xe9e   : > { %v2429_v25 = vmul.f32 0.28867513, %v2427_v56 }
 0xea0   : > { %v2430_v57 = vadd.f32 %v2429_v25, %v4349_v49 }
 0xea2   : > { %v2431_v27 = vsel %vm1035_vm2, %v2430_v57, -inf }
 0xea3   : > { %2432 = vmax.xlane.f32.xlu1 %v2431_v27 }
 0xebc   : > { %2275 = vrot.lane.b32.xlu1 %v4605_v54, %s3967_s8 }
 0xec4   : > { %2714 = vrot.lane.b32.xlu1 %v4605_v54, %s3969_s2  ;;  %s5055_s2 = sld [smem:[#allocation40_spill]] }
 0xeca   : > { %s3886_s8 = scalar_lea.hbm %s5055_s2, 2 }
 0xecc   : > { %2589 = vrot.lane.b32.xlu1 %v4605_v54, %s3966_s26  ;;  %s5048_s26 = smov 28  }
 0xf02   : > { %v2245_v41 = vpop.xlane.xlu2 %2244 }
 0xf03   : > { %v2246_v58 = vsub.f32 %v2242_v32, %v2245_v41 }
 0xf05   : > { %v2247_v59 = vmul.f32 1.442695, %v2246_v58 }
 0xf07   : > { %3684 = vpow2.f32 %v2247_v59 }
 0xf0d   : > { %v3685_v60 = vpop.eup %3684 }
 0xf0e   : > { %v2249_v35 = vsel %vm1035_vm2, %v3685_v60, 0.0 }
 0xf0f   : > { %2250 = vadd.xlane.f32.xlu0 %v2249_v35 }
 0xf16   : > { %v2433_v12 = vpop.xlane.xlu1 %2432 }
 0xf17   : > { %v2434_v61 = vsub.f32 %v2430_v57, %v2433_v12 }
 0xf19   : > { %v2435_v62 = vmul.f32 1.442695, %v2434_v61 }
 0xf1b   : > { %3686 = vpow2.f32 %v2435_v62 }
 0xf21   : > { %v3687_v50 = vpop.eup %3686 }
 0xf22   : > { %v2437_v1 = vsel %vm1035_vm2, %v3687_v50, 0.0 }
 0xf23   : > { %2463 = vrot.lane.b32.xlu0 %v4605_v54, %s5042_s27  ;;  %2438 = vadd.xlane.f32.xlu2 %v2437_v1 }
 0xf2b   : > { %2779 = vrot.lane.b32.xlu0 %v4605_v54, %s5043_s7 }
 0xf2e   : > { %v2276_v2 = vpop.permute.xlu1 %2275 }
 0xf2f   : > { %2296 = vmatpush.msra.mxu3 %v2276_v2 }
 0xf31   : > { %3428 = vmatpush.msk.msrb.mxu3 %vm978_vm0, %v2525_v3 }
 0xf36   : > { %v2715_v39 = vpop.permute.xlu1 %2714 }
 0xf3b   : > { %2526 = vrot.lane.b32.xlu2 %v4605_v54, %s5044_s4 }
 0xf3e   : > { %v2590_v52 = vpop.permute.xlu1 %2589 }
 0xf43   : > { %2591 = vrot.lane.b32.xlu2 %v4605_v54, %s5045_s30 }
 0xf4b   : > { %2777 = vrot.lane.b32.xlu2 %v4605_v54, %s5046_s11  ;;  %s5052_s11 = sld [smem:[#allocation28_spill]] }
 0xf82   : > { %v2251_v8 = vpop.xlane.xlu0 %2250 }
 0xf83   : > { %3688 = vrcp.f32 %v2251_v8  ;;  %v2263_v28 = vand.u32 2147483648, %v2251_v8  ;;  %v2261_v20 = vand.u32 2147483647, %v2251_v8  ;;  %vm2257_vm10 = vweird.f32 %v2251_v8 }
 0xf85   : > { %v2264_v23 = vor.u32 1.1754944e-38, %v2263_v28  ;;  %vm2262_vm13 = vcmp.eq.f32.partialorder %v2261_v20, 8.507059e+37 }
 0xf89   : > { %v3689_v9 = vpop.eup %3688 }
 0xf8a   : > { %v2253_v11 = vmul.f32 %v3689_v9, %v2251_v8  ;;  %vm2258_vm9 = vweird.f32 %v3689_v9 }
 0xf8b   : > { %vm2259_vm11 = vmor %vm2257_vm10, %vm2258_vm9 }
 0xf8c   : > { %v2254_v14 = vsub.f32 1.0, %v2253_v11 }
 0xf8e   : > { %v2255_v5 = vmul.f32 %v3689_v9, %v2254_v14 }
 0xf90   : > { %v2256_v21 = vadd.f32 %v3689_v9, %v2255_v5 }
 0xf92   : > { %v2260_v24 = vsel %vm2259_vm11, %v3689_v9, %v2256_v21 }
 0xf93   : > { %v2265_v26 = vsel %vm2262_vm13, %v2264_v23, %v2260_v24 }
 0xf94   : > { %v4691_v31 = vmul.f32 %v3685_v60, %v2265_v26 }
 0xf95   : > { %v2464_v33 = vpop.permute.xlu0 %2463 }
 0xf96   : > { %v2439_v34 = vpop.xlane.xlu2 %2438  ;;  %3421 = vmatmul.msk.f32.vlgmr.msra.gmra.mxu3 %vm1035_vm2, %v4691_v31  ;;  %2484 = vmatpush.msrb.mxu1 %v2464_v33 }
 0xf97   : > { %3690 = vrcp.f32 %v2439_v34  ;;  %v2451_v42 = vand.u32 2147483648, %v2439_v34  ;;  %v2449_v44 = vand.u32 2147483647, %v2439_v34  ;;  %vm2445_vm15 = vweird.f32 %v2439_v34 }
 0xf98   : > { %3434 = vmatpush.msk.msra.mxu1 %vm978_vm0, %v2713_v29 }
 0xf99   : > { %v2452_v46 = vor.u32 1.1754944e-38, %v2451_v42  ;;  %vm2450_vm0 = vcmp.eq.f32.partialorder %v2449_v44, 8.507059e+37 }
 0xf9d   : > { %v3691_v10 = vpop.eup %3690  ;;  %v2780_v32 = vpop.permute.xlu0 %2779 }
 0xf9e   : > { %v2441_v36 = vmul.f32 %v3691_v10, %v2439_v34  ;;  %v2527_v38 = vpop.permute.xlu2 %2526  ;;  %3436 = vmatpush.xpose.msk.msra.mxu3 %vm1035_vm2, %v2780_v32  ;;  %vm2446_vm14 = vweird.f32 %v3691_v10 }
 0xf9f   : > { %3429 = vmatmul.msk.f32.vlgmr.msrb.gmra.mxu3 %vm974_vm1, %v2527_v38  ;;  %vm2447_vm6 = vmor %vm2445_vm15, %vm2446_vm14 }
 0xfa0   : > { %v2442_v40 = vsub.f32 1.0, %v2441_v36 }
 0xfa2   : > { %v2443_v43 = vmul.f32 %v3691_v10, %v2442_v40 }
 0xfa4   : > { %v2444_v45 = vadd.f32 %v3691_v10, %v2443_v43 }
 0xfa6   : > { %v2448_v47 = vsel %vm2447_vm6, %v3691_v10, %v2444_v45  ;;  %v2592_v48 = vpop.permute.xlu2 %2591 }
 0xfa7   : > { %v2453_v51 = vsel %vm2450_vm0, %v2452_v46, %v2448_v47  ;;  %3430 = vmatpush.xpose.msk.msrb.mxu0 %vm1035_vm2, %v2592_v48 }
 0xfa8   : > { %v4699_v6 = vmul.f32 %v3687_v50, %v2453_v51 }
 0xfaa   : > { %3427 = vmatmul.msk.f32.vlgmr.msrb.gmra.mxu1 %vm1035_vm2, %v4699_v6  ;;  %3431 = vmatmul.msk.f32.vlgmr.msrb.gmra.mxu0 %vm1035_vm2, %v2590_v52  ;;  %v2489_v48 = vmul.f32 %v4643_v63, %v4699_v6  ;;  %v2269_v52 = vmul.f32 %v4639_v22, %v4691_v31 }
 0xfac   : > { %v2490_v51 = vsel %vm1035_vm2, %v2489_v48, 0.0 }
 0xfae   : > { %v2778_v55 = vpop.permute.xlu2 %2777 }
 0xfaf   : > { %3437 = vmatmul.msk.f32.vlgmr.msra.gmra.mxu3 %vm1035_vm2, %v2778_v55  ;;  %v2270_v55 = vsel %vm1035_vm2, %v2269_v52, 0.0 }
 0xfb2   : > { %3435 = vmatmul.msk.f32.vlgmr.msra.gmra.mxu1 %vm974_vm1, %v2715_v39 }
0x1019   : > { %v4706_v56 = vpop.f32.mrf.mxu3 }
0x1022   : > { %v2550_v25 = vpop.f32.mrf.mxu3 }
0x1023   : > { %2566 = vperm.xlu2 %3624, %v2550_v25   ;;  %2560 = vperm.xlu1 %3623, %v2550_v25  }
0x1024   : > { %2555 = vperm.xlu0 %3622, %v2550_v25  }
0x1027   : > { %v4708_v57 = vpop.f32.mrf.mxu1  ;;  %v2614_v8 = vpop.f32.mrf.mxu0 }
0x102b   : > { %3626 = vset.pattern.permute.xlu2 %v3963_v19  ;;  %3625 = vset.pattern.permute.xlu1 %v3961_v17 }
0x102c   : > { %2578 = vperm.xlu2 %3626, %v2550_v25   ;;  %2572 = vperm.xlu1 %3625, %v2550_v25  }
0x102f   : > { %v2738_v27 = vpop.f32.mrf.mxu1 }
0x1030   : > { %2743 = vperm.xlu0 %3622, %v2738_v27  }
0x1032   : > { %v2802_v43 = vpop.f32.mrf.mxu3 }
0x1034   : > { %3627 = vset.pattern.permute.xlu2 %v3960_v15  ;;  %3628 = vset.pattern.permute.xlu1 %v3959_v13 }
0x1035   : > { %2584 = vperm.xlu2 %3627, %v2550_v25   ;;  %2748 = vperm.xlu1 %3628, %v2738_v27  }
0x1038   : > { %3629 = vset.pattern.permute.xlu0 %v3962_v18 }
0x1039   : > { %2754 = vperm.xlu0 %3629, %v2738_v27  }
0x103d   : > { %3631 = vset.pattern.permute.xlu2 %v3963_v19  ;;  %3630 = vset.pattern.permute.xlu1 %v3961_v17 }
0x103e   : > { %2766 = vperm.xlu2 %3631, %v2738_v27   ;;  %2760 = vperm.xlu1 %3630, %v2738_v27  }
0x1041   : > { %3633 = vset.pattern.permute.xlu0 %v3951_v0 }
0x1046   : > { %3632 = vset.pattern.permute.xlu1 %v3960_v15 }
0x1047   : > { %2772 = vperm.xlu1 %3632, %v2738_v27  }
0x107d   : > { %v2567_v41 = vpop.permute.xlu2 %2566 }
0x107e   : > { %v2569_v19 = vmul.f32 %v4647_v37, %v2567_v41 }
0x1086   : > { %v2579_v59 = vpop.permute.xlu2 %2578 }
0x1087   : > { %v2581_v0 = vmul.f32 %v4655_v16, %v2579_v59 }
0x108f   : > { %v2585_v62 = vpop.permute.xlu2 %2584 }
0x1090   : > { %v2587_v50 = vmul.f32 %v4659_v4, %v2585_v62 }
0x1095   : > { %v2561_v58 = vpop.permute.xlu1 %2560 }
0x1096   : > { %v2556_v13 = vpop.permute.xlu0 %2555  ;;  %v2563_v60 = vmul.f32 %v4643_v63, %v2561_v58 }
0x1097   : > { %v2558_v18 = vmul.f32 %v4639_v22, %v2556_v13 }
0x1098   : > { %v2767_v10 = vpop.permute.xlu2 %2766 }
0x1099   : > { %v2564_v35 = vadd.f32 %v2563_v60, %v2558_v18  ;;  %v2769_v36 = vmul.f32 %v4655_v16, %v2767_v10 }
0x109b   : > { %v2570_v17 = vadd.f32 %v2569_v19, %v2564_v35  ;;  %v2457_v19 = vmul.f32 %v4639_v22, %v4699_v6 }
0x109e   : > { %v2573_v12 = vpop.permute.xlu1 %2572 }
0x109f   : > { %v2575_v61 = vmul.f32 %v4651_v7, %v2573_v12 }
0x10a1   : > { %v2576_v15 = vadd.f32 %v2575_v61, %v2570_v17  ;;  %v2458_v17 = vsel %vm1035_vm2, %v2457_v19, 0.0  ;;  %v2496_v61 = vmul.f32 %v4647_v37, %v4699_v6 }
0x10a2   : > { %v2744_v2 = vpop.permute.xlu0 %2743 }
0x10a3   : > { %v2582_v1 = vadd.f32 %v2581_v0, %v2576_v15  ;;  %v2746_v23 = vmul.f32 %v4639_v22, %v2744_v2  ;;  %v2497_v62 = vsel %vm1035_vm2, %v2496_v61, 0.0  ;;  %v2503_v0 = vmul.f32 %v4651_v7, %v4699_v6 }
0x10a5   : > { %v2588_v3 = vadd.f32 %v2587_v50, %v2582_v1  ;;  %v2504_v15 = vsel %vm1035_vm2, %v2503_v0, 0.0  ;;  %v2517_v1 = vmul.f32 %v4659_v4, %v4699_v6 }
0x10a7   : > { %v2749_v9 = vpop.permute.xlu1 %2748  ;;  %v2615_v11 = vadd.f32 %v2614_v8, %v2588_v3  ;;  %v2518_v2 = vsel %vm1035_vm2, %v2517_v1, 0.0 }
0x10a8   : > { %v2751_v21 = vmul.f32 %v4643_v63, %v2749_v9 }
0x10a9   : > { %v2617_v14 = vmul.f32 0.28867513, %v2615_v11 }
0x10aa   : > { %v2752_v29 = vadd.f32 %v2751_v21, %v2746_v23 }
0x10ab   : > { %v2618_v28 = vadd.f32 %v2617_v14, %v4349_v49  ;;  %v2755_v5 = vpop.permute.xlu0 %2754 }
0x10ac   : > { %v2757_v24 = vmul.f32 %v4647_v37, %v2755_v5 }
0x10ad   : > { %v2619_v20 = vsel %vm1035_vm2, %v2618_v28, -inf }
0x10ae   : > { %2620 = vmax.xlane.f32.xlu2 %v2619_v20  ;;  %v2758_v34 = vadd.f32 %v2757_v24, %v2752_v29 }
0x10b0   : > { %v2761_v26 = vpop.permute.xlu1 %2760 }
0x10b1   : > { %v2763_v33 = vmul.f32 %v4651_v7, %v2761_v26 }
0x10b3   : > { %v2764_v32 = vadd.f32 %v2763_v33, %v2758_v34 }
0x10b5   : > { %v2770_v39 = vadd.f32 %v2769_v36, %v2764_v32  ;;  %v2308_v36 = vmul.f32 %v4647_v37, %v4691_v31 }
0x10b9   : > { %v2773_v38 = vpop.permute.xlu1 %2772 }
0x10ba   : > { %v2775_v40 = vmul.f32 %v4659_v4, %v2773_v38 }
0x10bc   : > { %v2776_v42 = vadd.f32 %v2775_v40, %v2770_v39  ;;  %v2309_v40 = vsel %vm1035_vm2, %v2308_v36, 0.0 }
0x10be   : > { %v2803_v44 = vadd.f32 %v2802_v43, %v2776_v42 }
0x10c0   : > { %v2805_v45 = vmul.f32 0.28867513, %v2803_v44 }
0x10c2   : > { %v2806_v46 = vadd.f32 %v2805_v45, %v4349_v49 }
0x10c4   : > { %v2807_v47 = vsel %vm1035_vm2, %v2806_v46, -inf }
0x10c5   : > { %2808 = vmax.xlane.f32.xlu0 %v2807_v47 }
0x10d9   : > { %2651 = vrot.lane.b32.xlu0 %v4605_v54, %s5047_s0  ;;  %s957_s0 = scalar_lea.vmem %s5052_s11, %s4224_s25 }
0x1103   : > { %2491 = vadd.xlane.f32.xlu0 %v2490_v51 }
0x110b   : > { %2271 = vadd.xlane.f32.xlu0 %v2270_v55 }
0x1121   : > { %v2621_v25 = vpop.xlane.xlu2 %2620 }
0x1122   : > { %v2622_v49 = vsub.f32 %v2618_v28, %v2621_v25 }
0x1124   : > { %v2623_v27 = vmul.f32 1.442695, %v2622_v49 }
0x1126   : > { %3692 = vpow2.f32 %v2623_v27 }
0x112c   : > { %v3693_v41 = vpop.eup %3692 }
0x112d   : > { %v2625_v58 = vsel %vm1035_vm2, %v3693_v41, 0.0 }
0x112e   : > { %2626 = vadd.xlane.f32.xlu1 %v2625_v58 }
0x1138   : > { %v2809_v59 = vpop.xlane.xlu0 %2808 }
0x1139   : > { %v2810_v13 = vsub.f32 %v2806_v46, %v2809_v59 }
0x113b   : > { %v2811_v60 = vmul.f32 1.442695, %v2810_v13 }
0x113d   : > { %3694 = vpow2.f32 %v2811_v60 }
0x1143   : > { %v4744_v18 = vpop.eup %3694 }
0x1144   : > { %v2813_v35 = vsel %vm1035_vm2, %v4744_v18, 0.0 }
0x1145   : > { %2814 = vadd.xlane.f32.xlu2 %v2813_v35 }
0x1147   : > { %2839 = vrot.lane.b32.xlu1 %v4605_v54, %s5048_s26  ;;  %v2510_v54 = vmul.f32 %v4655_v16, %v4699_v6 }
0x1149   : > { %v2511_v50 = vsel %vm1035_vm2, %v2510_v54, 0.0 }
0x114b   : > { %v2652_v12 = vpop.permute.xlu0 %2651 }
0x114c   : > { %2672 = vmatpush.msra.mxu2 %v2652_v12 }
0x114d   : > { %2459 = vadd.xlane.f32.xlu2 %v2458_v17 }
0x1155   : > { %2498 = vadd.xlane.f32.xlu2 %v2497_v62 }
0x115d   : > { %2505 = vadd.xlane.f32.xlu2 %v2504_v15 }
0x1171   : > { %2512 = vadd.xlane.f32.xlu1 %v2511_v50 }
0x1179   : > { %2519 = vadd.xlane.f32.xlu1 %v2518_v2  ;;  %v3426_v2 = vld [vmem:[%s4963_s14 + $0x28] sm:$0x3f] }
0x11a1   : > { %v2627_v3 = vpop.xlane.xlu1 %2626 }
0x11a2   : > { %3696 = vrcp.f32 %v2627_v3  ;;  %v2639_v14 = vand.u32 2147483648, %v2627_v3  ;;  %v2637_v5 = vand.u32 2147483647, %v2627_v3  ;;  %vm2633_vm7 = vweird.f32 %v2627_v3 }
0x11a4   : > { %v2640_v21 = vor.u32 1.1754944e-38, %v2639_v14  ;;  %vm2638_vm9 = vcmp.eq.f32.partialorder %v2637_v5, 8.507059e+37  ;;  %v2500_v5 = vperm.slane %v3426_v2, 2 }
0x11a8   : > { %v3697_v8 = vpop.eup %3696 }
0x11a9   : > { %v2629_v9 = vmul.f32 %v3697_v8, %v2627_v3  ;;  %vm2634_vm1 = vweird.f32 %v3697_v8 }
0x11aa   : > { %vm2635_vm8 = vmor %vm2633_vm7, %vm2634_vm1  ;;  %vm3136_vm1 = vcmask 7168  }
0x11ab   : > { %v2630_v11 = vsub.f32 1.0, %v2629_v9 }
0x11ad   : > { %v2631_v28 = vmul.f32 %v3697_v8, %v2630_v11 }
0x11af   : > { %v2632_v20 = vadd.f32 %v3697_v8, %v2631_v28  ;;  %v2493_v28 = vperm.slane %v3426_v2, 1 }
0x11b1   : > { %v2636_v23 = vsel %vm2635_vm8, %v3697_v8, %v2632_v20  ;;  %v2461_v8 = vperm.slane %v3426_v2, 0  ;;  %v2492_v20 = vpop.xlane.xlu0 %2491 }
0x11b2   : > { %v2641_v24 = vsel %vm2638_vm9, %v2640_v21, %v2636_v23  ;;  %v2507_v23 = vperm.slane %v3426_v2, 3 }
0x11b3   : > { %v2642_v6 = vmul.f32 %v3693_v41, %v2641_v24 }
0x11b5   : > { %3433 = vmatmul.msk.f32.vlgmr.msra.gmra.mxu2 %vm1035_vm2, %v2642_v6  ;;  %v2677_v26 = vmul.f32 %v4643_v63, %v2642_v6  ;;  %v2645_v29 = vmul.f32 %v4639_v22, %v2642_v6  ;;  %v2684_v38 = vmul.f32 %v4647_v37, %v2642_v6  ;;  %v2691_v46 = vmul.f32 %v4651_v7, %v2642_v6 }
0x11b6   : > { %v2698_v41 = vmul.f32 %v4655_v16, %v2642_v6  ;;  %v2705_v12 = vmul.f32 %v4659_v4, %v2642_v6  ;;  %v2494_v6 = vmul.f32 %v2493_v28, %v2492_v20 }
0x11b7   : > { %v2678_v33 = vsel %vm1035_vm2, %v2677_v26, 0.0  ;;  %v2646_v34 = vsel %vm1035_vm2, %v2645_v29, 0.0  ;;  %v2685_v42 = vsel %vm1035_vm2, %v2684_v38, 0.0  ;;  %v2692_v55 = vsel %vm1035_vm2, %v2691_v46, 0.0 }
0x11b8   : > { %2679 = vadd.xlane.f32.xlu1 %v2678_v33  ;;  %2647 = vadd.xlane.f32.xlu2 %v2646_v34  ;;  %v2815_v10 = vpop.xlane.xlu2 %2814  ;;  %v2699_v35 = vsel %vm1035_vm2, %v2698_v41, 0.0  ;;  %v2706_v61 = vsel %vm1035_vm2, %v2705_v12, 0.0  ;;  %v2514_v29 = vperm.slane %v3426_v2, 4 }
0x11b9   : > { %3698 = vrcp.f32 %v2815_v10  ;;  %v2840_v32 = vpop.permute.xlu1 %2839  ;;  %v2827_v45 = vand.u32 2147483648, %v2815_v10  ;;  %v2825_v48 = vand.u32 2147483647, %v2815_v10  ;;  %vm2821_vm11 = vweird.f32 %v2815_v10 }
0x11ba   : > { %2860 = vmatpush.msra.mxu0 %v2840_v32  ;;  %v2521_v32 = vperm.slane %v3426_v2, 5 }
0x11bb   : > { %v2828_v52 = vor.u32 1.1754944e-38, %v2827_v45  ;;  %vm2826_vm14 = vcmp.eq.f32.partialorder %v2825_v48, 8.507059e+37 }
0x11bf   : > { %v3699_v39 = vpop.eup %3698 }
0x11c0   : > { %v2817_v43 = vmul.f32 %v3699_v39, %v2815_v10  ;;  %2310 = vadd.xlane.f32.xlu1 %v2309_v40  ;;  %2686 = vadd.xlane.f32.xlu2 %v2685_v42  ;;  %vm2822_vm10 = vweird.f32 %v3699_v39  ;;  %v2460_v62 = vpop.xlane.xlu2 %2459 }
0x11c1   : > { %vm2823_vm13 = vmor %vm2821_vm11, %vm2822_vm10  ;;  %v2462_v14 = vmul.f32 %v2461_v8, %v2460_v62 }
0x11c2   : > { %v2818_v44 = vsub.f32 1.0, %v2817_v43 }
0x11c3   : > { %v2487_v21 = vadd.f32 %v4708_v57, %v2462_v14 }
0x11c4   : > { %v2819_v47 = vmul.f32 %v3699_v39, %v2818_v44 }
0x11c5   : > { %v2495_v34 = vadd.f32 %v2494_v6, %v2487_v21 }
0x11c6   : > { %v2820_v51 = vadd.f32 %v3699_v39, %v2819_v47  ;;  %v3432_v47 = vld [vmem:[%s4963_s14 + $0x30] sm:$0x3f] }
0x11c7   : > { %v2649_v48 = vperm.slane %v3432_v47, 0 }
0x11c8   : > { %v2824_v25 = vsel %vm2823_vm13, %v3699_v39, %v2820_v51  ;;  %2693 = vadd.xlane.f32.xlu2 %v2692_v55  ;;  %v2499_v3 = vpop.xlane.xlu2 %2498  ;;  %v2681_v55 = vperm.slane %v3432_v47, 1 }
0x11c9   : > { %v2829_v49 = vsel %vm2826_vm14, %v2828_v52, %v2824_v25  ;;  %v2501_v26 = vmul.f32 %v2500_v5, %v2499_v3 }
0x11ca   : > { %v2830_v27 = vmul.f32 %v4744_v18, %v2829_v49  ;;  %v2329_v18 = vmul.f32 %v4659_v4, %v4691_v31 }
0x11cb   : > { %v2502_v38 = vadd.f32 %v2501_v26, %v2495_v34 }
0x11cc   : > { %3439 = vmatmul.msk.f32.vlgmr.msra.gmra.mxu0 %vm1035_vm2, %v2830_v27  ;;  %v2893_v58 = vmul.f32 %v4659_v4, %v2830_v27  ;;  %v2872_v59 = vmul.f32 %v4647_v37, %v2830_v27  ;;  %v2879_v19 = vmul.f32 %v4651_v7, %v2830_v27  ;;  %v2330_v17 = vsel %vm1035_vm2, %v2329_v18, 0.0 }
0x11cd   : > { %v2886_v0 = vmul.f32 %v4655_v16, %v2830_v27  ;;  %v2833_v15 = vmul.f32 %v4639_v22, %v2830_v27  ;;  %v2315_v4 = vmul.f32 %v4651_v7, %v4691_v31  ;;  %v2865_v1 = vmul.f32 %v4643_v63, %v2830_v27 }
0x11ce   : > { %v2894_v13 = vsel %vm1035_vm2, %v2893_v58, 0.0  ;;  %v2873_v60 = vsel %vm1035_vm2, %v2872_v59, 0.0  ;;  %v2880_v37 = vsel %vm1035_vm2, %v2879_v19, 0.0  ;;  %v2301_v7 = vmul.f32 %v4643_v63, %v4691_v31  ;;  %v2272_v59 = vpop.xlane.xlu0 %2271 }
0x11cf   : > { %2895 = vadd.xlane.f32.xlu1 %v2894_v13  ;;  %2874 = vadd.xlane.f32.xlu0 %v2873_v60  ;;  %v2887_v54 = vsel %vm1035_vm2, %v2886_v0, 0.0  ;;  %v2834_v50 = vsel %vm1035_vm2, %v2833_v15, 0.0  ;;  %v2316_v9 = vsel %vm1035_vm2, %v2315_v4, 0.0  ;;  %v2866_v22 = vsel %vm1035_vm2, %v2865_v1, 0.0 }
0x11d0   : > { %2700 = vadd.xlane.f32.xlu2 %v2699_v35  ;;  %v2506_v24 = vpop.xlane.xlu2 %2505  ;;  %v2302_v33 = vsel %vm1035_vm2, %v2301_v7, 0.0  ;;  %v2322_v63 = vmul.f32 %v4655_v16, %v4691_v31  ;;  %v2688_v27 = vperm.slane %v3432_v47, 2  ;;  %v2695_v58 = vperm.slane %v3432_v47, 3 }
0x11d1   : > { %v2508_v10 = vmul.f32 %v2507_v23, %v2506_v24  ;;  %v2702_v35 = vperm.slane %v3432_v47, 4 }
0x11d2   : > { %v2323_v43 = vsel %vm1035_vm2, %v2322_v63, 0.0  ;;  %v3442_v63 = vld [vmem:[%s4964_s15 + $0x30] sm:$0xff] }
0x11d3   : > { %v2509_v40 = vadd.f32 %v2508_v10, %v2502_v38 }
0x11d7   : > { %2331 = vadd.xlane.f32.xlu1 %v2330_v17  ;;  %2881 = vadd.xlane.f32.xlu0 %v2880_v37  ;;  %v2709_v17 = vperm.slane %v3432_v47, 5 }
0x11d8   : > { %2707 = vadd.xlane.f32.xlu2 %v2706_v61 }
0x11df   : > { %2888 = vadd.xlane.f32.xlu0 %v2887_v54 }
0x11e0   : > { %2835 = vadd.xlane.f32.xlu2 %v2834_v50  ;;  %v3438_v50 = vld [vmem:[%s4963_s14 + $0x38] sm:$0x3f] }
0x11e1   : > { %v2837_v1 = vperm.slane %v3438_v50, 0  ;;  %v2869_v8 = vperm.slane %v3438_v50, 1  ;;  %v2883_v28 = vperm.slane %v3438_v50, 3  ;;  %v2890_v21 = vperm.slane %v3438_v50, 4 }
0x11e2   : > { %v2897_v6 = vperm.slane %v3438_v50, 5 }
0x11e4   : > { %v2513_v11 = vpop.xlane.xlu1 %2512 }
0x11e5   : > { %v2515_v39 = vmul.f32 %v2514_v29, %v2513_v11 }
0x11e7   : > { %2317 = vadd.xlane.f32.xlu0 %v2316_v9  ;;  %v2516_v57 = vadd.f32 %v2515_v39, %v2509_v40  ;;  %v3443_v39 = vld [vmem:[%s4964_s15 + $0x38] sm:$0xff]  ;;  %v3441_v40 = vld [vmem:[%s4964_s15 + $0x28] sm:$0xff] }
0x11e8   : > { %2867 = vadd.xlane.f32.xlu2 %v2866_v22  ;;  %v2876_v22 = vperm.slane %v3438_v50, 2  ;;  %2940 = vmatpush.msrb.mxu2 %v3443_v39 }
0x11ea   : > { %2941 = vmatpush.msrb.mxu2 %v3442_v63 }
0x11ec   : > { %v2520_v36 = vpop.xlane.xlu1 %2519  ;;  %2942 = vmatpush.msrb.mxu2 %v3441_v40 }
0x11ed   : > { %v2522_v42 = vmul.f32 %v2521_v32, %v2520_v36 }
0x11ef   : > { %v2523_v44 = vadd.f32 %v2522_v42, %v2516_v57  ;;  %v3440_v42 = vld [vmem:[%s4964_s15 + $0x20] sm:$0xff] }
0x11f0   : > { %2303 = vadd.xlane.f32.xlu2 %v2302_v33  ;;  %2943 = vmatpush.msrb.mxu2 %v3440_v42  ;;  %v3420_v57 = vld [vmem:[%s4963_s14 + $0x20] sm:$0x3f] }
0x11f8   : > { %2324 = vadd.xlane.f32.xlu2 %v2323_v43  ;;  %v2273_v43 = vperm.slane %v3420_v57, 0 }
0x11fb   : > { %2901 = vrot.lane.b32.xlu0 %v2523_v44, %s5049_s3  ;;  %v2305_v44 = vperm.slane %v3420_v57, 1  ;;  %s3202_s3 = scalar_lea.hbm %s5055_s2, %s4138_s9 }
0x11fc   : > { %s3206_s7 = sshll.u32 %s3202_s3, 4  ;;  %s3207_s7 = int_to_ptr.hbm [resolvable:$true] %s3206_s7 }
0x11fd   : > { %s3880_s30 = sshra.s32 %s3207_s7, 4  ;;  %s3881_s30 = int_to_ptr.hbm [resolvable:$true] %s3880_s30 }
0x11fe   : > { %s3882_s11 = scalar_lea.hbm %s3881_s30, 1  ;;  %p3887_p3 = scmp.lt.s32.totalorder %s3881_s30, %s5055_s2 }
0x11ff   : > { %p3883_p0 = scmp.ne.s32.totalorder %s3881_s30, %s3882_s11  ;;  %p3888_p4 = scmp.lt.s32.totalorder %s3886_s8, %s3882_s11 }
0x1201   : > { %p3884_p1 = pnand %p3883_p0, %p4155_p5  ;;  %p3889_p7 = por %p3888_p4, %p3887_p3 }
0x1203   : > { %p3885_p2 = pneg %p3884_p1 }
0x1205   : > { %p3890_p8 = pnand %p3889_p7, %p3885_p2 }
0x122b   : > { %v2648_v45 = vpop.xlane.xlu2 %2647  ;;  %v2680_v31 = vpop.xlane.xlu1 %2679 }
0x122c   : > { %v2650_v16 = vmul.f32 %v2649_v48, %v2648_v45  ;;  %v2682_v49 = vmul.f32 %v2681_v55, %v2680_v31  ;;  %v2326_v31 = vperm.slane %v3420_v57, 4 }
0x1233   : > { %v2687_v46 = vpop.xlane.xlu2 %2686  ;;  %v2311_v9 = vpop.xlane.xlu1 %2310 }
0x1234   : > { %v2689_v60 = vmul.f32 %v2688_v27, %v2687_v46  ;;  %v2274_v46 = vmul.f32 %v2273_v43, %v2272_v59 }
0x1236   : > { %v2299_v48 = vadd.f32 %v4706_v56, %v2274_v46 }
0x1238   : > { %v2674_v51 = vpop.f32.mrf.mxu2 }
0x1239   : > { %v2675_v25 = vadd.f32 %v2674_v51, %v2650_v16  ;;  %v2312_v51 = vperm.slane %v3420_v57, 2  ;;  %v2319_v16 = vperm.slane %v3420_v57, 3 }
0x123b   : > { %v2694_v52 = vpop.xlane.xlu2 %2693  ;;  %v2683_v41 = vadd.f32 %v2682_v49, %v2675_v25  ;;  %v2313_v55 = vmul.f32 %v2312_v51, %v2311_v9  ;;  %v3646_v51 = vld [vmem:[%s4966_s17 + $0x1] ss:$0 sm:$0xff] }
0x123c   : > { %v2696_v19 = vmul.f32 %v2695_v58, %v2694_v52 }
0x123d   : > { %v2690_v18 = vadd.f32 %v2689_v60, %v2683_v41 }
0x123f   : > { %v2697_v37 = vadd.f32 %v2696_v19, %v2690_v18 }
0x1242   : > { %v2875_v61 = vpop.xlane.xlu0 %2874  ;;  %v2896_v33 = vpop.xlane.xlu1 %2895 }
0x1243   : > { %v2701_v13 = vpop.xlane.xlu2 %2700  ;;  %v2877_v20 = vmul.f32 %v2876_v22, %v2875_v61  ;;  %v2898_v32 = vmul.f32 %v2897_v6, %v2896_v33  ;;  %v3003_v22 = vld [vmem:[#allocation10 + $0x38] sm:$0xff]  ;;  %v3455_v33 = vld [vmem:[%s4970_s21 + $0x68] sm:$0xff] }
0x1244   : > { %v2703_v12 = vmul.f32 %v2702_v35, %v2701_v13  ;;  %v2333_v13 = vperm.slane %v3420_v57, 5  ;;  %3024 = vmatpush.msrb.mxu1 %v3003_v22  ;;  %v3457_v6 = vld [vmem:[%s4970_s21 + $0x78] sm:$0xff] }
0x1245   : > { %3058 = vmatpush.msrb.mxu3 %v3457_v6 }
0x1246   : > { %v2704_v0 = vadd.f32 %v2703_v12, %v2697_v37 }
0x1249   : > { %v2862_v11 = vpop.f32.mrf.mxu0 }
0x124a   : > { %v2882_v2 = vpop.xlane.xlu0 %2881  ;;  %v2332_v35 = vpop.xlane.xlu1 %2331 }
0x124b   : > { %v2708_v62 = vpop.xlane.xlu2 %2707  ;;  %v2884_v26 = vmul.f32 %v2883_v28, %v2882_v2  ;;  %v2334_v19 = vmul.f32 %v2333_v13, %v2332_v35  ;;  %v3000_v28 = vld [vmem:[#allocation10 + $0x20] sm:$0xff] }
0x124c   : > { %v2710_v15 = vmul.f32 %v2709_v17, %v2708_v62 }
0x124e   : > { %v2711_v54 = vadd.f32 %v2710_v15, %v2704_v0  ;;  %v3645_v0 = vld [vmem:[%s4965_s16 + $0x1] ss:$0 sm:$0xff] }
0x1250   : > { %2905 = vrot.lane.b32.xlu2 %v2711_v54, %s5050_s1 }
0x1252   : > { %v2889_v24 = vpop.xlane.xlu0 %2888 }
0x1253   : > { %v2836_v4 = vpop.xlane.xlu2 %2835  ;;  %v2891_v34 = vmul.f32 %v2890_v21, %v2889_v24 }
0x1254   : > { %v2838_v3 = vmul.f32 %v2837_v1, %v2836_v4 }
0x1256   : > { %v2863_v5 = vadd.f32 %v2862_v11, %v2838_v3  ;;  %v3002_v11 = vld [vmem:[#allocation10 + $0x30] sm:$0xff] }
0x1257   : > { %3025 = vmatpush.msrb.mxu1 %v3002_v11 }
0x125a   : > { %v2318_v25 = vpop.xlane.xlu0 %2317 }
0x125b   : > { %v2868_v14 = vpop.xlane.xlu2 %2867  ;;  %v2320_v41 = vmul.f32 %v2319_v16, %v2318_v25  ;;  %v3647_v16 = vld [vmem:[%s4967_s18 + $0x1] ss:$0 sm:$0xff] }
0x125c   : > { %v2870_v7 = vmul.f32 %v2869_v8, %v2868_v14  ;;  %v3001_v14 = vld [vmem:[#allocation10 + $0x28] sm:$0xff] }
0x125d   : > { %3026 = vmatpush.msrb.mxu1 %v3001_v14 }
0x125e   : > { %v2871_v23 = vadd.f32 %v2870_v7, %v2863_v5 }
0x125f   : > { %3027 = vmatpush.msrb.mxu1 %v3000_v28 }
0x1260   : > { %v2878_v29 = vadd.f32 %v2877_v20, %v2871_v23 }
0x1262   : > { %v2885_v10 = vadd.f32 %v2884_v26, %v2878_v29  ;;  %v3456_v26 = vld [vmem:[%s4970_s21 + $0x70] sm:$0xff] }
0x1263   : > { %v2304_v45 = vpop.xlane.xlu2 %2303  ;;  %3059 = vmatpush.msrb.mxu3 %v3456_v26 }
0x1264   : > { %v2892_v36 = vadd.f32 %v2891_v34, %v2885_v10  ;;  %v2306_v47 = vmul.f32 %v2305_v44, %v2304_v45  ;;  %v3454_v10 = vld [vmem:[%s4970_s21 + $0x60] sm:$0xff] }
0x1265   : > { %3060 = vmatpush.msrb.mxu3 %v3455_v33 }
0x1266   : > { %v2899_v38 = vadd.f32 %v2898_v32, %v2892_v36  ;;  %v2307_v52 = vadd.f32 %v2306_v47, %v2299_v48 }
0x1267   : > { %3061 = vmatpush.msrb.mxu3 %v3454_v10 }
0x1268   : > { %2909 = vrot.lane.b32.xlu1 %v2899_v38, %s5051_s28  ;;  %v2314_v27 = vadd.f32 %v2313_v55, %v2307_v52  ;;  %v3453_v38 = vld [vmem:[%s4970_s21 + $0x58] sm:$0xff] }
0x1269   : > { %3062 = vmatpush.msrb.mxu3 %v3453_v38  ;;  %v3163_v38 = vld [vmem:[%s5053_s5] sm:$0xff] }
0x126a   : > { %v2321_v60 = vadd.f32 %v2320_v41, %v2314_v27  ;;  %v3451_v27 = vld [vmem:[%s4970_s21 + $0x48] sm:$0xff]  ;;  %v3450_v41 = vld [vmem:[%s4970_s21 + $0x40] sm:$0xff] }
0x126b   : > { %v2325_v49 = vpop.xlane.xlu2 %2324 }
0x126c   : > { %v2327_v58 = vmul.f32 %v2326_v31, %v2325_v49  ;;  %v3452_v49 = vld [vmem:[%s4970_s21 + $0x50] sm:$0xff] }
0x126d   : > { %v2902_v17 = vpop.permute.xlu0 %2901  ;;  %3063 = vmatpush.msrb.mxu3 %v3452_v49 }
0x126e   : > { %v2328_v18 = vadd.f32 %v2327_v58, %v2321_v60  ;;  %v3648_v58 = vld [vmem:[%s4969_s20 + $0x1] ss:$0 sm:$0xff] }
0x126f   : > { %3064 = vmatpush.msrb.mxu3 %v3451_v27 }
0x1270   : > { %v2335_v12 = vadd.f32 %v2334_v19, %v2328_v18  ;;  %v3121_v18 = vld [vmem:[%s957_s0] sm:$0xff]  ;;  %s5054_s0 = sld [smem:[#allocation17_spill]] }
0x1271   : > { %3065 = vmatpush.msrb.mxu3 %v3450_v41  ;;  %v3137_v19 = vsel %vm3136_vm1, %v3121_v18, 0.0 }
0x1272   : > { %v2912_v56 = vsel %vm1035_vm2, %v2335_v12, %v2902_v17  ;;  %v3649_v12 = vld [vmem:[%s4971_s22 + $0x1] ss:$0 sm:$0xff] }
0x1276   : > { %s936_s26 = sand.u32 1, %s5054_s0  }
0x1277   : > { %s937_s28 = scalar_lea.vmem [#allocation11], %s936_s26  ;;  %s3194_s4 = scalar_lea.sflag [#allocation4], %s936_s26 }
0x1278   : > { %s3204_s27 = sshll.u32 %s937_s28, 4  ;;  %s3205_s27 = int_to_ptr.vmem [resolvable:$true] %s3204_s27 }
0x12aa   : > { %v2906_v59 = vpop.permute.xlu2 %2905 }
0x12ab   : > { %v2913_v37 = vsel %vm1920_vm3, %v2912_v56, %v2906_v59 }
0x12da   : > { %v2910_v61 = vpop.permute.xlu1 %2909 }
0x12db   : > { %v2914_v62 = vsel %vm1922_vm5, %v2913_v37, %v2910_v61 }
0x12dc   : > { %3445 = vmatmul.msk.f32.vlgmr.msrb.gmra.mxu2 %vm1011_vm4, %v2914_v62 }
0x135f   : > { %v2945_v15 = vpop.f32.mrf.mxu2 }
0x1360   : > { %v2946_v54 = vadd.f32 %v3645_v0, %v2945_v15 }
0x1362   : > { %v2948_v50 = vadd.f32 %v2946_v54, %v4601_v53 }
0x1364   : > { %v2953_v4 = vsel %vm1011_vm4, %v2948_v50, 0.0 }
0x1365   : > { %2954 = vadd.xlane.f32.xlu0 %v2953_v4 }
0x136d   : > { %3138 = vadd.xlane.f32.xlu0 %v3137_v19 }
0x1381   : > { %3125 = vperm.xlu0 %3633, %v3121_v18  }
0x13d8   : > { %v2955_v1 = vpop.xlane.xlu0 %2954 }
0x13d9   : > { %v2956_v2 = vmul.f32 %v2955_v1, %v4257_v30 }
0x13db   : > { %v2957_v3 = vsub.f32 %v2948_v50, %v2956_v2 }
0x13dd   : > { %v2958_v8 = vmul.f32 %v2957_v3, %v2957_v3 }
0x13df   : > { %v2959_v9 = vsel %vm1011_vm4, %v2958_v8, 0.0 }
0x13e0   : > { %2960 = vadd.xlane.f32.xlu2 %v2959_v9  ;;  %v3139_v61 = vpop.xlane.xlu0 %3138 }
0x13e1   : > { %v3140_v62 = vrot.slane %v3139_v61, 4 }
0x13e3   : > { %v3141_v0 = vadd.f32 %v3140_v62, %v3139_v61 }
0x13e5   : > { %v3142_v15 = vrot.slane %v3141_v0, 2 }
0x13e7   : > { %v3143_v54 = vadd.f32 %v3142_v15, %v3141_v0  ;;  %v3167_v0 = vld [vmem:[%s5056_s10] sm:$0x1] }
0x13e9   : > { %v3144_v50 = vrot.slane %v3143_v54, 1 }
0x13eb   : > { %v3145_v4 = vadd.f32 %v3144_v50, %v3143_v54 }
0x13ed   : > { %3466 = vpush %v3145_v4 }
0x141e   : > { %s3467_s25 = spop %3466 }
0x141f   : > { %v3147_v10 = vstv %s3467_s25 }
0x1420   : > { %vm3153_vm13 = vweird.f32 %v3147_v10  ;;  %v3157_v18 = vand.u32 2147483647, %v3147_v10 }
0x1453   : > { %v2961_v53 = vpop.xlane.xlu2 %2960 }
0x1454   : > { %v2962_v5 = vmul.f32 %v2961_v53, %v4257_v30 }
0x1456   : > { %v2963_v7 = vadd.f32 1e-12, %v2962_v5 }
0x1458   : > { %3700 = vrsqrt.f32 %v2963_v7  ;;  %vm2971_vm2 = vcmp.eq.f32.partialorder %v2963_v7, inf  ;;  %v2974_v36 = vand.u32 2147483648, %v2963_v7  ;;  %vm2973_vm3 = vcmp.eq.f32.partialorder %v2963_v7, 0.0 }
0x145e   : > { %v3701_v20 = vpop.eup %3700 }
0x145f   : > { %v2965_v21 = vmul.f32 %v3701_v20, %v2963_v7 }
0x1461   : > { %v2966_v23 = vmul.f32 %v3701_v20, %v2965_v21 }
0x1463   : > { %v2967_v24 = vmul.f32 0.5, %v2966_v23 }
0x1465   : > { %v2968_v29 = vsub.f32 1.5, %v2967_v24 }
0x1467   : > { %v2969_v34 = vmul.f32 %v3701_v20, %v2968_v29 }
0x1469   : > { %v2970_v32 = vmul.f32 %v2969_v34, %v2963_v7  ;;  %v3165_v34 = vld [vmem:[%s5053_s5 + $0x10] sm:$0xff] }
0x146b   : > { %v2972_v39 = vsel %vm2971_vm2, %v2963_v7, %v2970_v32  ;;  %v3164_v32 = vld [vmem:[%s5053_s5 + $0x8] sm:$0xff] }
0x146c   : > { %v2975_v63 = vsel %vm2973_vm3, %v2974_v36, %v2972_v39  ;;  %vm3158_vm3 = vcmp.eq.f32.partialorder %v3157_v18, 8.507059e+37 }
0x146d   : > { %3702 = vrcp.f32 %v2975_v63  ;;  %v2987_v43 = vand.u32 2147483648, %v2975_v63  ;;  %v2985_v45 = vand.u32 2147483647, %v2975_v63  ;;  %vm2981_vm15 = vweird.f32 %v2975_v63 }
0x146f   : > { %v2988_v47 = vor.u32 1.1754944e-38, %v2987_v43  ;;  %vm2986_vm0 = vcmp.eq.f32.partialorder %v2985_v45, 8.507059e+37 }
0x1473   : > { %v3703_v40 = vpop.eup %3702 }
0x1474   : > { %v2977_v42 = vmul.f32 %v3703_v40, %v2975_v63  ;;  %vm2982_vm5 = vweird.f32 %v3703_v40 }
0x1475   : > { %vm2983_vm6 = vmor %vm2981_vm15, %vm2982_vm5  ;;  %vm3191_vm5 = vcmask 24576  }
0x1476   : > { %v2978_v57 = vsub.f32 1.0, %v2977_v42 }
0x1478   : > { %v2979_v44 = vmul.f32 %v3703_v40, %v2978_v57 }
0x147a   : > { %v2980_v46 = vadd.f32 %v3703_v40, %v2979_v44  ;;  %v3650_v44 = vld [vmem:[%s4972_s23 + $0x1] ss:$0 sm:$0xff] }
0x147c   : > { %v2984_v48 = vsel %vm2983_vm6, %v3703_v40, %v2980_v46 }
0x147d   : > { %v2989_v52 = vsel %vm2986_vm0, %v2988_v47, %v2984_v48  ;;  %v3651_v48 = vld [vmem:[%s5041_s29 + $0x1] ss:$0 sm:$0xff] }
0x147e   : > { %v2990_v55 = vmul.f32 %v2989_v52, %v2957_v3 }
0x1480   : > { %v2994_v31 = vmul.f32 %v3646_v51, %v2990_v55 }
0x1482   : > { %v2998_v25 = vadd.f32 %v3647_v16, %v2994_v31  ;;  %v3126_v16 = vpop.permute.xlu0 %3125 }
0x1484   : > { %3449 = vmatmul.msk.f32.vlgmr.msrb.gmra.mxu1 %vm1011_vm4, %v2998_v25 }
0x1501   : > { %v3029_v13 = vpop.f32.mrf.mxu1 }
0x1502   : > { %v3030_v60 = vadd.f32 %v3648_v58, %v3029_v13 }
0x1504   : > { %v3032_v35 = vmax.f32 %v3030_v60, 0.0  ;;  %v3159_v60 = vand.u32 2147483648, %v3147_v10 }
0x1506   : > { %3459 = vmatmul.msk.f32.vlgmr.msrb.gmra.mxu3 %vm2048_vm12, %v3032_v35 }
0x1589   : > { %v3067_v59 = vpop.f32.mrf.mxu3 }
0x158a   : > { %v3068_v17 = vadd.f32 %v3649_v12, %v3067_v59  ;;  %v3160_v59 = vor.u32 1.1754944e-38, %v3159_v60 }
0x158c   : > { %v3070_v56 = vadd.f32 %v3068_v17, %v2998_v25 }
0x158e   : > { %v3075_v37 = vsel %vm1011_vm4, %v3070_v56, 0.0 }
0x158f   : > { %3076 = vadd.xlane.f32.xlu1 %v3075_v37 }
0x1602   : > { %v3077_v1 = vpop.xlane.xlu1 %3076 }
0x1603   : > { %v3078_v2 = vmul.f32 %v3077_v1, %v4257_v30 }
0x1605   : > { %v3079_v3 = vsub.f32 %v3070_v56, %v3078_v2 }
0x1607   : > { %v3080_v8 = vmul.f32 %v3079_v3, %v3079_v3 }
0x1609   : > { %v3081_v9 = vsel %vm1011_vm4, %v3080_v8, 0.0 }
0x160a   : > { %3082 = vadd.xlane.f32.xlu2 %v3081_v9 }
0x167d   : > { %v3083_v22 = vpop.xlane.xlu2 %3082 }
0x167e   : > { %v3084_v11 = vmul.f32 %v3083_v22, %v4257_v30  ;;  %v3166_v30 = vld [vmem:[%s5053_s5 + $0x18] sm:$0xff] }
0x167f   : > { %3183 = vmatpush.msrb.mxu0 %v3166_v30 }
0x1680   : > { %v3085_v14 = vadd.f32 1e-12, %v3084_v11 }
0x1681   : > { %3184 = vmatpush.msrb.mxu0 %v3165_v34 }
0x1682   : > { %3704 = vrsqrt.f32 %v3085_v14  ;;  %vm3093_vm12 = vcmp.eq.f32.partialorder %v3085_v14, inf  ;;  %v3096_v24 = vand.u32 2147483648, %v3085_v14  ;;  %vm3095_vm7 = vcmp.eq.f32.partialorder %v3085_v14, 0.0 }
0x1683   : > { %3185 = vmatpush.msrb.mxu0 %v3164_v32 }
0x1685   : > { %3186 = vmatpush.msrb.mxu0 %v3163_v38 }
0x1688   : > { %v3705_v28 = vpop.eup %3704 }
0x1689   : > { %v3087_v53 = vmul.f32 %v3705_v28, %v3085_v14 }
0x168b   : > { %v3088_v5 = vmul.f32 %v3705_v28, %v3087_v53 }
0x168d   : > { %v3089_v7 = vmul.f32 0.5, %v3088_v5 }
0x168f   : > { %v3090_v20 = vsub.f32 1.5, %v3089_v7 }
0x1691   : > { %v3091_v21 = vmul.f32 %v3705_v28, %v3090_v20 }
0x1693   : > { %v3092_v23 = vmul.f32 %v3091_v21, %v3085_v14 }
0x1695   : > { %v3094_v6 = vsel %vm3093_vm12, %v3085_v14, %v3092_v23 }
0x1696   : > { %v3097_v26 = vsel %vm3095_vm7, %v3096_v24, %v3094_v6 }
0x1697   : > { %3706 = vrcp.f32 %v3097_v26  ;;  %v3109_v39 = vand.u32 2147483648, %v3097_v26  ;;  %v3107_v40 = vand.u32 2147483647, %v3097_v26  ;;  %vm3103_vm9 = vweird.f32 %v3097_v26 }
0x1698   : > { %3708 = vrcp.f32 %v3147_v10 }
0x1699   : > { %v3110_v57 = vor.u32 1.1754944e-38, %v3109_v39  ;;  %vm3108_vm11 = vcmp.eq.f32.partialorder %v3107_v40, 8.507059e+37 }
0x169d   : > { %v3707_v29 = vpop.eup %3706 }
0x169e   : > { %v3099_v33 = vmul.f32 %v3707_v29, %v3097_v26  ;;  %vm3104_vm8 = vweird.f32 %v3707_v29  ;;  %v3709_v46 = vpop.eup %3708 }
0x169f   : > { %vm3105_vm10 = vmor %vm3103_vm9, %vm3104_vm8  ;;  %v3149_v52 = vmul.f32 %v3709_v46, %v3147_v10  ;;  %vm3154_vm14 = vweird.f32 %v3709_v46 }
0x16a0   : > { %v3100_v36 = vsub.f32 1.0, %v3099_v33  ;;  %vm3155_vm2 = vmor %vm3153_vm13, %vm3154_vm14 }
0x16a1   : > { %v3150_v25 = vsub.f32 1.0, %v3149_v52 }
0x16a2   : > { %v3101_v63 = vmul.f32 %v3707_v29, %v3100_v36 }
0x16a3   : > { %v3151_v41 = vmul.f32 %v3709_v46, %v3150_v25 }
0x16a4   : > { %v3102_v42 = vadd.f32 %v3707_v29, %v3101_v63 }
0x16a5   : > { %v3152_v35 = vadd.f32 %v3709_v46, %v3151_v41 }
0x16a6   : > { %v3106_v43 = vsel %vm3105_vm10, %v3707_v29, %v3102_v42 }
0x16a7   : > { %v3111_v45 = vsel %vm3108_vm11, %v3110_v57, %v3106_v43  ;;  %v3156_v17 = vsel %vm3155_vm2, %v3709_v46, %v3152_v35 }
0x16a8   : > { %v3112_v47 = vmul.f32 %v3111_v45, %v3079_v3  ;;  %v3161_v61 = vsel %vm3158_vm3, %v3160_v59, %v3156_v17 }
0x16aa   : > { %v3116_v51 = vmul.f32 %v3650_v44, %v3112_v47 }
0x16ac   : > { %v3120_v55 = vadd.f32 %v3651_v48, %v3116_v51 }
0x16ae   : > { %v3122_v31 = vmax.f32 %v3120_v55, 0.0 }
0x16b0   : > { %v3128_v49 = vmul.f32 %v3126_v16, %v3122_v31 }
0x16b2   : > { %v3129_v27 = vsel %vm1011_vm4, %v3128_v49, 0.0 }
0x16b3   : > { %v3130_v58 = vrot.slane %v3129_v27, 4 }
0x16b5   : > { %v3131_v13 = vadd.f32 %v3130_v58, %v3129_v27 }
0x16b7   : > { %v3132_v19 = vrot.slane %v3131_v13, 2 }
0x16b9   : > { %v3133_v12 = vadd.f32 %v3132_v19, %v3131_v13 }
0x16bb   : > { %v3134_v56 = vrot.slane %v3133_v12, 1 }
0x16bd   : > { %v3135_v37 = vadd.f32 %v3134_v56, %v3133_v12 }
0x16bf   : > { %v3162_v62 = vmul.f32 %v3161_v61, %v3135_v37 }
0x16c1   : > { %3462 = vmatmul.msk.f32.vlgmr.msrb.gmra.mxu0 %vm1011_vm4, %v3162_v62 }
0x173e   : > { %v3188_v15 = vpop.f32.mrf.mxu0 }
0x173f   : > { %v3189_v54 = vadd.f32 %v3188_v15, %v3167_v0 }
0x1741   : > { %3192 = vst.msk [vmem:[%s937_s28] sm:$0x1] %vm3191_vm5, %v3189_v54 }
0x1742   : > { %3893 = shalt.err (!%p3890_p8)
}
0x1743   : > { %3488 = dma.vmem_to_hbm [thread:$0]  (%p4155_p5), %s3205_s27, 16, %s3207_s7, %s3194_s4  }
0x1744 PF: > { %s5058_s26 = sld [smem:[#allocation19_spill]] }
0x1745   : > { %s5059_s6 = sld [smem:[#allocation16_spill]] }
0x174a   : > { %p3520_p9 = scmp.ge.s32.totalorder %s5058_s26, 2 }
0x174b   : > { %s3218_s10 = sand.u32 1, %s5059_s6  }
0x174c   : > { %p3507_p10 = pnand %p3520_p9, %p4159_p6  ;;  %s3219_s28 = scalar_lea.sflag [#allocation4], %s3218_s10 }
0x174e   : > { %p3508_p11 = pneg %p3507_p10 }
0x1750   : > { %3923 = dma.done.wait (%p3508_p11), %s3219_s28, 16  }
0x1751   : > { %3925 = vsyncadd (%p3508_p11), %s3219_s28, 4294967280  ;;  %s5061_s30 = sld [smem:[#allocation20_spill]] }
0x1752   : > { %s5062_s7 = sld [smem:[#allocation17_spill]] }
0x1753   : > { %s5063_s4 = sld [smem:[#allocation18_spill]] }
0x1754   : > { %s5064_s8 = sld [smem:[#allocation21_spill]] }
0x1757   : > { %p40_p12 = scmp.ge.s32.totalorder %s5061_s30, 4  }
0x1759   :  { %42 = sbr.rel (!%p40_p12) target bundleno = 24 (0x18), region = 226 }
0x175e   :  { %3224 = vsyncpa [#allocation3], 1 }
0x175f   :  { %3226 = vsyncpa [#allocation3 + $0x1], 1 }
0x1760   :  { %3227 = vsyncpa [#allocation6], 1 }
0x1761   :  { %3228 = vsyncpa [#allocation9], 1 }
0x1762   :  { %3229 = vsyncpa [#allocation4], 1 }
0x1763   :  { %3231 = vsyncpa [#allocation4 + $0x1], 1 }

</bundles_post_ra>
